<compile_context>
chip_gen: v7x
topology: tpu7x:2x2x1
jax: 0.10.0
libtpu: 0.0.40
codegen_flags: <defaults>
</compile_context>

<pallas_src>
import functools

import jax
import jax.numpy as jnp
from jax.experimental import pallas as pl
from jax.experimental.pallas import tpu as pltpu

HIDDEN = 256
BN_EPS = 1e-5


def _vmem_spec():
    # Whole array resident in VMEM (single grid step, full-array block).
    return pl.BlockSpec(memory_space=pltpu.MemorySpace.VMEM)


# ---------------------------------------------------------------------------
# Kernel 1: conv-as-matmul + conv bias + BatchNorm(batch stats) + ReLU
# ---------------------------------------------------------------------------
def _conv_bn_relu_kernel(p_ref, w_ref, cb_ref, g_ref, b_ref, o_ref):
    """p_ref: [N, 9*Cin] bf16 patches, w_ref: [9*Cin, Cout] bf16,
    cb_ref/g_ref/b_ref: [1, Cout] f32 (conv bias, BN gamma, BN beta),
    o_ref: [N, Cout] bf16."""
    y = jnp.dot(p_ref[...], w_ref[...], preferred_element_type=jnp.float32)
    y = y + cb_ref[...]
    # Training-mode BatchNorm2d: statistics over the batch*spatial rows.
    mean = jnp.mean(y, axis=0, keepdims=True)
    var = jnp.mean((y - mean) ** 2, axis=0, keepdims=True)
    y = (y - mean) * jax.lax.rsqrt(var + BN_EPS) * g_ref[...] + b_ref[...]
    o_ref[...] = jnp.maximum(y, 0.0).astype(o_ref.dtype)


def _conv_bn_relu(patches, w2d, cbias, gamma, beta):
    n, k = patches.shape
    c = w2d.shape[1]
    cost = pl.CostEstimate(
        flops=int(2 * n * k * c + 8 * n * c),
        transcendentals=int(c),
        bytes_accessed=int(2 * (n * k + k * c + n * c) + 3 * c * 4),
    )
    return pl.pallas_call(
        _conv_bn_relu_kernel,
        out_shape=jax.ShapeDtypeStruct((n, c), jnp.bfloat16),
        in_specs=[_vmem_spec()] * 5,
        out_specs=_vmem_spec(),
        cost_estimate=cost,
    )(patches, w2d, cbias, gamma, beta)


# ---------------------------------------------------------------------------
# Kernel 2: fused MLP head (final_linear, action MLP, both Q-heads + sigmoid)
# ---------------------------------------------------------------------------
def _head_kernel(cf_ref, act_ref,
                 wf_ref, bf_ref,
                 wa1_ref, ba1_ref, wa2_ref, ba2_ref, wa3_ref, ba3_ref,
                 w1c_ref, w1a_ref, b1_ref, w2_ref, b2_ref, w3_ref, b3_ref,
                 o_ref):
    f32 = jnp.float32
    bf16 = jnp.bfloat16

    # conv-feature branch: final_linear + ReLU
    fc = jnp.dot(cf_ref[...], wf_ref[...], preferred_element_type=f32) + bf_ref[...]
    fc = jnp.maximum(fc, 0.0).astype(bf16)

    # action branch: linear_act1 (ReLU) -> linear_act2 (ReLU) -> linear_act3
    x0 = jnp.dot(act_ref[...], wa1_ref[...], preferred_element_type=f32) + ba1_ref[...]
    x0 = jnp.maximum(x0, 0.0).astype(bf16)
    x0 = jnp.dot(x0, wa2_ref[...], preferred_element_type=f32) + ba2_ref[...]
    x0 = jnp.maximum(x0, 0.0).astype(bf16)
    x0 = (jnp.dot(x0, wa3_ref[...], preferred_element_type=f32) + ba3_ref[...]).astype(bf16)

    # Two Q heads.  cat([fc, x0], 1) @ W1 == fc @ W1_conv + x0 @ W1_act.
    for i in range(2):
        h = (jnp.dot(fc, w1c_ref[i], preferred_element_type=f32)
             + jnp.dot(x0, w1a_ref[i], preferred_element_type=f32)
             + b1_ref[i])
        h = jnp.maximum(h, 0.0).astype(bf16)
        h = jnp.dot(h, w2_ref[i], preferred_element_type=f32) + b2_ref[i]
        h = jnp.maximum(h, 0.0)
        # 256 -> 1 layer as VPU multiply + lane reduction (keeps N=1 off the MXU)
        z = jnp.sum(h * w3_ref[i].astype(f32), axis=-1, keepdims=True) + b3_ref[i]
        q = 1.0 / (1.0 + jnp.exp(-z))          # sigmoid
        o_ref[:, i:i + 1] = q.astype(o_ref.dtype)


def _head_call(conv_flat, action, p):
    b, f = conv_flat.shape
    a = action.shape[1]
    h = HIDDEN
    flops = 2 * b * (f * h + a * h + 2 * h * h + 2 * (3 * h * h + h))
    param_bytes = 2 * (f * h + a * h + 2 * h * h + 2 * (3 * h * h + h))
    cost = pl.CostEstimate(
        flops=int(flops),
        transcendentals=int(2 * b),
        bytes_accessed=int(param_bytes + 2 * b * (f + a) + 4 * b * 2),
    )
    return pl.pallas_call(
        _head_kernel,
        out_shape=jax.ShapeDtypeStruct((b, 2), jnp.float32),
        in_specs=[_vmem_spec()] * 17,
        out_specs=_vmem_spec(),
        cost_estimate=cost,
    )(conv_flat, action,
      p["wf"], p["bf"],
      p["wa1"], p["ba1"], p["wa2"], p["ba2"], p["wa3"], p["ba3"],
      p["w1c"], p["w1a"], p["b1"], p["w2"], p["b2"], p["w3"], p["b3"])


# ---------------------------------------------------------------------------
# Wrapper
# ---------------------------------------------------------------------------
def _extract_patches(x):
    """x: [B, H, W, C] -> ([B*OH*OW, 9*C], (OH, OW)) for k=3, stride=2, pad=1."""
    b, hh, ww, c = x.shape
    oh = (hh - 1) // 2 + 1
    ow = (ww - 1) // 2 + 1
    xp = jnp.pad(x, ((0, 0), (1, 1), (1, 1), (0, 0)))
    cols = []
    for kh in range(3):
        for kw in range(3):
            cols.append(xp[:, kh:kh + 2 * oh:2, kw:kw + 2 * ow:2, :])
    patches = jnp.concatenate(cols, axis=-1)            # [B, OH, OW, 9*C]
    return patches.reshape(b * oh * ow, 9 * c), (oh, ow)


@jax.jit
def cnn_q_forward(state_nchw, action, params):
    """CNNQFunction.forward.  state: [B, C, H, W] (torch layout),
    action: [B, act_dim].  Returns (q1, q2), each [B, 1] in (0, 1)."""
    x = jnp.transpose(state_nchw, (0, 2, 3, 1)).astype(jnp.bfloat16)   # NHWC, bf16
    act = action.astype(jnp.bfloat16)

    # conv1/conv2/conv3, each a fused matmul+BN+ReLU Pallas kernel.
    # TODO(synk): im2col (strided 3x3 window gather) is done in the XLA wrapper;
    # a clean in-kernel Mosaic equivalent at these tiny spatial sizes is not worth it.
    for layer in ("1", "2", "3"):
        patches, (oh, ow) = _extract_patches(x)
        w = params[f"conv{layer}_w"]                    # [3, 3, Cin, Cout] bf16
        w2d = w.reshape(-1, w.shape[-1])                # [9*Cin, Cout]
        y = _conv_bn_relu(patches, w2d,
                          params[f"conv{layer}_b"],
                          params[f"bn{layer}_g"],
                          params[f"bn{layer}_b"])
        x = y.reshape(x.shape[0], oh, ow, w.shape[-1])

    b = x.shape[0]
    conv_flat = x.reshape(b, -1)                        # [B, final_linear_size] (NHWC order)

    q = _head_call(conv_flat, act, params)              # [B, 2] f32
    return q[:, 0:1], q[:, 1:2]


# ---------------------------------------------------------------------------
# Parameter init (mimics the torch module: xavier_uniform + zero bias for
# Linear layers, default init for convs, gamma=1 / beta=0 for BatchNorm).
# ---------------------------------------------------------------------------
def init_params(key, obs_shape_nchw, act_dim, hidden=HIDDEN):
    _, c_in, hh, ww = obs_shape_nchw
    oh1, ow1 = (hh + 1) // 2, (ww + 1) // 2
    oh2, ow2 = (oh1 + 1) // 2, (ow1 + 1) // 2
    oh3, ow3 = (oh2 + 1) // 2, (ow2 + 1) // 2
    final_linear_size = 16 * oh3 * ow3

    keys = iter(jax.random.split(key, 32))

    def conv(cin, cout):
        fan_in = cin * 9
        bound = 1.0 / float(fan_in) ** 0.5
        w = jax.random.uniform(next(keys), (3, 3, cin, cout), jnp.float32, -bound, bound)
        bias = jax.random.uniform(next(keys), (1, cout), jnp.float32, -bound, bound)
        return w.astype(jnp.bfloat16), bias

    def linear(fin, fout):
        bound = (6.0 / (fin + fout)) ** 0.5             # xavier_uniform, gain=1
        w = jax.random.uniform(next(keys), (fin, fout), jnp.float32, -bound, bound)
        return w.astype(jnp.bfloat16), jnp.zeros((1, fout), jnp.float32)

    p = {}
    for name, (cin, cout) in (("1", (c_in, 128)), ("2", (128, 64)), ("3", (64, 16))):
        w, bias = conv(cin, cout)
        p[f"conv{name}_w"], p[f"conv{name}_b"] = w, bias
        p[f"bn{name}_g"] = jnp.ones((1, cout), jnp.float32)
        p[f"bn{name}_b"] = jnp.zeros((1, cout), jnp.float32)

    p["wf"], p["bf"] = linear(final_linear_size, hidden)
    p["wa1"], p["ba1"] = linear(act_dim, hidden)
    p["wa2"], p["ba2"] = linear(hidden, hidden)
    p["wa3"], p["ba3"] = linear(hidden, hidden)

    w1c, w1a, b1, w2, b2, w3, b3 = [], [], [], [], [], [], []
    for _ in range(2):                                  # linear{1,2,3}_{1,2}
        w1_full, b1_full = linear(2 * hidden, hidden)
        w1c.append(w1_full[:hidden]); w1a.append(w1_full[hidden:]); b1.append(b1_full)
        w2_i, b2_i = linear(hidden, hidden)
        w2.append(w2_i); b2.append(b2_i)
        w3_i, b3_i = linear(hidden, 1)
        w3.append(w3_i.reshape(1, hidden)); b3.append(b3_i.reshape(1, 1))
    p["w1c"] = jnp.stack(w1c); p["w1a"] = jnp.stack(w1a); p["b1"] = jnp.stack(b1)
    p["w2"] = jnp.stack(w2);   p["b2"] = jnp.stack(b2)
    p["w3"] = jnp.stack(w3);   p["b3"] = jnp.stack(b3)
    return p


# ---------------------------------------------------------------------------
# Pure-JAX reference (f32) of the same forward, for correctness checking.
# ---------------------------------------------------------------------------
def cnn_q_forward_ref(state_nchw, action, params):
    f32 = lambda a: a.astype(jnp.float32)
    x = jnp.transpose(state_nchw, (0, 2, 3, 1)).astype(jnp.float32)

    def conv_bn_relu_ref(x, w, cb, g, be):
        y = jax.lax.conv_general_dilated(
            x, f32(w), window_strides=(2, 2), padding=((1, 1), (1, 1)),
            dimension_numbers=("NHWC", "HWIO", "NHWC"))
        y = y + cb.reshape(1, 1, 1, -1)
        mean = y.mean(axis=(0, 1, 2), keepdims=True)
        var = ((y - mean) ** 2).mean(axis=(0, 1, 2), keepdims=True)
        y = (y - mean) * jax.lax.rsqrt(var + BN_EPS) * g.reshape(1, 1, 1, -1) \
            + be.reshape(1, 1, 1, -1)
        return jnp.maximum(y, 0.0)

    for l in ("1", "2", "3"):
        x = conv_bn_relu_ref(x, params[f"conv{l}_w"], params[f"conv{l}_b"],
                             params[f"bn{l}_g"], params[f"bn{l}_b"])

    conv_flat = x.reshape(x.shape[0], -1)
    fc = jnp.maximum(conv_flat @ f32(params["wf"]) + params["bf"], 0.0)
    a = action.astype(jnp.float32)
    x0 = jnp.maximum(a @ f32(params["wa1"]) + params["ba1"], 0.0)
    x0 = jnp.maximum(x0 @ f32(params["wa2"]) + params["ba2"], 0.0)
    x0 = x0 @ f32(params["wa3"]) + params["ba3"]
    outs = []
    for i in range(2):
        h = jnp.maximum(fc @ f32(params["w1c"][i]) + x0 @ f32(params["w1a"][i])
                        + params["b1"][i], 0.0)
        h = jnp.maximum(h @ f32(params["w2"][i]) + params["b2"][i], 0.0)
        z = h @ f32(params["w3"][i]).T + params["b3"][i]
        outs.append(1.0 / (1.0 + jnp.exp(-z)))
    return tuple(outs)


if __name__ == "__main__":
    key = jax.random.PRNGKey(0)
    k_s, k_a, k_p = jax.random.split(key, 3)

    B, C, H, W = 2, 4, 16, 16          # state: [B, C, H, W] (obs_dim[-1] = C = 4)
    ACT_DIM = 8

    state = jax.random.normal(k_s, (B, C, H, W), jnp.float32)
    action = jax.random.normal(k_a, (B, ACT_DIM), jnp.float32)
    params = init_params(k_p, (B, C, H, W), ACT_DIM)

    q1, q2 = cnn_q_forward(state, action, params)
    q1, q2 = jax.block_until_ready((q1, q2))

    r1, r2 = cnn_q_forward_ref(state, action, params)

    assert q1.shape == (B, 1) and q2.shape == (B, 1)
    assert bool(jnp.all(jnp.isfinite(q1))) and bool(jnp.all(jnp.isfinite(q2)))
    # bf16 matmul inputs (f32 accumulation) -> loosened tolerance vs f32 reference.
    assert jnp.allclose(q1, r1, atol=5e-2), (q1, r1)
    assert jnp.allclose(q2, r2, atol=5e-2), (q2, r2)

    print("KERNEL_OK")
</pallas_src>

<mosaic_0001>
module attributes {stable_mosaic.version = 11 : i64} {
  func.func @_conv_bn_relu_kernel(%arg0: memref<128x36xbf16, #tpu.memory_space<vmem>>, %arg1: memref<36x128xbf16, #tpu.memory_space<vmem>>, %arg2: memref<1x128xf32, #tpu.memory_space<vmem>>, %arg3: memref<1x128xf32, #tpu.memory_space<vmem>>, %arg4: memref<1x128xf32, #tpu.memory_space<vmem>>, %arg5: memref<128x128xbf16, #tpu.memory_space<vmem>>) attributes {dimension_semantics = [], scalar_prefetch = 0 : i64, scratch_operands = 0 : i64, tpu.core_type = #tpu.core_type<tc>} {
    %c0 = arith.constant 0 : index
    %c0_0 = arith.constant 0 : index
    %0 = vector.load %arg0[%c0, %c0_0] : memref<128x36xbf16, #tpu.memory_space<vmem>>, vector<128x36xbf16>
    %c0_1 = arith.constant 0 : index
    %c0_2 = arith.constant 0 : index
    %1 = vector.load %arg1[%c0_1, %c0_2] : memref<36x128xbf16, #tpu.memory_space<vmem>>, vector<36x128xbf16>
    %cst = arith.constant dense<0.000000e+00> : vector<128x128xf32>
    %2 = tpu.matmul %0, %1, %cst {dimension_numbers = #tpu.dot_dimension_numbers<[1], [0], [0], [1], [0, 0, 1, 1], [], []>} : vector<128x36xbf16>, vector<36x128xbf16>, vector<128x128xf32> -> vector<128x128xf32>
    %c0_3 = arith.constant 0 : index
    %c0_4 = arith.constant 0 : index
    %3 = vector.load %arg2[%c0_3, %c0_4] : memref<1x128xf32, #tpu.memory_space<vmem>>, vector<1x128xf32>
    %4 = vector.broadcast %3 : vector<1x128xf32> to vector<128x128xf32>
    %5 = arith.addf %2, %4 : vector<128x128xf32>
    %cst_5 = arith.constant dense<0.000000e+00> : vector<128xf32>
    %6 = vector.multi_reduction <add>, %5, %cst_5 [0] : vector<128x128xf32> to vector<128xf32>
    %7 = vector.shape_cast %6 : vector<128xf32> to vector<1x128xf32>
    %cst_6 = arith.constant 1.280000e+02 : f32
    %8 = vector.broadcast %cst_6 : f32 to vector<1x128xf32>
    %9 = arith.divf %7, %8 : vector<1x128xf32>
    %10 = vector.broadcast %9 : vector<1x128xf32> to vector<128x128xf32>
    %11 = arith.subf %5, %10 : vector<128x128xf32>
    %12 = arith.mulf %11, %11 : vector<128x128xf32>
    %cst_7 = arith.constant dense<0.000000e+00> : vector<128xf32>
    %13 = vector.multi_reduction <add>, %12, %cst_7 [0] : vector<128x128xf32> to vector<128xf32>
    %14 = vector.shape_cast %13 : vector<128xf32> to vector<1x128xf32>
    %cst_8 = arith.constant 1.280000e+02 : f32
    %15 = vector.broadcast %cst_8 : f32 to vector<1x128xf32>
    %16 = arith.divf %14, %15 : vector<1x128xf32>
    %17 = vector.broadcast %9 : vector<1x128xf32> to vector<128x128xf32>
    %18 = arith.subf %5, %17 : vector<128x128xf32>
    %cst_9 = arith.constant 9.99999974E-6 : f32
    %19 = vector.broadcast %cst_9 : f32 to vector<1x128xf32>
    %20 = arith.addf %16, %19 : vector<1x128xf32>
    %21 = math.rsqrt %20 : vector<1x128xf32>
    %22 = vector.broadcast %21 : vector<1x128xf32> to vector<128x128xf32>
    %23 = arith.mulf %18, %22 : vector<128x128xf32>
    %c0_10 = arith.constant 0 : index
    %c0_11 = arith.constant 0 : index
    %24 = vector.load %arg3[%c0_10, %c0_11] : memref<1x128xf32, #tpu.memory_space<vmem>>, vector<1x128xf32>
    %25 = vector.broadcast %24 : vector<1x128xf32> to vector<128x128xf32>
    %26 = arith.mulf %23, %25 : vector<128x128xf32>
    %c0_12 = arith.constant 0 : index
    %c0_13 = arith.constant 0 : index
    %27 = vector.load %arg4[%c0_12, %c0_13] : memref<1x128xf32, #tpu.memory_space<vmem>>, vector<1x128xf32>
    %28 = vector.broadcast %27 : vector<1x128xf32> to vector<128x128xf32>
    %29 = arith.addf %26, %28 : vector<128x128xf32>
    %cst_14 = arith.constant 0.000000e+00 : f32
    %30 = vector.broadcast %cst_14 : f32 to vector<128x128xf32>
    %31 = arith.maximumf %29, %30 : vector<128x128xf32>
    %32 = arith.truncf %31 : vector<128x128xf32> to vector<128x128xbf16>
    %c0_15 = arith.constant 0 : index
    %c0_16 = arith.constant 0 : index
    %33 = vector.load %arg5[%c0_15, %c0_16] : memref<128x128xbf16, #tpu.memory_space<vmem>>, vector<128x128xbf16>
    tpu.vector_store %arg5[%c0_15, %c0_16], %32 {strides = array<i32>} : memref<128x128xbf16, #tpu.memory_space<vmem>>, vector<128x128xbf16>,
    return
  }
}

module attributes {stable_mosaic.version = 11 : i64} {
  func.func @_conv_bn_relu_kernel(%arg0: memref<32x1152xbf16, #tpu.memory_space<vmem>>, %arg1: memref<1152x64xbf16, #tpu.memory_space<vmem>>, %arg2: memref<1x64xf32, #tpu.memory_space<vmem>>, %arg3: memref<1x64xf32, #tpu.memory_space<vmem>>, %arg4: memref<1x64xf32, #tpu.memory_space<vmem>>, %arg5: memref<32x64xbf16, #tpu.memory_space<vmem>>) attributes {dimension_semantics = [], scalar_prefetch = 0 : i64, scratch_operands = 0 : i64, tpu.core_type = #tpu.core_type<tc>} {
    %c0 = arith.constant 0 : index
    %c0_0 = arith.constant 0 : index
    %0 = vector.load %arg0[%c0, %c0_0] : memref<32x1152xbf16, #tpu.memory_space<vmem>>, vector<32x1152xbf16>
    %c0_1 = arith.constant 0 : index
    %c0_2 = arith.constant 0 : index
    %1 = vector.load %arg1[%c0_1, %c0_2] : memref<1152x64xbf16, #tpu.memory_space<vmem>>, vector<1152x64xbf16>
    %cst = arith.constant dense<0.000000e+00> : vector<32x64xf32>
    %2 = tpu.matmul %0, %1, %cst {dimension_numbers = #tpu.dot_dimension_numbers<[1], [0], [0], [1], [0, 0, 1, 1], [], []>} : vector<32x1152xbf16>, vector<1152x64xbf16>, vector<32x64xf32> -> vector<32x64xf32>
    %c0_3 = arith.constant 0 : index
    %c0_4 = arith.constant 0 : index
    %3 = vector.load %arg2[%c0_3, %c0_4] : memref<1x64xf32, #tpu.memory_space<vmem>>, vector<1x64xf32>
    %4 = vector.broadcast %3 : vector<1x64xf32> to vector<32x64xf32>
    %5 = arith.addf %2, %4 : vector<32x64xf32>
    %cst_5 = arith.constant dense<0.000000e+00> : vector<64xf32>
    %6 = vector.multi_reduction <add>, %5, %cst_5 [0] : vector<32x64xf32> to vector<64xf32>
    %7 = vector.shape_cast %6 : vector<64xf32> to vector<1x64xf32>
    %cst_6 = arith.constant 3.200000e+01 : f32
    %8 = vector.broadcast %cst_6 : f32 to vector<1x64xf32>
    %9 = arith.divf %7, %8 : vector<1x64xf32>
    %10 = vector.broadcast %9 : vector<1x64xf32> to vector<32x64xf32>
    %11 = arith.subf %5, %10 : vector<32x64xf32>
    %12 = arith.mulf %11, %11 : vector<32x64xf32>
    %cst_7 = arith.constant dense<0.000000e+00> : vector<64xf32>
    %13 = vector.multi_reduction <add>, %12, %cst_7 [0] : vector<32x64xf32> to vector<64xf32>
    %14 = vector.shape_cast %13 : vector<64xf32> to vector<1x64xf32>
    %cst_8 = arith.constant 3.200000e+01 : f32
    %15 = vector.broadcast %cst_8 : f32 to vector<1x64xf32>
    %16 = arith.divf %14, %15 : vector<1x64xf32>
    %17 = vector.broadcast %9 : vector<1x64xf32> to vector<32x64xf32>
    %18 = arith.subf %5, %17 : vector<32x64xf32>
    %cst_9 = arith.constant 9.99999974E-6 : f32
    %19 = vector.broadcast %cst_9 : f32 to vector<1x64xf32>
    %20 = arith.addf %16, %19 : vector<1x64xf32>
    %21 = math.rsqrt %20 : vector<1x64xf32>
    %22 = vector.broadcast %21 : vector<1x64xf32> to vector<32x64xf32>
    %23 = arith.mulf %18, %22 : vector<32x64xf32>
    %c0_10 = arith.constant 0 : index
    %c0_11 = arith.constant 0 : index
    %24 = vector.load %arg3[%c0_10, %c0_11] : memref<1x64xf32, #tpu.memory_space<vmem>>, vector<1x64xf32>
    %25 = vector.broadcast %24 : vector<1x64xf32> to vector<32x64xf32>
    %26 = arith.mulf %23, %25 : vector<32x64xf32>
    %c0_12 = arith.constant 0 : index
    %c0_13 = arith.constant 0 : index
    %27 = vector.load %arg4[%c0_12, %c0_13] : memref<1x64xf32, #tpu.memory_space<vmem>>, vector<1x64xf32>
    %28 = vector.broadcast %27 : vector<1x64xf32> to vector<32x64xf32>
    %29 = arith.addf %26, %28 : vector<32x64xf32>
    %cst_14 = arith.constant 0.000000e+00 : f32
    %30 = vector.broadcast %cst_14 : f32 to vector<32x64xf32>
    %31 = arith.maximumf %29, %30 : vector<32x64xf32>
    %32 = arith.truncf %31 : vector<32x64xf32> to vector<32x64xbf16>
    %c0_15 = arith.constant 0 : index
    %c0_16 = arith.constant 0 : index
    %33 = vector.load %arg5[%c0_15, %c0_16] : memref<32x64xbf16, #tpu.memory_space<vmem>>, vector<32x64xbf16>
    tpu.vector_store %arg5[%c0_15, %c0_16], %32 {strides = array<i32>} : memref<32x64xbf16, #tpu.memory_space<vmem>>, vector<32x64xbf16>,
    return
  }
}

module attributes {stable_mosaic.version = 11 : i64} {
  func.func @_conv_bn_relu_kernel(%arg0: memref<8x576xbf16, #tpu.memory_space<vmem>>, %arg1: memref<576x16xbf16, #tpu.memory_space<vmem>>, %arg2: memref<1x16xf32, #tpu.memory_space<vmem>>, %arg3: memref<1x16xf32, #tpu.memory_space<vmem>>, %arg4: memref<1x16xf32, #tpu.memory_space<vmem>>, %arg5: memref<8x16xbf16, #tpu.memory_space<vmem>>) attributes {dimension_semantics = [], scalar_prefetch = 0 : i64, scratch_operands = 0 : i64, tpu.core_type = #tpu.core_type<tc>} {
    %c0 = arith.constant 0 : index
    %c0_0 = arith.constant 0 : index
    %0 = vector.load %arg0[%c0, %c0_0] : memref<8x576xbf16, #tpu.memory_space<vmem>>, vector<8x576xbf16>
    %c0_1 = arith.constant 0 : index
    %c0_2 = arith.constant 0 : index
    %1 = vector.load %arg1[%c0_1, %c0_2] : memref<576x16xbf16, #tpu.memory_space<vmem>>, vector<576x16xbf16>
    %cst = arith.constant dense<0.000000e+00> : vector<8x16xf32>
    %2 = tpu.matmul %0, %1, %cst {dimension_numbers = #tpu.dot_dimension_numbers<[1], [0], [0], [1], [0, 0, 1, 1], [], []>} : vector<8x576xbf16>, vector<576x16xbf16>, vector<8x16xf32> -> vector<8x16xf32>
    %c0_3 = arith.constant 0 : index
    %c0_4 = arith.constant 0 : index
    %3 = vector.load %arg2[%c0_3, %c0_4] : memref<1x16xf32, #tpu.memory_space<vmem>>, vector<1x16xf32>
    %4 = vector.broadcast %3 : vector<1x16xf32> to vector<8x16xf32>
    %5 = arith.addf %2, %4 : vector<8x16xf32>
    %cst_5 = arith.constant dense<0.000000e+00> : vector<16xf32>
    %6 = vector.multi_reduction <add>, %5, %cst_5 [0] : vector<8x16xf32> to vector<16xf32>
    %7 = vector.shape_cast %6 : vector<16xf32> to vector<1x16xf32>
    %cst_6 = arith.constant 8.000000e+00 : f32
    %8 = vector.broadcast %cst_6 : f32 to vector<1x16xf32>
    %9 = arith.divf %7, %8 : vector<1x16xf32>
    %10 = vector.broadcast %9 : vector<1x16xf32> to vector<8x16xf32>
    %11 = arith.subf %5, %10 : vector<8x16xf32>
    %12 = arith.mulf %11, %11 : vector<8x16xf32>
    %cst_7 = arith.constant dense<0.000000e+00> : vector<16xf32>
    %13 = vector.multi_reduction <add>, %12, %cst_7 [0] : vector<8x16xf32> to vector<16xf32>
    %14 = vector.shape_cast %13 : vector<16xf32> to vector<1x16xf32>
    %cst_8 = arith.constant 8.000000e+00 : f32
    %15 = vector.broadcast %cst_8 : f32 to vector<1x16xf32>
    %16 = arith.divf %14, %15 : vector<1x16xf32>
    %17 = vector.broadcast %9 : vector<1x16xf32> to vector<8x16xf32>
    %18 = arith.subf %5, %17 : vector<8x16xf32>
    %cst_9 = arith.constant 9.99999974E-6 : f32
    %19 = vector.broadcast %cst_9 : f32 to vector<1x16xf32>
    %20 = arith.addf %16, %19 : vector<1x16xf32>
    %21 = math.rsqrt %20 : vector<1x16xf32>
    %22 = vector.broadcast %21 : vector<1x16xf32> to vector<8x16xf32>
    %23 = arith.mulf %18, %22 : vector<8x16xf32>
    %c0_10 = arith.constant 0 : index
    %c0_11 = arith.constant 0 : index
    %24 = vector.load %arg3[%c0_10, %c0_11] : memref<1x16xf32, #tpu.memory_space<vmem>>, vector<1x16xf32>
    %25 = vector.broadcast %24 : vector<1x16xf32> to vector<8x16xf32>
    %26 = arith.mulf %23, %25 : vector<8x16xf32>
    %c0_12 = arith.constant 0 : index
    %c0_13 = arith.constant 0 : index
    %27 = vector.load %arg4[%c0_12, %c0_13] : memref<1x16xf32, #tpu.memory_space<vmem>>, vector<1x16xf32>
    %28 = vector.broadcast %27 : vector<1x16xf32> to vector<8x16xf32>
    %29 = arith.addf %26, %28 : vector<8x16xf32>
    %cst_14 = arith.constant 0.000000e+00 : f32
    %30 = vector.broadcast %cst_14 : f32 to vector<8x16xf32>
    %31 = arith.maximumf %29, %30 : vector<8x16xf32>
    %32 = arith.truncf %31 : vector<8x16xf32> to vector<8x16xbf16>
    %c0_15 = arith.constant 0 : index
    %c0_16 = arith.constant 0 : index
    %33 = vector.load %arg5[%c0_15, %c0_16] : memref<8x16xbf16, #tpu.memory_space<vmem>>, vector<8x16xbf16>
    tpu.vector_store %arg5[%c0_15, %c0_16], %32 {strides = array<i32>} : memref<8x16xbf16, #tpu.memory_space<vmem>>, vector<8x16xbf16>,
    return
  }
}

module attributes {stable_mosaic.version = 11 : i64} {
  func.func @_head_kernel(%arg0: memref<2x64xbf16, #tpu.memory_space<vmem>>, %arg1: memref<2x8xbf16, #tpu.memory_space<vmem>>, %arg2: memref<64x256xbf16, #tpu.memory_space<vmem>>, %arg3: memref<1x256xf32, #tpu.memory_space<vmem>>, %arg4: memref<8x256xbf16, #tpu.memory_space<vmem>>, %arg5: memref<1x256xf32, #tpu.memory_space<vmem>>, %arg6: memref<256x256xbf16, #tpu.memory_space<vmem>>, %arg7: memref<1x256xf32, #tpu.memory_space<vmem>>, %arg8: memref<256x256xbf16, #tpu.memory_space<vmem>>, %arg9: memref<1x256xf32, #tpu.memory_space<vmem>>, %arg10: memref<2x256x256xbf16, #tpu.memory_space<vmem>>, %arg11: memref<2x256x256xbf16, #tpu.memory_space<vmem>>, %arg12: memref<2x1x256xf32, #tpu.memory_space<vmem>>, %arg13: memref<2x256x256xbf16, #tpu.memory_space<vmem>>, %arg14: memref<2x1x256xf32, #tpu.memory_space<vmem>>, %arg15: memref<2x1x256xbf16, #tpu.memory_space<vmem>>, %arg16: memref<2x1x1xf32, #tpu.memory_space<vmem>>, %arg17: memref<2x2xf32, #tpu.memory_space<vmem>>) attributes {dimension_semantics = [], scalar_prefetch = 0 : i64, scratch_operands = 0 : i64, tpu.core_type = #tpu.core_type<tc>} {
    %c0 = arith.constant 0 : index
    %c0_0 = arith.constant 0 : index
    %0 = vector.load %arg0[%c0, %c0_0] : memref<2x64xbf16, #tpu.memory_space<vmem>>, vector<2x64xbf16>
    %c0_1 = arith.constant 0 : index
    %c0_2 = arith.constant 0 : index
    %1 = vector.load %arg2[%c0_1, %c0_2] : memref<64x256xbf16, #tpu.memory_space<vmem>>, vector<64x256xbf16>
    %cst = arith.constant dense<0.000000e+00> : vector<2x256xf32>
    %2 = tpu.matmul %0, %1, %cst {dimension_numbers = #tpu.dot_dimension_numbers<[1], [0], [0], [1], [0, 0, 1, 1], [], []>} : vector<2x64xbf16>, vector<64x256xbf16>, vector<2x256xf32> -> vector<2x256xf32>
    %c0_3 = arith.constant 0 : index
    %c0_4 = arith.constant 0 : index
    %3 = vector.load %arg3[%c0_3, %c0_4] : memref<1x256xf32, #tpu.memory_space<vmem>>, vector<1x256xf32>
    %4 = vector.broadcast %3 : vector<1x256xf32> to vector<2x256xf32>
    %5 = arith.addf %2, %4 : vector<2x256xf32>
    %cst_5 = arith.constant 0.000000e+00 : f32
    %6 = vector.broadcast %cst_5 : f32 to vector<2x256xf32>
    %7 = arith.maximumf %5, %6 : vector<2x256xf32>
    %8 = arith.truncf %7 : vector<2x256xf32> to vector<2x256xbf16>
    %c0_6 = arith.constant 0 : index
    %c0_7 = arith.constant 0 : index
    %9 = vector.load %arg1[%c0_6, %c0_7] : memref<2x8xbf16, #tpu.memory_space<vmem>>, vector<2x8xbf16>
    %c0_8 = arith.constant 0 : index
    %c0_9 = arith.constant 0 : index
    %10 = vector.load %arg4[%c0_8, %c0_9] : memref<8x256xbf16, #tpu.memory_space<vmem>>, vector<8x256xbf16>
    %cst_10 = arith.constant dense<0.000000e+00> : vector<2x256xf32>
    %11 = tpu.matmul %9, %10, %cst_10 {dimension_numbers = #tpu.dot_dimension_numbers<[1], [0], [0], [1], [0, 0, 1, 1], [], []>} : vector<2x8xbf16>, vector<8x256xbf16>, vector<2x256xf32> -> vector<2x256xf32>
    %c0_11 = arith.constant 0 : index
    %c0_12 = arith.constant 0 : index
    %12 = vector.load %arg5[%c0_11, %c0_12] : memref<1x256xf32, #tpu.memory_space<vmem>>, vector<1x256xf32>
    %13 = vector.broadcast %12 : vector<1x256xf32> to vector<2x256xf32>
    %14 = arith.addf %11, %13 : vector<2x256xf32>
    %cst_13 = arith.constant 0.000000e+00 : f32
    %15 = vector.broadcast %cst_13 : f32 to vector<2x256xf32>
    %16 = arith.maximumf %14, %15 : vector<2x256xf32>
    %17 = arith.truncf %16 : vector<2x256xf32> to vector<2x256xbf16>
    %c0_14 = arith.constant 0 : index
    %c0_15 = arith.constant 0 : index
    %18 = vector.load %arg6[%c0_14, %c0_15] : memref<256x256xbf16, #tpu.memory_space<vmem>>, vector<256x256xbf16>
    %cst_16 = arith.constant dense<0.000000e+00> : vector<2x256xf32>
    %19 = tpu.matmul %17, %18, %cst_16 {dimension_numbers = #tpu.dot_dimension_numbers<[1], [0], [0], [1], [0, 0, 1, 1], [], []>} : vector<2x256xbf16>, vector<256x256xbf16>, vector<2x256xf32> -> vector<2x256xf32>
    %c0_17 = arith.constant 0 : index
    %c0_18 = arith.constant 0 : index
    %20 = vector.load %arg7[%c0_17, %c0_18] : memref<1x256xf32, #tpu.memory_space<vmem>>, vector<1x256xf32>
    %21 = vector.broadcast %20 : vector<1x256xf32> to vector<2x256xf32>
    %22 = arith.addf %19, %21 : vector<2x256xf32>
    %cst_19 = arith.constant 0.000000e+00 : f32
    %23 = vector.broadcast %cst_19 : f32 to vector<2x256xf32>
    %24 = arith.maximumf %22, %23 : vector<2x256xf32>
    %25 = arith.truncf %24 : vector<2x256xf32> to vector<2x256xbf16>
    %c0_20 = arith.constant 0 : index
    %c0_21 = arith.constant 0 : index
    %26 = vector.load %arg8[%c0_20, %c0_21] : memref<256x256xbf16, #tpu.memory_space<vmem>>, vector<256x256xbf16>
    %cst_22 = arith.constant dense<0.000000e+00> : vector<2x256xf32>
    %27 = tpu.matmul %25, %26, %cst_22 {dimension_numbers = #tpu.dot_dimension_numbers<[1], [0], [0], [1], [0, 0, 1, 1], [], []>} : vector<2x256xbf16>, vector<256x256xbf16>, vector<2x256xf32> -> vector<2x256xf32>
    %c0_23 = arith.constant 0 : index
    %c0_24 = arith.constant 0 : index
    %28 = vector.load %arg9[%c0_23, %c0_24] : memref<1x256xf32, #tpu.memory_space<vmem>>, vector<1x256xf32>
    %29 = vector.broadcast %28 : vector<1x256xf32> to vector<2x256xf32>
    %30 = arith.addf %27, %29 : vector<2x256xf32>
    %31 = arith.truncf %30 : vector<2x256xf32> to vector<2x256xbf16>
    %c0_25 = arith.constant 0 : index
    %c0_26 = arith.constant 0 : index
    %c0_27 = arith.constant 0 : index
    %32 = vector.load %arg10[%c0_25, %c0_26, %c0_27] : memref<2x256x256xbf16, #tpu.memory_space<vmem>>, vector<1x256x256xbf16>
    %33 = vector.shape_cast %32 : vector<1x256x256xbf16> to vector<256x256xbf16>
    %cst_28 = arith.constant dense<0.000000e+00> : vector<2x256xf32>
    %34 = tpu.matmul %8, %33, %cst_28 {dimension_numbers = #tpu.dot_dimension_numbers<[1], [0], [0], [1], [0, 0, 1, 1], [], []>} : vector<2x256xbf16>, vector<256x256xbf16>, vector<2x256xf32> -> vector<2x256xf32>
    %c0_29 = arith.constant 0 : index
    %c0_30 = arith.constant 0 : index
    %c0_31 = arith.constant 0 : index
    %35 = vector.load %arg11[%c0_29, %c0_30, %c0_31] : memref<2x256x256xbf16, #tpu.memory_space<vmem>>, vector<1x256x256xbf16>
    %36 = vector.shape_cast %35 : vector<1x256x256xbf16> to vector<256x256xbf16>
    %cst_32 = arith.constant dense<0.000000e+00> : vector<2x256xf32>
    %37 = tpu.matmul %31, %36, %cst_32 {dimension_numbers = #tpu.dot_dimension_numbers<[1], [0], [0], [1], [0, 0, 1, 1], [], []>} : vector<2x256xbf16>, vector<256x256xbf16>, vector<2x256xf32> -> vector<2x256xf32>
    %38 = arith.addf %34, %37 : vector<2x256xf32>
    %c0_33 = arith.constant 0 : index
    %c0_34 = arith.constant 0 : index
    %c0_35 = arith.constant 0 : index
    %39 = vector.load %arg12[%c0_33, %c0_34, %c0_35] : memref<2x1x256xf32, #tpu.memory_space<vmem>>, vector<1x1x256xf32>
    %40 = vector.shape_cast %39 : vector<1x1x256xf32> to vector<1x256xf32>
    %41 = vector.broadcast %40 : vector<1x256xf32> to vector<2x256xf32>
    %42 = arith.addf %38, %41 : vector<2x256xf32>
    %cst_36 = arith.constant 0.000000e+00 : f32
    %43 = vector.broadcast %cst_36 : f32 to vector<2x256xf32>
    %44 = arith.maximumf %42, %43 : vector<2x256xf32>
    %45 = arith.truncf %44 : vector<2x256xf32> to vector<2x256xbf16>
    %c0_37 = arith.constant 0 : index
    %c0_38 = arith.constant 0 : index
    %c0_39 = arith.constant 0 : index
    %46 = vector.load %arg13[%c0_37, %c0_38, %c0_39] : memref<2x256x256xbf16, #tpu.memory_space<vmem>>, vector<1x256x256xbf16>
    %47 = vector.shape_cast %46 : vector<1x256x256xbf16> to vector<256x256xbf16>
    %cst_40 = arith.constant dense<0.000000e+00> : vector<2x256xf32>
    %48 = tpu.matmul %45, %47, %cst_40 {dimension_numbers = #tpu.dot_dimension_numbers<[1], [0], [0], [1], [0, 0, 1, 1], [], []>} : vector<2x256xbf16>, vector<256x256xbf16>, vector<2x256xf32> -> vector<2x256xf32>
    %c0_41 = arith.constant 0 : index
    %c0_42 = arith.constant 0 : index
    %c0_43 = arith.constant 0 : index
    %49 = vector.load %arg14[%c0_41, %c0_42, %c0_43] : memref<2x1x256xf32, #tpu.memory_space<vmem>>, vector<1x1x256xf32>
    %50 = vector.shape_cast %49 : vector<1x1x256xf32> to vector<1x256xf32>
    %51 = vector.broadcast %50 : vector<1x256xf32> to vector<2x256xf32>
    %52 = arith.addf %48, %51 : vector<2x256xf32>
    %cst_44 = arith.constant 0.000000e+00 : f32
    %53 = vector.broadcast %cst_44 : f32 to vector<2x256xf32>
    %54 = arith.maximumf %52, %53 : vector<2x256xf32>
    %c0_45 = arith.constant 0 : index
    %c0_46 = arith.constant 0 : index
    %c0_47 = arith.constant 0 : index
    %55 = vector.load %arg15[%c0_45, %c0_46, %c0_47] : memref<2x1x256xbf16, #tpu.memory_space<vmem>>, vector<1x1x256xbf16>
    %56 = vector.shape_cast %55 : vector<1x1x256xbf16> to vector<1x256xbf16>
    %57 = arith.extf %56 : vector<1x256xbf16> to vector<1x256xf32>
    %58 = vector.broadcast %57 : vector<1x256xf32> to vector<2x256xf32>
    %59 = arith.mulf %54, %58 : vector<2x256xf32>
    %cst_48 = arith.constant dense<0.000000e+00> : vector<2xf32>
    %60 = vector.multi_reduction <add>, %59, %cst_48 [1] : vector<2x256xf32> to vector<2xf32>
    %61 = vector.shape_cast %60 : vector<2xf32> to vector<2x1xf32>
    %c0_49 = arith.constant 0 : index
    %c0_50 = arith.constant 0 : index
    %c0_51 = arith.constant 0 : index
    %62 = vector.load %arg16[%c0_49, %c0_50, %c0_51] : memref<2x1x1xf32, #tpu.memory_space<vmem>>, vector<1x1x1xf32>
    %63 = vector.shape_cast %62 : vector<1x1x1xf32> to vector<1x1xf32>
    %64 = vector.broadcast %63 : vector<1x1xf32> to vector<2x1xf32>
    %65 = arith.addf %61, %64 : vector<2x1xf32>
    %cst_52 = arith.constant 0.000000e+00 : f32
    %66 = vector.broadcast %cst_52 : f32 to vector<2x1xf32>
    %67 = arith.subf %66, %65 : vector<2x1xf32>
    %68 = math.exp %67 : vector<2x1xf32>
    %cst_53 = arith.constant 1.000000e+00 : f32
    %69 = vector.broadcast %cst_53 : f32 to vector<2x1xf32>
    %70 = arith.addf %69, %68 : vector<2x1xf32>
    %cst_54 = arith.constant 1.000000e+00 : f32
    %71 = vector.broadcast %cst_54 : f32 to vector<2x1xf32>
    %72 = arith.divf %71, %70 : vector<2x1xf32>
    %c0_55 = arith.constant 0 : index
    %c0_56 = arith.constant 0 : index
    %73 = vector.load %arg17[%c0_55, %c0_56] : memref<2x2xf32, #tpu.memory_space<vmem>>, vector<2x1xf32>
    tpu.vector_store %arg17[%c0_55, %c0_56], %72 {strides = array<i32>} : memref<2x2xf32, #tpu.memory_space<vmem>>, vector<2x1xf32>,
    %c1 = arith.constant 1 : index
    %c0_57 = arith.constant 0 : index
    %c0_58 = arith.constant 0 : index
    %74 = vector.load %arg10[%c1, %c0_57, %c0_58] : memref<2x256x256xbf16, #tpu.memory_space<vmem>>, vector<1x256x256xbf16>
    %75 = vector.shape_cast %74 : vector<1x256x256xbf16> to vector<256x256xbf16>
    %cst_59 = arith.constant dense<0.000000e+00> : vector<2x256xf32>
    %76 = tpu.matmul %8, %75, %cst_59 {dimension_numbers = #tpu.dot_dimension_numbers<[1], [0], [0], [1], [0, 0, 1, 1], [], []>} : vector<2x256xbf16>, vector<256x256xbf16>, vector<2x256xf32> -> vector<2x256xf32>
    %c1_60 = arith.constant 1 : index
    %c0_61 = arith.constant 0 : index
    %c0_62 = arith.constant 0 : index
    %77 = vector.load %arg11[%c1_60, %c0_61, %c0_62] : memref<2x256x256xbf16, #tpu.memory_space<vmem>>, vector<1x256x256xbf16>
    %78 = vector.shape_cast %77 : vector<1x256x256xbf16> to vector<256x256xbf16>
    %cst_63 = arith.constant dense<0.000000e+00> : vector<2x256xf32>
    %79 = tpu.matmul %31, %78, %cst_63 {dimension_numbers = #tpu.dot_dimension_numbers<[1], [0], [0], [1], [0, 0, 1, 1], [], []>} : vector<2x256xbf16>, vector<256x256xbf16>, vector<2x256xf32> -> vector<2x256xf32>
    %80 = arith.addf %76, %79 : vector<2x256xf32>
    %c1_64 = arith.constant 1 : index
    %c0_65 = arith.constant 0 : index
    %c0_66 = arith.constant 0 : index
    %81 = vector.load %arg12[%c1_64, %c0_65, %c0_66] : memref<2x1x256xf32, #tpu.memory_space<vmem>>, vector<1x1x256xf32>
    %82 = vector.shape_cast %81 : vector<1x1x256xf32> to vector<1x256xf32>
    %83 = vector.broadcast %82 : vector<1x256xf32> to vector<2x256xf32>
    %84 = arith.addf %80, %83 : vector<2x256xf32>
    %cst_67 = arith.constant 0.000000e+00 : f32
    %85 = vector.broadcast %cst_67 : f32 to vector<2x256xf32>
    %86 = arith.maximumf %84, %85 : vector<2x256xf32>
    %87 = arith.truncf %86 : vector<2x256xf32> to vector<2x256xbf16>
    %c1_68 = arith.constant 1 : index
    %c0_69 = arith.constant 0 : index
    %c0_70 = arith.constant 0 : index
    %88 = vector.load %arg13[%c1_68, %c0_69, %c0_70] : memref<2x256x256xbf16, #tpu.memory_space<vmem>>, vector<1x256x256xbf16>
    %89 = vector.shape_cast %88 : vector<1x256x256xbf16> to vector<256x256xbf16>
    %cst_71 = arith.constant dense<0.000000e+00> : vector<2x256xf32>
    %90 = tpu.matmul %87, %89, %cst_71 {dimension_numbers = #tpu.dot_dimension_numbers<[1], [0], [0], [1], [0, 0, 1, 1], [], []>} : vector<2x256xbf16>, vector<256x256xbf16>, vector<2x256xf32> -> vector<2x256xf32>
    %c1_72 = arith.constant 1 : index
    %c0_73 = arith.constant 0 : index
    %c0_74 = arith.constant 0 : index
    %91 = vector.load %arg14[%c1_72, %c0_73, %c0_74] : memref<2x1x256xf32, #tpu.memory_space<vmem>>, vector<1x1x256xf32>
    %92 = vector.shape_cast %91 : vector<1x1x256xf32> to vector<1x256xf32>
    %93 = vector.broadcast %92 : vector<1x256xf32> to vector<2x256xf32>
    %94 = arith.addf %90, %93 : vector<2x256xf32>
    %cst_75 = arith.constant 0.000000e+00 : f32
    %95 = vector.broadcast %cst_75 : f32 to vector<2x256xf32>
    %96 = arith.maximumf %94, %95 : vector<2x256xf32>
    %c1_76 = arith.constant 1 : index
    %c0_77 = arith.constant 0 : index
    %c0_78 = arith.constant 0 : index
    %97 = vector.load %arg15[%c1_76, %c0_77, %c0_78] : memref<2x1x256xbf16, #tpu.memory_space<vmem>>, vector<1x1x256xbf16>
    %98 = vector.shape_cast %97 : vector<1x1x256xbf16> to vector<1x256xbf16>
    %99 = arith.extf %98 : vector<1x256xbf16> to vector<1x256xf32>
    %100 = vector.broadcast %99 : vector<1x256xf32> to vector<2x256xf32>
    %101 = arith.mulf %96, %100 : vector<2x256xf32>
    %cst_79 = arith.constant dense<0.000000e+00> : vector<2xf32>
    %102 = vector.multi_reduction <add>, %101, %cst_79 [1] : vector<2x256xf32> to vector<2xf32>
    %103 = vector.shape_cast %102 : vector<2xf32> to vector<2x1xf32>
    %c1_80 = arith.constant 1 : index
    %c0_81 = arith.constant 0 : index
    %c0_82 = arith.constant 0 : index
    %104 = vector.load %arg16[%c1_80, %c0_81, %c0_82] : memref<2x1x1xf32, #tpu.memory_space<vmem>>, vector<1x1x1xf32>
    %105 = vector.shape_cast %104 : vector<1x1x1xf32> to vector<1x1xf32>
    %106 = vector.broadcast %105 : vector<1x1xf32> to vector<2x1xf32>
    %107 = arith.addf %103, %106 : vector<2x1xf32>
    %cst_83 = arith.constant 0.000000e+00 : f32
    %108 = vector.broadcast %cst_83 : f32 to vector<2x1xf32>
    %109 = arith.subf %108, %107 : vector<2x1xf32>
    %110 = math.exp %109 : vector<2x1xf32>
    %cst_84 = arith.constant 1.000000e+00 : f32
    %111 = vector.broadcast %cst_84 : f32 to vector<2x1xf32>
    %112 = arith.addf %111, %110 : vector<2x1xf32>
    %cst_85 = arith.constant 1.000000e+00 : f32
    %113 = vector.broadcast %cst_85 : f32 to vector<2x1xf32>
    %114 = arith.divf %113, %112 : vector<2x1xf32>
    %c0_86 = arith.constant 0 : index
    %c1_87 = arith.constant 1 : index
    %115 = vector.load %arg17[%c0_86, %c1_87] : memref<2x2xf32, #tpu.memory_space<vmem>>, vector<2x1xf32>
    tpu.vector_store %arg17[%c0_86, %c1_87], %114 {strides = array<i32>} : memref<2x2xf32, #tpu.memory_space<vmem>>, vector<2x1xf32>,
    return
  }
}

</mosaic_0001>

<bundles_post_ra>
// kernel: cnn_q_forward.4
= control target key start
LH: loop header
LB: loop body
LE: loop exit
PB: predicated region body
PF: predicated region fallthrough
CT: control target
= control target key end

     0   :  { %vm104_vm0 = vcmask 293888   ;;  %vm129_vm1 = vcmask 1041408   ;;  %s730_s1 = inlined_call_operand.vmem [shape: bf16[36,128], index: 1, kind: input, shape index: {}]   ;;  %s731_s0 = inlined_call_operand.vmem [shape: bf16[128,36], index: 0, kind: input, shape index: {}]   ;;  %s732_s2 = inlined_call_operand.vmem [shape: f32[1,128], index: 2, kind: input, shape index: {}]   ;;  %s733_s3 = inlined_call_operand.vmem [shape: f32[1,128], index: 3, kind: input, shape index: {}]   ;;  %s734_s4 = inlined_call_operand.vmem [shape: f32[1,128], index: 4, kind: input, shape index: {}]   ;;  %s735_s5 = inlined_call_operand.vmem [shape: bf16[128,128], index: 5, kind: output, shape index: {}]  }
   0x1   :  { %v613_v0 = vld [vmem:[%s730_s1] sm:$0xff]   ;;  %v614_v1 = vld [vmem:[%s730_s1 + $0x8] sm:$0xff]   ;;  %v615_v2 = vld [vmem:[%s730_s1 + $0x10] ss:$0 sps:$4 sm:$0x33]  }
   0x2   :  { %583 = vmatprep.subr.bf16.mxu0 %v613_v0  ;;  %v616_v3 = vld [vmem:[%s731_s0] sm:$0xff]   ;;  %605 = vmatprep.subr.bf16.mxu1 %v613_v0  ;;  %v131_v5 = vsel %vm129_vm1, %v615_v2, 0  ;;  %v617_v6 = vld [vmem:[%s731_s0 + $0x8] sm:$0xff]   ;;  %v618_v8 = vld [vmem:[%s731_s0 + $0x10] sm:$0xff]  }
   0x3   :  { %584 = vmatpush3.bf16.msra.mxu0 %v613_v0  ;;  %608 = vmatpush3.bf16.msra.mxu1 %v613_v0  ;;  %v620_v4 = vld [vmem:[%s731_s0 + $0x20] sm:$0xff]   ;;  %v621_v7 = vld [vmem:[%s731_s0 + $0x28] sm:$0xff]   ;;  %v622_v9 = vld [vmem:[%s731_s0 + $0x30] sm:$0xff]  }
   0x4   :  { %585 = vmatprep.subr.bf16.mxu0 %v614_v1  ;;  %589 = vmatprep.mubr.msk.bf16.mxu0 %vm104_vm0, %v616_v3  ;;  %v619_v10 = vld [vmem:[%s731_s0 + $0x18] sm:$0xff]   ;;  %v471_v14 = vld [vmem:[%s732_s2] ss:$0 sm:$0xff] }
   0x5   :  { %606 = vmatprep.subr.bf16.mxu1 %v614_v1  ;;  %597 = vmatprep.mubr.msk.bf16.mxu1 %vm104_vm0, %v620_v4  ;;  %v623_v11 = vld [vmem:[%s731_s0 + $0x38] sm:$0xff]  }
   0x7   :  { %586 = vmatpush3.bf16.msra.mxu0 %v614_v1  ;;  %609 = vmatpush3.bf16.msra.mxu1 %v614_v1 }
   0x8   :  { %611 = vmatprep.subr.msk.bf16.mxu0 %vm129_vm1, %v615_v2  ;;  %612 = vmatprep.subr.msk.bf16.mxu1 %vm129_vm1, %v615_v2 }
   0xb   :  { %588 = vmatpush3.bf16.msra.mxu0 %v131_v5  ;;  %610 = vmatpush3.bf16.msra.mxu1 %v131_v5 }
   0xe   :  { %590 = vmatmul.mubr.msk.bf16.vlgmr.msra.gmra.mrb[0].mxu0 %vm104_vm0, %v617_v6  ;;  %598 = vmatmul.mubr.msk.bf16.vlgmr.msra.gmra.mrb[0].mxu1 %vm104_vm0, %v621_v7 }
   0xf   :  { %593 = vmatprep.mubr.msk.bf16.mxu0 %vm104_vm0, %v618_v8  ;;  %601 = vmatprep.mubr.msk.bf16.mxu1 %vm104_vm0, %v622_v9 }
  0x16   :  { %594 = vmatmul.mubr.msk.bf16.gmra.mrb[4].mxu0 %vm104_vm0, %v619_v10  ;;  %602 = vmatmul.mubr.msk.bf16.gmra.mrb[4].mxu1 %vm104_vm0, %v623_v11 }
  0xe1   :  { %v591_v12 = vpop.f32.mrb[0].mxu0  ;;  %v599_v13 = vpop.f32.mrb[0].mxu1 }
  0xe2   :  { %v167_v15 = vpop.f32.mrb[1].mxu0  ;;  %v199_v16 = vpop.f32.mrb[1].mxu1  ;;  %v176_v23 = vadd.f32 %v591_v12, %v471_v14  ;;  %v208_v47 = vadd.f32 %v599_v13, %v471_v14 }
  0xe3   :  { %v592_v17 = vpop.f32.mrb[2].mxu0  ;;  %v600_v18 = vpop.f32.mrb[2].mxu1  ;;  %v168_v21 = vadd.f32 %v471_v14, %v167_v15  ;;  %v200_v43 = vadd.f32 %v471_v14, %v199_v16 }
  0xe4   :  { %v170_v19 = vpop.f32.mrb[3].mxu0  ;;  %v202_v20 = vpop.f32.mrb[3].mxu1  ;;  %v179_v25 = vadd.f32 %v592_v17, %v471_v14  ;;  %v211_v49 = vadd.f32 %v600_v18, %v471_v14 }
  0xe5   :  { %v171_v22 = vadd.f32 %v471_v14, %v170_v19  ;;  %v203_v46 = vadd.f32 %v471_v14, %v202_v20 }
  0xe7   :  { %v230_v24 = vadd.f32 %v171_v22, %v168_v21 }
  0xe9   :  { %v231_v26 = vadd.f32 %v230_v24, %v176_v23  ;;  %v595_v27 = vpop.f32.mrb[4].mxu0  ;;  %v603_v28 = vpop.f32.mrb[4].mxu1 }
  0xea   :  { %v183_v29 = vpop.f32.mrb[5].mxu0  ;;  %v215_v30 = vpop.f32.mrb[5].mxu1  ;;  %v192_v39 = vadd.f32 %v595_v27, %v471_v14  ;;  %v224_v55 = vadd.f32 %v603_v28, %v471_v14 }
  0xeb   :  { %v184_v31 = vadd.f32 %v471_v14, %v183_v29  ;;  %v232_v32 = vadd.f32 %v231_v26, %v179_v25  ;;  %v596_v33 = vpop.f32.mrb[6].mxu0  ;;  %v604_v34 = vpop.f32.mrb[6].mxu1  ;;  %v216_v51 = vadd.f32 %v471_v14, %v215_v30 }
  0xec   :  { %v186_v35 = vpop.f32.mrb[7].mxu0  ;;  %v218_v36 = vpop.f32.mrb[7].mxu1  ;;  %v195_v41 = vadd.f32 %v596_v33, %v471_v14  ;;  %v227_v57 = vadd.f32 %v604_v34, %v471_v14 }
  0xed   :  { %v233_v37 = vadd.f32 %v232_v32, %v184_v31  ;;  %v187_v38 = vadd.f32 %v471_v14, %v186_v35  ;;  %v219_v54 = vadd.f32 %v471_v14, %v218_v36 }
  0xef   :  { %v234_v40 = vadd.f32 %v233_v37, %v187_v38 }
  0xf1   :  { %v235_v42 = vadd.f32 %v234_v40, %v192_v39 }
  0xf3   :  { %v236_v44 = vadd.f32 %v235_v42, %v195_v41 }
  0xf5   :  { %v237_v45 = vadd.f32 %v236_v44, %v200_v43 }
  0xf7   :  { %v238_v48 = vadd.f32 %v237_v45, %v203_v46 }
  0xf9   :  { %v239_v50 = vadd.f32 %v238_v48, %v208_v47 }
  0xfb   :  { %v240_v52 = vadd.f32 %v239_v50, %v211_v49 }
  0xfd   :  { %v241_v53 = vadd.f32 %v240_v52, %v216_v51 }
  0xff   :  { %v242_v56 = vadd.f32 %v241_v53, %v219_v54 }
 0x101   :  { %v243_v58 = vadd.f32 %v242_v56, %v224_v55 }
 0x103   :  { %v244_v59 = vadd.f32 %v243_v58, %v227_v57 }
 0x105   :  { %v245_v60 = vrot.slane %v244_v59, 4 }
 0x107   :  { %v246_v61 = vadd.f32 %v245_v60, %v244_v59 }
 0x109   :  { %v247_v62 = vrot.slane %v246_v61, 2 }
 0x10b   :  { %v248_v63 = vadd.f32 %v247_v62, %v246_v61 }
 0x10d   :  { %v249_v0 = vrot.slane %v248_v63, 1 }
 0x10f   :  { %v250_v1 = vadd.f32 %v249_v0, %v248_v63 }
 0x111   :  { %v252_v2 = vmul.f32 0.0078125, %v250_v1 }
 0x113   :  { %v253_v3 = vsub.f32 %v168_v21, %v252_v2  ;;  %v254_v4 = vsub.f32 %v171_v22, %v252_v2  ;;  %v255_v5 = vsub.f32 %v176_v23, %v252_v2  ;;  %v256_v6 = vsub.f32 %v179_v25, %v252_v2 }
 0x114   :  { %v257_v7 = vsub.f32 %v184_v31, %v252_v2  ;;  %v258_v8 = vsub.f32 %v187_v38, %v252_v2  ;;  %v259_v9 = vsub.f32 %v192_v39, %v252_v2  ;;  %v260_v10 = vsub.f32 %v195_v41, %v252_v2 }
 0x115   :  { %v261_v11 = vsub.f32 %v200_v43, %v252_v2  ;;  %v262_v12 = vsub.f32 %v203_v46, %v252_v2  ;;  %v263_v13 = vsub.f32 %v208_v47, %v252_v2  ;;  %v264_v14 = vsub.f32 %v211_v49, %v252_v2 }
 0x116   :  { %v265_v15 = vsub.f32 %v216_v51, %v252_v2  ;;  %v266_v16 = vsub.f32 %v219_v54, %v252_v2  ;;  %v267_v17 = vsub.f32 %v224_v55, %v252_v2  ;;  %v268_v18 = vsub.f32 %v227_v57, %v252_v2 }
 0x117   :  { %v269_v19 = vmul.f32 %v253_v3, %v253_v3  ;;  %v270_v20 = vmul.f32 %v254_v4, %v254_v4  ;;  %v271_v24 = vmul.f32 %v255_v5, %v255_v5  ;;  %v272_v21 = vmul.f32 %v256_v6, %v256_v6 }
 0x118   :  { %v273_v23 = vmul.f32 %v257_v7, %v257_v7  ;;  %v274_v27 = vmul.f32 %v258_v8, %v258_v8  ;;  %v275_v29 = vmul.f32 %v259_v9, %v259_v9  ;;  %v276_v31 = vmul.f32 %v260_v10, %v260_v10 }
 0x119   :  { %v285_v26 = vadd.f32 %v270_v20, %v269_v19  ;;  %v277_v33 = vmul.f32 %v261_v11, %v261_v11  ;;  %v278_v35 = vmul.f32 %v262_v12, %v262_v12  ;;  %v279_v37 = vmul.f32 %v263_v13, %v263_v13  ;;  %v491_v19 = vld [vmem:[%s733_s3] ss:$0 sm:$0xff] }
 0x11a   :  { %v280_v39 = vmul.f32 %v264_v14, %v264_v14  ;;  %v281_v41 = vmul.f32 %v265_v15, %v265_v15  ;;  %v282_v43 = vmul.f32 %v266_v16, %v266_v16  ;;  %v283_v45 = vmul.f32 %v267_v17, %v267_v17 }
 0x11b   :  { %v286_v22 = vadd.f32 %v285_v26, %v271_v24  ;;  %v284_v47 = vmul.f32 %v268_v18, %v268_v18 }
 0x11d   :  { %v287_v25 = vadd.f32 %v286_v22, %v272_v21 }
 0x11f   :  { %v288_v28 = vadd.f32 %v287_v25, %v273_v23 }
 0x121   :  { %v289_v30 = vadd.f32 %v288_v28, %v274_v27  ;;  %v492_v28 = vld [vmem:[%s734_s4] ss:$0 sm:$0xff] }
 0x123   :  { %v290_v32 = vadd.f32 %v289_v30, %v275_v29 }
 0x125   :  { %v291_v34 = vadd.f32 %v290_v32, %v276_v31 }
 0x127   :  { %v292_v36 = vadd.f32 %v291_v34, %v277_v33 }
 0x129   :  { %v293_v38 = vadd.f32 %v292_v36, %v278_v35 }
 0x12b   :  { %v294_v40 = vadd.f32 %v293_v38, %v279_v37 }
 0x12d   :  { %v295_v42 = vadd.f32 %v294_v40, %v280_v39 }
 0x12f   :  { %v296_v44 = vadd.f32 %v295_v42, %v281_v41 }
 0x131   :  { %v297_v46 = vadd.f32 %v296_v44, %v282_v43 }
 0x133   :  { %v298_v48 = vadd.f32 %v297_v46, %v283_v45 }
 0x135   :  { %v299_v49 = vadd.f32 %v298_v48, %v284_v47 }
 0x137   :  { %v300_v50 = vrot.slane %v299_v49, 4 }
 0x139   :  { %v301_v51 = vadd.f32 %v300_v50, %v299_v49 }
 0x13b   :  { %v302_v52 = vrot.slane %v301_v51, 2 }
 0x13d   :  { %v303_v53 = vadd.f32 %v302_v52, %v301_v51 }
 0x13f   :  { %v304_v54 = vrot.slane %v303_v53, 1 }
 0x141   :  { %v305_v55 = vadd.f32 %v304_v54, %v303_v53 }
 0x143   :  { %v306_v56 = vmul.f32 0.0078125, %v305_v55 }
 0x145   :  { %v307_v57 = vadd.f32 1e-05, %v306_v56 }
 0x147   :  { %624 = vrsqrt.f32 %v307_v57 }
 0x151   :  { %v625_v58 = vpop.eup %624 }
 0x152   :  { %v309_v59 = vmul.f32 %v625_v58, %v253_v3  ;;  %v310_v60 = vmul.f32 %v625_v58, %v254_v4  ;;  %v311_v61 = vmul.f32 %v625_v58, %v255_v5  ;;  %v312_v62 = vmul.f32 %v625_v58, %v256_v6 }
 0x153   :  { %v313_v63 = vmul.f32 %v625_v58, %v257_v7  ;;  %v314_v0 = vmul.f32 %v625_v58, %v258_v8  ;;  %v315_v1 = vmul.f32 %v625_v58, %v259_v9  ;;  %v316_v2 = vmul.f32 %v625_v58, %v260_v10 }
 0x154   :  { %v317_v20 = vmul.f32 %v625_v58, %v261_v11  ;;  %v318_v24 = vmul.f32 %v625_v58, %v262_v12  ;;  %v319_v26 = vmul.f32 %v625_v58, %v263_v13  ;;  %v320_v21 = vmul.f32 %v625_v58, %v264_v14 }
 0x155   :  { %v321_v22 = vmul.f32 %v625_v58, %v265_v15  ;;  %v322_v23 = vmul.f32 %v625_v58, %v266_v16  ;;  %v323_v25 = vmul.f32 %v625_v58, %v267_v17  ;;  %v324_v27 = vmul.f32 %v625_v58, %v268_v18 }
 0x156   :  { %v332_v3 = vmul.f32 %v491_v19, %v309_v59  ;;  %v333_v4 = vmul.f32 %v491_v19, %v310_v60  ;;  %v334_v5 = vmul.f32 %v491_v19, %v311_v61  ;;  %v335_v6 = vmul.f32 %v491_v19, %v312_v62 }
 0x157   :  { %v336_v7 = vmul.f32 %v491_v19, %v313_v63  ;;  %v337_v8 = vmul.f32 %v491_v19, %v314_v0  ;;  %v338_v9 = vmul.f32 %v491_v19, %v315_v1  ;;  %v339_v10 = vmul.f32 %v491_v19, %v316_v2 }
 0x158   :  { %v340_v11 = vmul.f32 %v491_v19, %v317_v20  ;;  %v341_v12 = vmul.f32 %v491_v19, %v318_v24  ;;  %v342_v13 = vmul.f32 %v491_v19, %v319_v26  ;;  %v343_v14 = vmul.f32 %v491_v19, %v320_v21 }
 0x159   :  { %v344_v15 = vmul.f32 %v491_v19, %v321_v22  ;;  %v345_v16 = vmul.f32 %v491_v19, %v322_v23  ;;  %v346_v17 = vmul.f32 %v491_v19, %v323_v25  ;;  %v347_v18 = vmul.f32 %v491_v19, %v324_v27 }
 0x15a   :  { %v355_v29 = vadd.f32 %v492_v28, %v332_v3  ;;  %v356_v30 = vadd.f32 %v492_v28, %v333_v4  ;;  %v357_v31 = vadd.f32 %v492_v28, %v334_v5  ;;  %v358_v32 = vadd.f32 %v492_v28, %v335_v6 }
 0x15b   :  { %v359_v33 = vadd.f32 %v492_v28, %v336_v7  ;;  %v360_v34 = vadd.f32 %v492_v28, %v337_v8  ;;  %v361_v35 = vadd.f32 %v492_v28, %v338_v9  ;;  %v362_v36 = vadd.f32 %v492_v28, %v339_v10 }
 0x15c   :  { %v363_v37 = vadd.f32 %v492_v28, %v340_v11  ;;  %v364_v38 = vadd.f32 %v492_v28, %v341_v12  ;;  %v365_v39 = vadd.f32 %v492_v28, %v342_v13  ;;  %v366_v40 = vadd.f32 %v492_v28, %v343_v14 }
 0x15d   :  { %v367_v41 = vadd.f32 %v492_v28, %v344_v15  ;;  %v368_v42 = vadd.f32 %v492_v28, %v345_v16  ;;  %v369_v43 = vadd.f32 %v492_v28, %v346_v17  ;;  %v370_v44 = vadd.f32 %v492_v28, %v347_v18 }
 0x15e   :  { %v371_v45 = vmax.f32 %v355_v29, 0.0  ;;  %v372_v46 = vmax.f32 %v356_v30, 0.0  ;;  %v373_v47 = vmax.f32 %v357_v31, 0.0  ;;  %v374_v48 = vmax.f32 %v358_v32, 0.0 }
 0x15f   :  { %v375_v49 = vmax.f32 %v359_v33, 0.0  ;;  %v376_v50 = vmax.f32 %v360_v34, 0.0  ;;  %v377_v51 = vmax.f32 %v361_v35, 0.0  ;;  %v378_v52 = vmax.f32 %v362_v36, 0.0 }
 0x160   :  { %v379_v53 = vmax.f32 %v363_v37, 0.0  ;;  %v380_v54 = vmax.f32 %v364_v38, 0.0  ;;  %v381_v55 = vmax.f32 %v365_v39, 0.0  ;;  %v382_v56 = vmax.f32 %v366_v40, 0.0 }
 0x161   :  { %v383_v57 = vmax.f32 %v367_v41, 0.0  ;;  %v384_v58 = vmax.f32 %v368_v42, 0.0  ;;  %v385_v59 = vmax.f32 %v369_v43, 0.0  ;;  %v386_v60 = vmax.f32 %v370_v44, 0.0 }
 0x162   :  { %v528_v61 = vpack.c.bf16 %v372_v46, %v371_v45  ;;  %v533_v62 = vpack.c.bf16 %v374_v48, %v373_v47  ;;  %v538_v63 = vpack.c.bf16 %v376_v50, %v375_v49  ;;  %v543_v0 = vpack.c.bf16 %v378_v52, %v377_v51 }
 0x163   :  { %v548_v1 = vpack.c.bf16 %v380_v54, %v379_v53  ;;  %v553_v2 = vpack.c.bf16 %v382_v56, %v381_v55  ;;  %v558_v19 = vpack.c.bf16 %v384_v58, %v383_v57  ;;  %v563_v20 = vpack.c.bf16 %v386_v60, %v385_v59 }
 0x164   :  { %529 = vst [vmem:[%s735_s5] sm:$0xff] %v528_v61   ;;  %565 = vst [vmem:[%s735_s5 + $0x8] sm:$0xff] %v533_v62  }
 0x165   :  { %566 = vst [vmem:[%s735_s5 + $0x10] sm:$0xff] %v538_v63   ;;  %567 = vst [vmem:[%s735_s5 + $0x18] sm:$0xff] %v543_v0  }
 0x166   :  { %568 = vst [vmem:[%s735_s5 + $0x20] sm:$0xff] %v548_v1   ;;  %569 = vst [vmem:[%s735_s5 + $0x28] sm:$0xff] %v553_v2  }
 0x167   :  { %570 = vst [vmem:[%s735_s5 + $0x30] sm:$0xff] %v558_v19   ;;  %571 = vst [vmem:[%s735_s5 + $0x38] sm:$0xff] %v563_v20  }

// kernel: cnn_q_forward.5
= control target key start
LH: loop header
LB: loop body
LE: loop exit
PB: predicated region body
PF: predicated region fallthrough
CT: control target
= control target key end

     0   :  { %vm961_vm0 = vcmask 523264   ;;  %vm1047_vm1 = vcmask 519168   ;;  %s1728_s1 = inlined_call_operand.vmem [shape: bf16[1152,64], index: 1, kind: input, shape index: {}]   ;;  %s1729_s0 = inlined_call_operand.vmem [shape: bf16[32,1152], index: 0, kind: input, shape index: {}]   ;;  %s1730_s2 = inlined_call_operand.vmem [shape: f32[1,64], index: 2, kind: input, shape index: {}]   ;;  %s1731_s3 = inlined_call_operand.vmem [shape: f32[1,64], index: 3, kind: input, shape index: {}]   ;;  %s1732_s4 = inlined_call_operand.vmem [shape: f32[1,64], index: 4, kind: input, shape index: {}]   ;;  %s1733_s5 = inlined_call_operand.vmem [shape: bf16[32,64], index: 5, kind: output, shape index: {}]  }
   0x1   :  { %v1299_v0 = vld [vmem:[%s1728_s1 + $0x40] sm:$0xff]   ;;  %v1303_v4 = vld [vmem:[%s1728_s1 + $0x48] sm:$0xff]   ;;  %v1307_v8 = vld [vmem:[%s1728_s1 + $0x50] sm:$0xff]  }
   0x2   :  { %v1300_v1 = vld [vmem:[%s1728_s1] sm:$0xff]   ;;  %1157 = vmatprep.subr.bf16.mxu0 %v1299_v0  ;;  %v1304_v5 = vld [vmem:[%s1728_s1 + $0x8] sm:$0xff]   ;;  %v1308_v9 = vld [vmem:[%s1728_s1 + $0x10] sm:$0xff]  }
   0x3   :  { %v1301_v2 = vld [vmem:[%s1728_s1 + $0xc0] sm:$0xff]   ;;  %1158 = vmatpush3.bf16.msra.mxu0 %v1300_v1  ;;  %v1305_v6 = vld [vmem:[%s1728_s1 + $0xc8] sm:$0xff]   ;;  %v1309_v10 = vld [vmem:[%s1728_s1 + $0xd0] sm:$0xff]  }
   0x4   :  { %v1302_v3 = vld [vmem:[%s1728_s1 + $0x80] sm:$0xff]   ;;  %1185 = vmatprep.subr.bf16.mxu1 %v1301_v2  ;;  %1159 = vmatprep.subr.bf16.mxu0 %v1303_v4  ;;  %v1306_v7 = vld [vmem:[%s1728_s1 + $0x88] sm:$0xff]   ;;  %v1310_v11 = vld [vmem:[%s1728_s1 + $0x90] sm:$0xff]  }
   0x5   :  { %1186 = vmatpush3.bf16.msra.mxu1 %v1302_v3  ;;  %v1311_v12 = vld [vmem:[%s1728_s1 + $0x58] sm:$0xff]   ;;  %v1315_v16 = vld [vmem:[%s1728_s1 + $0x60] sm:$0xff]   ;;  %v1319_v20 = vld [vmem:[%s1728_s1 + $0x68] sm:$0xff]  }
   0x6   :  { %1187 = vmatprep.subr.bf16.mxu1 %v1305_v6  ;;  %v1312_v13 = vld [vmem:[%s1728_s1 + $0x18] sm:$0xff]   ;;  %v1316_v17 = vld [vmem:[%s1728_s1 + $0x20] sm:$0xff]   ;;  %v1320_v21 = vld [vmem:[%s1728_s1 + $0x28] sm:$0xff]  }
   0x7   :  { %1160 = vmatpush3.bf16.msra.mxu0 %v1304_v5  ;;  %v1313_v14 = vld [vmem:[%s1728_s1 + $0xd8] sm:$0xff]   ;;  %v1317_v18 = vld [vmem:[%s1728_s1 + $0xe0] sm:$0xff]   ;;  %v1321_v22 = vld [vmem:[%s1728_s1 + $0xe8] sm:$0xff]  }
   0x8   :  { %1161 = vmatprep.subr.bf16.mxu0 %v1307_v8  ;;  %v1314_v15 = vld [vmem:[%s1728_s1 + $0x98] sm:$0xff]   ;;  %v1318_v19 = vld [vmem:[%s1728_s1 + $0xa0] sm:$0xff]   ;;  %v1322_v23 = vld [vmem:[%s1728_s1 + $0xa8] sm:$0xff]  }
   0x9   :  { %1188 = vmatpush3.bf16.msra.mxu1 %v1306_v7  ;;  %v1323_v24 = vld [vmem:[%s1728_s1 + $0x70] sm:$0xff]   ;;  %v1327_v28 = vld [vmem:[%s1728_s1 + $0x78] sm:$0xff]   ;;  %v1330_v31 = vld [vmem:[%s1729_s0] ss:$36 sps:$4 sm:$0xff]  }
   0xa   :  { %1189 = vmatprep.subr.bf16.mxu1 %v1309_v10  ;;  %v1324_v25 = vld [vmem:[%s1728_s1 + $0x30] sm:$0xff]   ;;  %v1328_v29 = vld [vmem:[%s1728_s1 + $0x38] sm:$0xff]   ;;  %v1332_v32 = vld [vmem:[%s1729_s0 + $0x4] ss:$36 sps:$4 sm:$0xff]  }
   0xb   :  { %1162 = vmatpush3.bf16.msra.mxu0 %v1308_v9  ;;  %v1325_v26 = vld [vmem:[%s1728_s1 + $0xf0] sm:$0xff]   ;;  %v1329_v30 = vld [vmem:[%s1728_s1 + $0xf8] sm:$0xff]   ;;  %748 = vmatprep.mubr.bf16.mxu0 %v1332_v32  ;;  %v1334_v34 = vld [vmem:[%s1728_s1 + $0x140] sm:$0xff]  }
   0xc   :  { %1163 = vmatprep.subr.bf16.mxu0 %v1311_v12  ;;  %v1326_v27 = vld [vmem:[%s1728_s1 + $0xb0] sm:$0xff]   ;;  %v1333_v33 = vld [vmem:[%s1728_s1 + $0xb8] sm:$0xff]   ;;  %v1335_v35 = vld [vmem:[%s1729_s0 + $0x8] ss:$36 sps:$4 sm:$0xff]  }
   0xd   :  { %1190 = vmatpush3.bf16.msra.mxu1 %v1310_v11  ;;  %v1337_v36 = vld [vmem:[%s1729_s0 + $0xc] ss:$36 sps:$4 sm:$0xff]   ;;  %v1338_v37 = vld [vmem:[%s1728_s1 + $0x100] sm:$0xff]   ;;  %v1349_v48 = vld [vmem:[%s1728_s1 + $0x158] sm:$0xff]  }
   0xe   :  { %1191 = vmatprep.subr.bf16.mxu1 %v1313_v14  ;;  %797 = vmatprep.mubr.bf16.mxu1 %v1337_v36  ;;  %v1339_v38 = vld [vmem:[%s1728_s1 + $0x1c0] sm:$0xff]   ;;  %v1341_v40 = vld [vmem:[%s1728_s1 + $0x148] sm:$0xff]   ;;  %v1345_v44 = vld [vmem:[%s1728_s1 + $0x150] sm:$0xff]  }
   0xf   :  { %1164 = vmatpush3.bf16.msra.mxu0 %v1312_v13  ;;  %v1340_v39 = vld [vmem:[%s1728_s1 + $0x180] sm:$0xff]   ;;  %v1342_v41 = vld [vmem:[%s1728_s1 + $0x108] sm:$0xff]   ;;  %v1346_v45 = vld [vmem:[%s1728_s1 + $0x110] sm:$0xff]  }
  0x10   :  { %1165 = vmatprep.subr.bf16.mxu0 %v1315_v16  ;;  %v1343_v42 = vld [vmem:[%s1728_s1 + $0x1c8] sm:$0xff]   ;;  %v1347_v46 = vld [vmem:[%s1728_s1 + $0x1d0] sm:$0xff]   ;;  %v1350_v49 = vld [vmem:[%s1728_s1 + $0x118] sm:$0xff]  }
  0x11   :  { %1192 = vmatpush3.bf16.msra.mxu1 %v1314_v15  ;;  %v1344_v43 = vld [vmem:[%s1728_s1 + $0x188] sm:$0xff]   ;;  %v1348_v47 = vld [vmem:[%s1728_s1 + $0x190] sm:$0xff]   ;;  %v1351_v50 = vld [vmem:[%s1728_s1 + $0x1d8] sm:$0xff]  }
  0x12   :  { %1193 = vmatprep.subr.bf16.mxu1 %v1317_v18  ;;  %v1352_v51 = vld [vmem:[%s1728_s1 + $0x198] sm:$0xff]   ;;  %v1353_v52 = vld [vmem:[%s1728_s1 + $0x160] sm:$0xff]   ;;  %v1357_v56 = vld [vmem:[%s1728_s1 + $0x168] sm:$0xff]  }
  0x13   :  { %1166 = vmatpush3.bf16.msra.mxu0 %v1316_v17  ;;  %v1354_v53 = vld [vmem:[%s1728_s1 + $0x120] sm:$0xff]   ;;  %v1358_v57 = vld [vmem:[%s1729_s0 + $0x4c] ss:$36 sps:$4 sm:$0xff]   ;;  %v1363_v61 = vld [vmem:[%s1729_s0 + $0x54] ss:$36 sps:$4 sm:$0xff]  }
  0x14   :  { %1167 = vmatprep.subr.bf16.mxu0 %v1319_v20  ;;  %v1355_v54 = vld [vmem:[%s1728_s1 + $0x1e0] sm:$0xff]   ;;  %v1360_v58 = vld [vmem:[%s1728_s1 + $0x128] sm:$0xff]   ;;  %v1366_v63 = vld [vmem:[%s1729_s0 + $0x50] ss:$36 sps:$4 sm:$0xff]  }
  0x15   :  { %1194 = vmatpush3.bf16.msra.mxu1 %v1318_v19  ;;  %v1356_v55 = vld [vmem:[%s1728_s1 + $0x1a0] sm:$0xff]   ;;  %v1361_v59 = vld [vmem:[%s1729_s0 + $0x48] ss:$36 sps:$4 sm:$0xff]   ;;  %v1367_v0 = vld [vmem:[%s1728_s1 + $0x170] sm:$0xff]  }
  0x16   :  { %1195 = vmatprep.subr.bf16.mxu1 %v1321_v22  ;;  %v1362_v60 = vld [vmem:[%s1728_s1 + $0x1e8] sm:$0xff]   ;;  %v1368_v1 = vld [vmem:[%s1728_s1 + $0x130] sm:$0xff]   ;;  %v1371_v4 = vld [vmem:[%s1728_s1 + $0x178] sm:$0xff]  }
  0x17   :  { %1168 = vmatpush3.bf16.msra.mxu0 %v1320_v21  ;;  %v1365_v62 = vld [vmem:[%s1728_s1 + $0x1a8] sm:$0xff]   ;;  %v1369_v2 = vld [vmem:[%s1728_s1 + $0x1f0] sm:$0xff]   ;;  %v1372_v5 = vld [vmem:[%s1728_s1 + $0x138] sm:$0xff]  }
  0x18   :  { %1169 = vmatprep.subr.bf16.mxu0 %v1323_v24  ;;  %v1370_v3 = vld [vmem:[%s1728_s1 + $0x1b0] sm:$0xff]   ;;  %v1373_v6 = vld [vmem:[%s1728_s1 + $0x1f8] sm:$0xff]   ;;  %v1378_v10 = vld [vmem:[%s1728_s1 + $0x200] sm:$0xff]  }
  0x19   :  { %1196 = vmatpush3.bf16.msra.mxu1 %v1322_v23  ;;  %v1374_v7 = vld [vmem:[%s1729_s0 + $0x10] ss:$36 sps:$4 sm:$0xff]   ;;  %v1377_v9 = vld [vmem:[%s1728_s1 + $0x1b8] sm:$0xff]   ;;  %v1382_v13 = vld [vmem:[%s1728_s1 + $0x208] sm:$0xff]  }
  0x1a   :  { %1197 = vmatprep.subr.bf16.mxu1 %v1325_v26  ;;  %v1376_v8 = vld [vmem:[%s1729_s0 + $0x14] ss:$36 sps:$4 sm:$0xff]   ;;  %v1381_v12 = vld [vmem:[%s1729_s0 + $0x1c] ss:$36 sps:$4 sm:$0xff]   ;;  %v1387_v17 = vld [vmem:[%s1729_s0 + $0x64] ss:$36 sps:$4 sm:$0xff]  }
  0x1b   :  { %1170 = vmatpush3.bf16.msra.mxu0 %v1324_v25  ;;  %v1379_v11 = vld [vmem:[%s1729_s0 + $0x18] ss:$36 sps:$4 sm:$0xff]   ;;  %v1386_v16 = vld [vmem:[%s1728_s1 + $0x210] sm:$0xff]   ;;  %v1389_v18 = vld [vmem:[%s1729_s0 + $0x60] ss:$36 sps:$4 sm:$0xff]  }
  0x1c   :  { %1171 = vmatprep.subr.bf16.mxu0 %v1327_v28  ;;  %v1383_v14 = vld [vmem:[%s1729_s0 + $0x5c] ss:$36 sps:$4 sm:$0xff]   ;;  %v1392_v22 = vld [vmem:[%s1728_s1 + $0x228] sm:$0xff]   ;;  %v1393_v23 = vld [vmem:[%s1728_s1 + $0x230] sm:$0xff]  }
  0x1d   :  { %1198 = vmatpush3.bf16.msra.mxu1 %v1326_v27  ;;  %v1385_v15 = vld [vmem:[%s1729_s0 + $0x58] ss:$36 sps:$4 sm:$0xff]   ;;  %v1391_v20 = vld [vmem:[%s1728_s1 + $0x220] sm:$0xff]   ;;  %v1396_v25 = vld [vmem:[%s1729_s0 + $0x68] ss:$36 sps:$4 sm:$0xff]  }
  0x1e   :  { %1199 = vmatprep.subr.bf16.mxu1 %v1329_v30  ;;  %v1390_v19 = vld [vmem:[%s1728_s1 + $0x218] sm:$0xff]   ;;  %v1395_v21 = vld [vmem:[%s1729_s0 + $0x20] ss:$36 sps:$4 sm:$0xff]  }
  0x1f   :  { %1172 = vmatpush3.bf16.msra.mxu0 %v1328_v29  ;;  %v1394_v24 = vld [vmem:[%s1728_s1 + $0x238] sm:$0xff]   ;;  %v1056_v27 = vld [vmem:[%s1730_s2] ss:$0 sm:$0xff] }
  0x20   :  { %1213 = vmatprep.subr.bf16.mxu0 %v1334_v34 }
  0x21   :  { %1200 = vmatpush3.bf16.msra.mxu1 %v1333_v33 }
  0x22   :  { %749 = vmatmul.mubr.bf16.vlgmr.msra.gmra.mrb[0].mxu0 %v1330_v31  ;;  %1241 = vmatprep.subr.bf16.mxu1 %v1339_v38 }
  0x23   :  { %1214 = vmatpush3.bf16.msra.mxu0 %v1338_v37  ;;  %756 = vmatprep.mubr.bf16.mxu0 %v1358_v57 }
  0x24   :  { %798 = vmatmul.mubr.bf16.vlgmr.msra.gmra.mrb[0].mxu1 %v1335_v35  ;;  %1215 = vmatprep.subr.bf16.mxu0 %v1341_v40 }
  0x25   :  { %1242 = vmatpush3.bf16.msra.mxu1 %v1340_v39  ;;  %805 = vmatprep.mubr.bf16.mxu1 %v1363_v61 }
  0x26   :  { %1243 = vmatprep.subr.bf16.mxu1 %v1343_v42 }
  0x27   :  { %1216 = vmatpush3.bf16.msra.mxu0 %v1342_v41 }
  0x28   :  { %1217 = vmatprep.subr.bf16.mxu0 %v1345_v44 }
  0x29   :  { %1244 = vmatpush3.bf16.msra.mxu1 %v1344_v43 }
  0x2a   :  { %1245 = vmatprep.subr.bf16.mxu1 %v1347_v46  ;;  %757 = vmatmul.mubr.bf16.gmra.mrb[4].mxu0 %v1361_v59 }
  0x2b   :  { %1218 = vmatpush3.bf16.msra.mxu0 %v1346_v45  ;;  %846 = vmatprep.mubr.bf16.mxu0 %v1376_v8 }
  0x2c   :  { %1219 = vmatprep.subr.bf16.mxu0 %v1349_v48  ;;  %806 = vmatmul.mubr.bf16.gmra.mrb[4].mxu1 %v1366_v63 }
  0x2d   :  { %1246 = vmatpush3.bf16.msra.mxu1 %v1348_v47  ;;  %895 = vmatprep.mubr.bf16.mxu1 %v1381_v12 }
  0x2e   :  { %1247 = vmatprep.subr.bf16.mxu1 %v1351_v50 }
  0x2f   :  { %1220 = vmatpush3.bf16.msra.mxu0 %v1350_v49 }
  0x30   :  { %1221 = vmatprep.subr.bf16.mxu0 %v1353_v52 }
  0x31   :  { %1248 = vmatpush3.bf16.msra.mxu1 %v1352_v51 }
  0x32   :  { %1249 = vmatprep.subr.bf16.mxu1 %v1355_v54 }
  0x33   :  { %1222 = vmatpush3.bf16.msra.mxu0 %v1354_v53 }
  0x34   :  { %1223 = vmatprep.subr.bf16.mxu0 %v1357_v56 }
  0x35   :  { %1250 = vmatpush3.bf16.msra.mxu1 %v1356_v55 }
  0x36   :  { %1251 = vmatprep.subr.bf16.mxu1 %v1362_v60 }
  0x37   :  { %1224 = vmatpush3.bf16.msra.mxu0 %v1360_v58 }
  0x38   :  { %1225 = vmatprep.subr.bf16.mxu0 %v1367_v0 }
  0x39   :  { %1252 = vmatpush3.bf16.msra.mxu1 %v1365_v62 }
  0x3a   :  { %1253 = vmatprep.subr.bf16.mxu1 %v1369_v2 }
  0x3b   :  { %1226 = vmatpush3.bf16.msra.mxu0 %v1368_v1 }
  0x3c   :  { %1227 = vmatprep.subr.bf16.mxu0 %v1371_v4 }
  0x3d   :  { %1254 = vmatpush3.bf16.msra.mxu1 %v1370_v3 }
  0x3e   :  { %1255 = vmatprep.subr.bf16.mxu1 %v1373_v6 }
  0x3f   :  { %1228 = vmatpush3.bf16.msra.mxu0 %v1372_v5 }
  0x40   :  { %1279 = vmatprep.subr.bf16.mxu0 %v1378_v10 }
  0x41   :  { %1256 = vmatpush3.bf16.msra.mxu1 %v1377_v9 }
  0x42   :  { %847 = vmatmul.mubr.bf16.vlgmr.msra.gmra.mrb[8].mxu0 %v1374_v7 }
  0x43   :  { %1280 = vmatpush3.bf16.msra.mxu0 %v1378_v10  ;;  %854 = vmatprep.mubr.bf16.mxu0 %v1383_v14 }
  0x44   :  { %896 = vmatmul.mubr.bf16.vlgmr.msra.gmra.mrb[8].mxu1 %v1379_v11  ;;  %1281 = vmatprep.subr.bf16.mxu0 %v1382_v13 }
  0x45   :  { %903 = vmatprep.mubr.bf16.mxu1 %v1387_v17 }
  0x47   :  { %1282 = vmatpush3.bf16.msra.mxu0 %v1382_v13 }
  0x48   :  { %1283 = vmatprep.subr.bf16.mxu0 %v1386_v16 }
  0x4a   :  { %855 = vmatmul.mubr.bf16.gmra.mrb[12].mxu0 %v1385_v15 }
  0x4b   :  { %1284 = vmatpush3.bf16.msra.mxu0 %v1386_v16  ;;  %1295 = vmatprep.mubr.bf16.mxu0 %v1395_v21 }
  0x4c   :  { %904 = vmatmul.mubr.bf16.gmra.mrb[12].mxu1 %v1389_v18  ;;  %1285 = vmatprep.subr.bf16.mxu0 %v1390_v19 }
  0x4f   :  { %1286 = vmatpush3.bf16.msra.mxu0 %v1390_v19 }
  0x50   :  { %1287 = vmatprep.subr.bf16.mxu0 %v1391_v20 }
  0x53   :  { %1288 = vmatpush3.bf16.msra.mxu0 %v1391_v20 }
  0x54   :  { %1289 = vmatprep.subr.bf16.mxu0 %v1392_v22 }
  0x57   :  { %1290 = vmatpush3.bf16.msra.mxu0 %v1392_v22 }
  0x58   :  { %1291 = vmatprep.subr.bf16.mxu0 %v1393_v23 }
  0x5b   :  { %1292 = vmatpush3.bf16.msra.mxu0 %v1393_v23 }
  0x5c   :  { %1293 = vmatprep.subr.bf16.mxu0 %v1394_v24 }
  0x5f   :  { %1294 = vmatpush3.bf16.msra.mxu0 %v1394_v24 }
  0x62   :  { %1296 = vmatmul.mubr.bf16.vlgmr.msra.gmra.mrb[16].mxu0 %v1396_v25 }
  0xf5   :  { %v1173_v26 = vpop.f32.mrb[0].mxu0 }
  0xf6   :  { %v1174_v28 = vpop.f32.mrb[1].mxu0 }
  0xf7   :  { %v1175_v29 = vadd.f32 %v1174_v28, %v1173_v26  ;;  %v1176_v30 = vpop.f32.mrb[2].mxu0  ;;  %v1201_v31 = vpop.f32.mrb[0].mxu1 }
  0xf8   :  { %v1177_v32 = vpop.f32.mrb[3].mxu0  ;;  %v1202_v35 = vpop.f32.mrb[1].mxu1 }
  0xf9   :  { %v751_v33 = vadd.f32 %v1175_v29, %v1056_v27  ;;  %v1178_v34 = vadd.f32 %v1177_v32, %v1176_v30  ;;  %v1203_v36 = vadd.f32 %v1202_v35, %v1201_v31  ;;  %v1204_v37 = vpop.f32.mrb[2].mxu1 }
  0xfa   :  { %v1205_v39 = vpop.f32.mrb[3].mxu1 }
  0xfb   :  { %v754_v38 = vadd.f32 %v1178_v34, %v1056_v27  ;;  %v800_v40 = vadd.f32 %v1203_v36, %v751_v33  ;;  %v1206_v41 = vadd.f32 %v1205_v39, %v1204_v37 }
  0xfd   :  { %v803_v42 = vadd.f32 %v1206_v41, %v754_v38  ;;  %v1179_v43 = vpop.f32.mrb[4].mxu0 }
  0xfe   :  { %v1180_v44 = vpop.f32.mrb[5].mxu0 }
  0xff   :  { %v1181_v45 = vadd.f32 %v1180_v44, %v1179_v43  ;;  %v1182_v46 = vpop.f32.mrb[6].mxu0  ;;  %v1207_v47 = vpop.f32.mrb[4].mxu1 }
 0x100   :  { %v1183_v48 = vpop.f32.mrb[7].mxu0  ;;  %v1208_v51 = vpop.f32.mrb[5].mxu1 }
 0x101   :  { %v759_v49 = vadd.f32 %v1181_v45, %v1056_v27  ;;  %v1184_v50 = vadd.f32 %v1183_v48, %v1182_v46  ;;  %v1209_v52 = vadd.f32 %v1208_v51, %v1207_v47  ;;  %v1210_v53 = vpop.f32.mrb[6].mxu1 }
 0x102   :  { %v1211_v55 = vpop.f32.mrb[7].mxu1 }
 0x103   :  { %v762_v54 = vadd.f32 %v1184_v50, %v1056_v27  ;;  %v808_v56 = vadd.f32 %v1209_v52, %v759_v49  ;;  %v1212_v57 = vadd.f32 %v1211_v55, %v1210_v53 }
 0x105   :  { %v811_v58 = vadd.f32 %v1212_v57, %v762_v54 }
 0x115   :  { %v1229_v59 = vpop.f32.mrb[8].mxu0 }
 0x116   :  { %v1230_v60 = vpop.f32.mrb[9].mxu0 }
 0x117   :  { %v1231_v61 = vadd.f32 %v1230_v60, %v1229_v59  ;;  %v1232_v62 = vpop.f32.mrb[10].mxu0  ;;  %v1257_v63 = vpop.f32.mrb[8].mxu1 }
 0x118   :  { %v1233_v0 = vpop.f32.mrb[11].mxu0  ;;  %v1258_v3 = vpop.f32.mrb[9].mxu1 }
 0x119   :  { %v849_v1 = vadd.f32 %v1231_v61, %v800_v40  ;;  %v1234_v2 = vadd.f32 %v1233_v0, %v1232_v62  ;;  %v1259_v4 = vadd.f32 %v1258_v3, %v1257_v63  ;;  %v1260_v5 = vpop.f32.mrb[10].mxu1 }
 0x11a   :  { %v1261_v7 = vpop.f32.mrb[11].mxu1 }
 0x11b   :  { %v852_v6 = vadd.f32 %v1234_v2, %v803_v42  ;;  %v1262_v8 = vadd.f32 %v1261_v7, %v1260_v5  ;;  %v898_v9 = vadd.f32 %v1259_v4, %v849_v1 }
 0x11d   :  { %v1235_v10 = vpop.f32.mrb[12].mxu0  ;;  %v901_v12 = vadd.f32 %v1262_v8, %v852_v6 }
 0x11e   :  { %v1236_v11 = vpop.f32.mrb[13].mxu0 }
 0x11f   :  { %v1237_v13 = vadd.f32 %v1236_v11, %v1235_v10  ;;  %v1238_v14 = vpop.f32.mrb[14].mxu0  ;;  %v1263_v15 = vpop.f32.mrb[12].mxu1 }
 0x120   :  { %v1239_v16 = vpop.f32.mrb[15].mxu0  ;;  %v1264_v19 = vpop.f32.mrb[13].mxu1 }
 0x121   :  { %v857_v17 = vadd.f32 %v1237_v13, %v808_v56  ;;  %v1240_v18 = vadd.f32 %v1239_v16, %v1238_v14  ;;  %v1265_v20 = vadd.f32 %v1264_v19, %v1263_v15  ;;  %v1266_v21 = vpop.f32.mrb[14].mxu1  ;;  %v1148_v14 = vld [vmem:[%s1732_s4] ss:$0 sm:$0xff] }
 0x122   :  { %v1267_v23 = vpop.f32.mrb[15].mxu1 }
 0x123   :  { %v860_v22 = vadd.f32 %v1240_v18, %v811_v58  ;;  %v1268_v24 = vadd.f32 %v1267_v23, %v1266_v21  ;;  %v906_v25 = vadd.f32 %v1265_v20, %v857_v17 }
 0x125   :  { %v909_v26 = vadd.f32 %v1268_v24, %v860_v22 }
 0x135   :  { %v1297_v27 = vpop.f32.mrb[16].mxu0 }
 0x136   :  { %v955_v28 = vadd.f32 %v1297_v27, %v906_v25  ;;  %v946_v29 = vpop.f32.mrb[17].mxu0 }
 0x137   :  { %v947_v30 = vadd.f32 %v946_v29, %v898_v9  ;;  %v1298_v31 = vpop.f32.mrb[18].mxu0  ;;  %v1147_v9 = vld [vmem:[%s1731_s3] ss:$0 sm:$0xff] }
 0x138   :  { %v958_v32 = vadd.f32 %v1298_v31, %v909_v26  ;;  %v949_v33 = vpop.f32.mrb[19].mxu0  ;;  %v965_v38 = vsel %vm961_vm0, %v955_v28, 0.0 }
 0x139   :  { %v950_v34 = vadd.f32 %v949_v33, %v901_v12  ;;  %v962_v35 = vsel %vm961_vm0, %v947_v30, 0.0 }
 0x13a   :  { %v967_v40 = vsel %vm961_vm0, %v958_v32, 0.0 }
 0x13b   :  { %v963_v36 = vsel %vm961_vm0, %v950_v34, 0.0 }
 0x13c   :  { %v964_v37 = vadd.f32 %v963_v36, %v962_v35 }
 0x13e   :  { %v966_v39 = vadd.f32 %v965_v38, %v964_v37 }
 0x140   :  { %v968_v41 = vadd.f32 %v967_v40, %v966_v39 }
 0x142   :  { %v969_v42 = vrot.slane %v968_v41, 4 }
 0x144   :  { %v970_v43 = vadd.f32 %v969_v42, %v968_v41 }
 0x146   :  { %v971_v44 = vrot.slane %v970_v43, 2 }
 0x148   :  { %v972_v45 = vadd.f32 %v971_v44, %v970_v43 }
 0x14a   :  { %v973_v46 = vrot.slane %v972_v45, 1 }
 0x14c   :  { %v974_v47 = vadd.f32 %v973_v46, %v972_v45 }
 0x14e   :  { %v976_v48 = vmul.f32 0.03125, %v974_v47 }
 0x150   :  { %v977_v49 = vsub.f32 %v947_v30, %v976_v48  ;;  %v978_v50 = vsub.f32 %v950_v34, %v976_v48  ;;  %v979_v51 = vsub.f32 %v955_v28, %v976_v48  ;;  %v980_v52 = vsub.f32 %v958_v32, %v976_v48 }
 0x152   :  { %v981_v53 = vmul.f32 %v977_v49, %v977_v49  ;;  %v982_v54 = vmul.f32 %v978_v50, %v978_v50  ;;  %v983_v55 = vmul.f32 %v979_v51, %v979_v51  ;;  %v984_v56 = vmul.f32 %v980_v52, %v980_v52 }
 0x154   :  { %v985_v57 = vsel %vm961_vm0, %v981_v53, 0.0  ;;  %v986_v58 = vsel %vm961_vm0, %v982_v54, 0.0  ;;  %v988_v60 = vsel %vm961_vm0, %v983_v55, 0.0  ;;  %v990_v62 = vsel %vm961_vm0, %v984_v56, 0.0 }
 0x155   :  { %v987_v59 = vadd.f32 %v986_v58, %v985_v57 }
 0x157   :  { %v989_v61 = vadd.f32 %v988_v60, %v987_v59 }
 0x159   :  { %v991_v63 = vadd.f32 %v990_v62, %v989_v61 }
 0x15b   :  { %v992_v0 = vrot.slane %v991_v63, 4 }
 0x15d   :  { %v993_v1 = vadd.f32 %v992_v0, %v991_v63 }
 0x15f   :  { %v994_v2 = vrot.slane %v993_v1, 2 }
 0x161   :  { %v995_v3 = vadd.f32 %v994_v2, %v993_v1 }
 0x163   :  { %v996_v4 = vrot.slane %v995_v3, 1 }
 0x165   :  { %v997_v5 = vadd.f32 %v996_v4, %v995_v3 }
 0x167   :  { %v998_v6 = vmul.f32 0.03125, %v997_v5 }
 0x169   :  { %v999_v7 = vadd.f32 1e-05, %v998_v6 }
 0x16b   :  { %1397 = vrsqrt.f32 %v999_v7 }
 0x175   :  { %v1398_v8 = vpop.eup %1397 }
 0x176   :  { %v1001_v10 = vmul.f32 %v1398_v8, %v977_v49  ;;  %v1002_v11 = vmul.f32 %v1398_v8, %v978_v50  ;;  %v1003_v12 = vmul.f32 %v1398_v8, %v979_v51  ;;  %v1004_v13 = vmul.f32 %v1398_v8, %v980_v52 }
 0x178   :  { %v1012_v15 = vmul.f32 %v1147_v9, %v1001_v10  ;;  %v1013_v16 = vmul.f32 %v1147_v9, %v1002_v11  ;;  %v1014_v17 = vmul.f32 %v1147_v9, %v1003_v12  ;;  %v1015_v18 = vmul.f32 %v1147_v9, %v1004_v13 }
 0x17a   :  { %v1023_v19 = vadd.f32 %v1148_v14, %v1012_v15  ;;  %v1024_v20 = vadd.f32 %v1148_v14, %v1013_v16  ;;  %v1025_v21 = vadd.f32 %v1148_v14, %v1014_v17  ;;  %v1026_v22 = vadd.f32 %v1148_v14, %v1015_v18 }
 0x17c   :  { %v1027_v23 = vmax.f32 %v1023_v19, 0.0  ;;  %v1028_v24 = vmax.f32 %v1024_v20, 0.0  ;;  %v1029_v25 = vmax.f32 %v1025_v21, 0.0  ;;  %v1030_v26 = vmax.f32 %v1026_v22, 0.0 }
 0x17e   :  { %v1153_v27 = vpack.c.bf16 %v1027_v23, %v1027_v23  ;;  %v1154_v28 = vpack.c.bf16 %v1028_v24, %v1028_v24  ;;  %v1155_v29 = vpack.c.bf16 %v1029_v25, %v1029_v25  ;;  %v1156_v30 = vpack.c.bf16 %v1030_v26, %v1030_v26 }
 0x180   :  { %1048 = vst.msk [vmem:[%s1733_s5] sm:$0xf] %vm1047_vm1, %v1153_v27  ;;  %1049 = vst.msk [vmem:[%s1733_s5 + $0x4] sm:$0xf] %vm1047_vm1, %v1154_v28 }
 0x181   :  { %1050 = vst.msk [vmem:[%s1733_s5 + $0x8] sm:$0xf] %vm1047_vm1, %v1155_v29  ;;  %1051 = vst.msk [vmem:[%s1733_s5 + $0xc] sm:$0xf] %vm1047_vm1, %v1156_v30 }

// kernel: cnn_q_forward.6
= control target key start
LH: loop header
LB: loop body
LE: loop exit
PB: predicated region body
PF: predicated region fallthrough
CT: control target
= control target key end

     0   :  { %v658_v35 = vmov 0.0   ;;  %vm659_vm0 = vmmov 0   ;;  %vm336_vm1 = vcmask 523264   ;;  %vm460_vm2 = vcmask 130048   ;;  %s819_s1 = inlined_call_operand.vmem [shape: bf16[576,16], index: 1, kind: input, shape index: {}]   ;;  %s820_s0 = inlined_call_operand.vmem [shape: bf16[8,576], index: 0, kind: input, shape index: {}]   ;;  %s821_s2 = inlined_call_operand.vmem [shape: f32[1,16], index: 2, kind: input, shape index: {}]   ;;  %s822_s3 = inlined_call_operand.vmem [shape: f32[1,16], index: 3, kind: input, shape index: {}]   ;;  %s823_s4 = inlined_call_operand.vmem [shape: f32[1,16], index: 4, kind: input, shape index: {}]   ;;  %s824_s5 = inlined_call_operand.vmem [shape: bf16[8,16], index: 5, kind: output, shape index: {}]  }
   0x1   :  { %v615_v0 = vld [vmem:[%s819_s1 + $0x40] sm:$0xff]   ;;  %v619_v4 = vld [vmem:[%s819_s1 + $0x48] sm:$0xff]   ;;  %v623_v8 = vld [vmem:[%s819_s1 + $0x50] sm:$0xff]   ;;  %vm501_vm3 = vcmask 125952  }
   0x2   :  { %v616_v1 = vld [vmem:[%s819_s1] sm:$0xff]   ;;  %552 = vmatprep.subr.bf16.mxu0 %v615_v0  ;;  %v620_v5 = vld [vmem:[%s819_s1 + $0x8] sm:$0xff]   ;;  %v624_v9 = vld [vmem:[%s819_s1 + $0x10] sm:$0xff]  }
   0x3   :  { %v617_v2 = vld [vmem:[%s819_s1 + $0xc0] sm:$0xff]   ;;  %553 = vmatpush3.bf16.msra.mxu0 %v616_v1  ;;  %v621_v6 = vld [vmem:[%s819_s1 + $0xc8] sm:$0xff]   ;;  %v625_v10 = vld [vmem:[%s819_s1 + $0xd0] sm:$0xff]  }
   0x4   :  { %v618_v3 = vld [vmem:[%s819_s1 + $0x80] sm:$0xff]   ;;  %574 = vmatprep.subr.bf16.mxu1 %v617_v2  ;;  %554 = vmatprep.subr.bf16.mxu0 %v619_v4  ;;  %v622_v7 = vld [vmem:[%s819_s1 + $0x88] sm:$0xff]   ;;  %v626_v11 = vld [vmem:[%s819_s1 + $0x90] sm:$0xff]  }
   0x5   :  { %575 = vmatpush3.bf16.msra.mxu1 %v618_v3  ;;  %v627_v12 = vld [vmem:[%s819_s1 + $0x58] sm:$0xff]   ;;  %v631_v16 = vld [vmem:[%s819_s1 + $0x60] sm:$0xff]   ;;  %v635_v20 = vld [vmem:[%s819_s1 + $0x68] sm:$0xff]  }
   0x6   :  { %576 = vmatprep.subr.bf16.mxu1 %v621_v6  ;;  %v628_v13 = vld [vmem:[%s819_s1 + $0x18] sm:$0xff]   ;;  %v632_v17 = vld [vmem:[%s819_s1 + $0x20] sm:$0xff]   ;;  %v636_v21 = vld [vmem:[%s819_s1 + $0x28] sm:$0xff]  }
   0x7   :  { %555 = vmatpush3.bf16.msra.mxu0 %v620_v5  ;;  %v629_v14 = vld [vmem:[%s819_s1 + $0xd8] sm:$0xff]   ;;  %v633_v18 = vld [vmem:[%s819_s1 + $0xe0] sm:$0xff]   ;;  %v637_v22 = vld [vmem:[%s819_s1 + $0xe8] sm:$0xff]  }
   0x8   :  { %556 = vmatprep.subr.bf16.mxu0 %v623_v8  ;;  %v630_v15 = vld [vmem:[%s819_s1 + $0x98] sm:$0xff]   ;;  %v634_v19 = vld [vmem:[%s819_s1 + $0xa0] sm:$0xff]   ;;  %v638_v23 = vld [vmem:[%s819_s1 + $0xa8] sm:$0xff]  }
   0x9   :  { %577 = vmatpush3.bf16.msra.mxu1 %v622_v7  ;;  %v639_v24 = vld [vmem:[%s819_s1 + $0x70] sm:$0xff]   ;;  %v643_v28 = vld [vmem:[%s819_s1 + $0x78] sm:$0xff]   ;;  %v21_v31 = vld [vmem:[%s820_s0] sm:$0xff] }
   0xa   :  { %578 = vmatprep.subr.bf16.mxu1 %v625_v10  ;;  %v640_v25 = vld [vmem:[%s819_s1 + $0x30] sm:$0xff]   ;;  %v644_v29 = vld [vmem:[%s819_s1 + $0x38] sm:$0xff]   ;;  %v508_v32 = vcombine.low %v21_v31, %v21_v31  ;;  %v509_v33 = vcombine.high %v21_v31, %v21_v31  ;;  %v22_v36 = vld [vmem:[%s820_s0 + $0x8] sm:$0xff] }
   0xb   :  { %557 = vmatpush3.bf16.msra.mxu0 %v624_v9  ;;  %v641_v26 = vld [vmem:[%s819_s1 + $0xf0] sm:$0xff]   ;;  %v645_v30 = vld [vmem:[%s819_s1 + $0xf8] sm:$0xff]   ;;  %v510_v37 = vcombine.low %v22_v36, %v22_v36  ;;  %v511_v38 = vcombine.high %v22_v36, %v22_v36  ;;  %v652_v39 = vld [vmem:[%s819_s1 + $0x100] sm:$0xff]  }
   0xc   :  { %558 = vmatprep.subr.bf16.mxu0 %v627_v12  ;;  %v642_v27 = vld [vmem:[%s819_s1 + $0xb0] sm:$0xff]   ;;  %v649_v34 = vld [vmem:[%s819_s1 + $0xb8] sm:$0xff]   ;;  %372 = vmatprep.mubr.bf16.mxu0 %v509_v33  ;;  %v653_v40 = vld [vmem:[%s819_s1 + $0x108] sm:$0xff]  }
   0xd   :  { %579 = vmatpush3.bf16.msra.mxu1 %v626_v11  ;;  %412 = vmatprep.mubr.bf16.mxu1 %v511_v38  ;;  %v654_v41 = vld [vmem:[%s819_s1 + $0x110] sm:$0xff]   ;;  %v655_v42 = vld [vmem:[%s819_s1 + $0x118] sm:$0xff]   ;;  %v507_v45 = vld [vmem:[%s821_s2] ss:$0 sm:$0xff] }
   0xe   :  { %580 = vmatprep.subr.bf16.mxu1 %v629_v14  ;;  %v648_v43 = vld [vmem:[%s820_s0 + $0x10] ss:$0 sps:$4 sm:$0xff]  }
   0xf   :  { %559 = vmatpush3.bf16.msra.mxu0 %v628_v13 }
  0x10   :  { %560 = vmatprep.subr.bf16.mxu0 %v631_v16 }
  0x11   :  { %581 = vmatpush3.bf16.msra.mxu1 %v630_v15 }
  0x12   :  { %582 = vmatprep.subr.bf16.mxu1 %v633_v18  ;;  %v550_v18 = vld [vmem:[%s822_s3] ss:$0 sm:$0xff] }
  0x13   :  { %561 = vmatpush3.bf16.msra.mxu0 %v632_v17 }
  0x14   :  { %562 = vmatprep.subr.bf16.mxu0 %v635_v20  ;;  %v551_v20 = vld [vmem:[%s823_s4] ss:$0 sm:$0xff] }
  0x15   :  { %583 = vmatpush3.bf16.msra.mxu1 %v634_v19 }
  0x16   :  { %584 = vmatprep.subr.bf16.mxu1 %v637_v22 }
  0x17   :  { %563 = vmatpush3.bf16.msra.mxu0 %v636_v21 }
  0x18   :  { %564 = vmatprep.subr.bf16.mxu0 %v639_v24 }
  0x19   :  { %585 = vmatpush3.bf16.msra.mxu1 %v638_v23 }
  0x1a   :  { %586 = vmatprep.subr.bf16.mxu1 %v641_v26 }
  0x1b   :  { %565 = vmatpush3.bf16.msra.mxu0 %v640_v25 }
  0x1c   :  { %566 = vmatprep.subr.bf16.mxu0 %v643_v28 }
  0x1d   :  { %587 = vmatpush3.bf16.msra.mxu1 %v642_v27 }
  0x1e   :  { %588 = vmatprep.subr.bf16.mxu1 %v645_v30 }
  0x1f   :  { %567 = vmatpush3.bf16.msra.mxu0 %v644_v29 }
  0x20   :  { %601 = vmatprep.subr.bf16.mxu0 %v658_v35 }
  0x21   :  { %589 = vmatpush3.bf16.msra.mxu1 %v649_v34 }
  0x22   :  { %373 = vmatmul.mubr.bf16.vlgmr.msra.gmra.mrb[0].mxu0 %v508_v32 }
  0x23   :  { %602 = vmatpush3.bf16.msra.mxu0 %v652_v39  ;;  %609 = vmatprep.mubr.msk.bf16.mxu0 %vm659_vm0, %v658_v35 }
  0x24   :  { %413 = vmatmul.mubr.bf16.vlgmr.msra.gmra.mrb[0].mxu1 %v510_v37  ;;  %603 = vmatprep.subr.bf16.mxu0 %v658_v35 }
  0x27   :  { %604 = vmatpush3.bf16.msra.mxu0 %v653_v40 }
  0x28   :  { %605 = vmatprep.subr.bf16.mxu0 %v658_v35 }
  0x2b   :  { %606 = vmatpush3.bf16.msra.mxu0 %v654_v41 }
  0x2c   :  { %607 = vmatprep.subr.bf16.mxu0 %v658_v35 }
  0x2f   :  { %608 = vmatpush3.bf16.msra.mxu0 %v655_v42 }
  0x32   :  { %610 = vmatmul.mubr.msk.bf16.vlgmr.msra.gmra.mrb[4].mxu0 %vm336_vm1, %v648_v43 }
  0xf5   :  { %v568_v44 = vpop.f32.mrb[0].mxu0 }
  0xf6   :  { %v569_v46 = vpop.f32.mrb[1].mxu0 }
  0xf7   :  { %v570_v47 = vadd.f32 %v569_v46, %v568_v44  ;;  %v571_v48 = vpop.f32.mrb[2].mxu0  ;;  %v590_v49 = vpop.f32.mrb[0].mxu1 }
  0xf8   :  { %v572_v50 = vpop.f32.mrb[3].mxu0  ;;  %v591_v51 = vpop.f32.mrb[1].mxu1 }
  0xf9   :  { %v375_v52 = vadd.f32 %v570_v47, %v507_v45  ;;  %v592_v53 = vadd.f32 %v591_v51, %v590_v49  ;;  %v593_v54 = vpop.f32.mrb[2].mxu1 }
  0xfa   :  { %v594_v55 = vpop.f32.mrb[3].mxu1 }
  0xfb   :  { %v415_v56 = vadd.f32 %v592_v53, %v375_v52 }
 0x105   :  { %v454_v57 = vpop.f32.mrb[4].mxu0 }
 0x106   :  { %v455_v58 = vadd.f32 %v454_v57, %v415_v56  ;;  %v611_v59 = vpop.f32.mrb[5].mxu0 }
 0x107   :  { %v457_v60 = vpop.f32.mrb[6].mxu0 }
 0x108   :  { %v461_v61 = vsel %vm460_vm2, %v455_v58, 0.0  ;;  %v612_v62 = vpop.f32.mrb[7].mxu0 }
 0x109   :  { %v462_v63 = vrot.slane %v461_v61, 4 }
 0x10b   :  { %v463_v0 = vadd.f32 %v462_v63, %v461_v61 }
 0x10d   :  { %v464_v1 = vrot.slane %v463_v0, 2 }
 0x10f   :  { %v465_v2 = vadd.f32 %v464_v1, %v463_v0 }
 0x111   :  { %v466_v3 = vrot.slane %v465_v2, 1 }
 0x113   :  { %v467_v4 = vadd.f32 %v466_v3, %v465_v2 }
 0x115   :  { %v469_v5 = vmul.f32 0.125, %v467_v4 }
 0x117   :  { %v470_v6 = vsub.f32 %v455_v58, %v469_v5 }
 0x119   :  { %v471_v7 = vmul.f32 %v470_v6, %v470_v6 }
 0x11b   :  { %v472_v8 = vsel %vm460_vm2, %v471_v7, 0.0 }
 0x11c   :  { %v473_v9 = vrot.slane %v472_v8, 4 }
 0x11e   :  { %v474_v10 = vadd.f32 %v473_v9, %v472_v8 }
 0x120   :  { %v475_v11 = vrot.slane %v474_v10, 2 }
 0x122   :  { %v476_v12 = vadd.f32 %v475_v11, %v474_v10 }
 0x124   :  { %v477_v13 = vrot.slane %v476_v12, 1 }
 0x126   :  { %v478_v14 = vadd.f32 %v477_v13, %v476_v12 }
 0x128   :  { %v479_v15 = vmul.f32 0.125, %v478_v14 }
 0x12a   :  { %v480_v16 = vadd.f32 1e-05, %v479_v15 }
 0x12c   :  { %656 = vrsqrt.f32 %v480_v16 }
 0x136   :  { %v657_v17 = vpop.eup %656 }
 0x137   :  { %v482_v19 = vmul.f32 %v657_v17, %v470_v6 }
 0x139   :  { %v490_v21 = vmul.f32 %v550_v18, %v482_v19 }
 0x13b   :  { %v498_v22 = vadd.f32 %v551_v20, %v490_v21 }
 0x13d   :  { %v499_v23 = vmax.f32 %v498_v22, 0.0 }
 0x13f   :  { %v500_v24 = vpack.c.bf16 %v499_v23, %v499_v23 }
 0x141   :  { %502 = vst.msk [vmem:[%s824_s5] sm:$0xf] %vm501_vm3, %v500_v24 }

// kernel: cnn_q_forward.7
= control target key start
LH: loop header
LB: loop body
LE: loop exit
PB: predicated region body
PF: predicated region fallthrough
CT: control target
= control target key end

     0   :  { %vm190_vm0 = vcmask 1043456   ;;  %v3083_v1 = vmov 0   ;;  %vm186_vm1 = vcmask 64512   ;;  %vm118_vm2 = vcmask 523264   ;;  %s3084_s24 = smov 1   ;;  %s4077_s4 = inlined_call_operand.vmem [shape: bf16[8,256], index: 4, kind: input, shape index: {}]   ;;  %s4078_s6 = inlined_call_operand.vmem [shape: bf16[256,256], index: 6, kind: input, shape index: {}]   ;;  %s4079_s1 = inlined_call_operand.vmem [shape: bf16[2,8], index: 1, kind: input, shape index: {}]   ;;  %s4080_s2 = inlined_call_operand.vmem [shape: bf16[64,256], index: 2, kind: input, shape index: {}]   ;;  %s4081_s8 = inlined_call_operand.vmem [shape: bf16[256,256], index: 8, kind: input, shape index: {}]   ;;  %s4082_s0 = inlined_call_operand.vmem [shape: bf16[2,64], index: 0, kind: input, shape index: {}]   ;;  %s4083_s5 = inlined_call_operand.vmem [shape: f32[1,256], index: 5, kind: input, shape index: {}]   ;;  %s4084_s10 = inlined_call_operand.vmem [shape: bf16[2,256,256], index: 10, kind: input, shape index: {}]   ;;  %s4085_s11 = inlined_call_operand.vmem [shape: bf16[2,256,256], index: 11, kind: input, shape index: {}]   ;;  %s4086_s3 = inlined_call_operand.vmem [shape: f32[1,256], index: 3, kind: input, shape index: {}]   ;;  %s4087_s7 = inlined_call_operand.vmem [shape: f32[1,256], index: 7, kind: input, shape index: {}]   ;;  %s4088_s13 = inlined_call_operand.vmem [shape: bf16[2,256,256], index: 13, kind: input, shape index: {}]   ;;  %s4089_s9 = inlined_call_operand.vmem [shape: f32[1,256], index: 9, kind: input, shape index: {}]   ;;  %s4090_s12 = inlined_call_operand.vmem [shape: f32[2,1,256], index: 12, kind: input, shape index: {}]   ;;  %s4091_s15 = inlined_call_operand.vmem [shape: bf16[2,1,256], index: 15, kind: input, shape index: {}]   ;;  %s4092_s14 = inlined_call_operand.vmem [shape: f32[2,1,256], index: 14, kind: input, shape index: {}]   ;;  %s4093_s16 = inlined_call_operand.vmem [shape: f32[2,1,1], index: 16, kind: input, shape index: {}]   ;;  %s4094_s17 = inlined_call_operand.vmem [shape: f32[2,2], index: 17, kind: output, shape index: {}]  }
   0x1   :  { %4096 = sst [smem:[#allocation2_spill]] %s4077_s4  ;;  %229 = vmatprep.mubr.bf16.mxu1 %v3083_v1  ;;  %154 = vmatprep.mubr.bf16.mxu0 %v3083_v1  ;;  %v167_v6 = vld [vmem:[%s4079_s1] sm:$0x1]  ;;  %v2727_v38 = vld [vmem:[%s4080_s2 + $0x4] ss:$8 sps:$4 sm:$0xff]   ;;  %vm1492_vm3 = vcmask 1041408  }
   0x2   :  { %4097 = sst [smem:[#allocation3_spill]] %s4078_s6  ;;  %s4098_s26 = sld [smem:[#allocation2_spill]]  ;;  %v2729_v39 = vld [vmem:[%s4080_s2] ss:$8 sps:$4 sm:$0xff]   ;;  %122 = vmatprep.subr.bf16.mxu0 %v2727_v38  ;;  %v2730_v40 = vld [vmem:[%s4080_s2 + $0x14] ss:$8 sps:$4 sm:$0xff]  }
   0x3   :  { %s4099_s29 = sld [smem:[#allocation3_spill]]  ;;  %123 = vmatpush1.bf16.msra.mxu0 %v2729_v39  ;;  %v2732_v41 = vld [vmem:[%s4080_s2 + $0x10] ss:$8 sps:$4 sm:$0xff]   ;;  %v2733_v42 = vld [vmem:[%s4080_s2 + $0x24] ss:$8 sps:$4 sm:$0xff]   ;;  %vm1512_vm4 = vcmask 1024  }
   0x4   :  { %124 = vmatprep.subr.bf16.mxu0 %v2730_v40  ;;  %v2735_v43 = vld [vmem:[%s4080_s2 + $0x20] ss:$8 sps:$4 sm:$0xff]   ;;  %v2736_v44 = vld [vmem:[%s4080_s2 + $0x34] ss:$8 sps:$4 sm:$0xff]   ;;  %v2738_v45 = vld [vmem:[%s4080_s2 + $0x30] ss:$8 sps:$4 sm:$0xff]  }
   0x5   :  { %v2741_v46 = vld [vmem:[%s4081_s8 + $0x4] ss:$8 sps:$4 sm:$0xff]   ;;  %v57_v47 = vld [vmem:[%s4082_s0] sm:$0x1]  ;;  %v2744_v49 = vld [vmem:[%s4081_s8 + $0x14] ss:$8 sps:$4 sm:$0xff]  }
   0x6   :  { %v2739_v48 = vld [vmem:[%s4081_s8] ss:$8 sps:$4 sm:$0xff]   ;;  %v2742_v50 = vld [vmem:[%s4081_s8 + $0x10] ss:$8 sps:$4 sm:$0xff]   ;;  %v2747_v51 = vld [vmem:[%s4081_s8 + $0x24] ss:$8 sps:$4 sm:$0xff]  }
   0x7   :  { %125 = vmatpush1.bf16.msra.mxu0 %v2732_v41  ;;  %v2745_v52 = vld [vmem:[%s4081_s8 + $0x20] ss:$8 sps:$4 sm:$0xff]   ;;  %v2750_v53 = vld [vmem:[%s4081_s8 + $0x34] ss:$8 sps:$4 sm:$0xff]   ;;  %v2748_v54 = vld [vmem:[%s4081_s8 + $0x30] ss:$8 sps:$4 sm:$0xff]  }
   0x8   :  { %v168_v0 = vld [vmem:[%s4098_s26] sm:$0xff]  ;;  %126 = vmatprep.subr.bf16.mxu0 %v2733_v42  ;;  %v2756_v57 = vld [vmem:[%s4081_s8 + $0x54] ss:$8 sps:$4 sm:$0xff]   ;;  %v2754_v58 = vld [vmem:[%s4081_s8 + $0x50] ss:$8 sps:$4 sm:$0xff]   ;;  %vm2298_vm5 = vcmask 9224  }
   0x9   :  { %v2314_v2 = vcombine.high %v168_v0, %v168_v0  ;;  %v2313_v3 = vcombine.low %v168_v0, %v168_v0  ;;  %v2681_v4 = vld [vmem:[%s4099_s29 + $0x4] ss:$8 sps:$4 sm:$0xff]   ;;  %v2679_v7 = vld [vmem:[%s4099_s29] ss:$8 sps:$4 sm:$0xff]   ;;  %v2684_v8 = vld [vmem:[%s4099_s29 + $0x14] ss:$8 sps:$4 sm:$0xff]  }
   0xa   :  { %v2682_v9 = vld [vmem:[%s4099_s29 + $0x10] ss:$8 sps:$4 sm:$0xff]   ;;  %v2687_v10 = vld [vmem:[%s4099_s29 + $0x24] ss:$8 sps:$4 sm:$0xff]   ;;  %v2685_v11 = vld [vmem:[%s4099_s29 + $0x20] ss:$8 sps:$4 sm:$0xff]  }
   0xb   :  { %2315 = vmatprep.subr.msk.bf16.mxu1 %vm190_vm0, %v2314_v2  ;;  %v192_v5 = vsel %vm190_vm0, %v2313_v3, 0  ;;  %v2690_v12 = vld [vmem:[%s4099_s29 + $0x34] ss:$8 sps:$4 sm:$0xff]   ;;  %v2688_v13 = vld [vmem:[%s4099_s29 + $0x30] ss:$8 sps:$4 sm:$0xff]   ;;  %127 = vmatpush1.bf16.msra.mxu0 %v2735_v43 }
   0xc   :  { %198 = vmatpush1.bf16.msra.mxu1 %v192_v5  ;;  %v2693_v14 = vld [vmem:[%s4099_s29 + $0x44] ss:$8 sps:$4 sm:$0xff]   ;;  %v2691_v15 = vld [vmem:[%s4099_s29 + $0x40] ss:$8 sps:$4 sm:$0xff]   ;;  %v2696_v16 = vld [vmem:[%s4099_s29 + $0x54] ss:$8 sps:$4 sm:$0xff]   ;;  %128 = vmatprep.subr.bf16.mxu0 %v2736_v44 }
   0xd   :  { %446 = vmatprep.subr.bf16.mxu1 %v2681_v4  ;;  %v2694_v17 = vld [vmem:[%s4099_s29 + $0x50] ss:$8 sps:$4 sm:$0xff]   ;;  %v2699_v18 = vld [vmem:[%s4099_s29 + $0x64] ss:$8 sps:$4 sm:$0xff]   ;;  %v2697_v19 = vld [vmem:[%s4099_s29 + $0x60] ss:$8 sps:$4 sm:$0xff]  }
   0xe   :  { %v2702_v20 = vld [vmem:[%s4099_s29 + $0x74] ss:$8 sps:$4 sm:$0xff]   ;;  %v2700_v21 = vld [vmem:[%s4099_s29 + $0x70] ss:$8 sps:$4 sm:$0xff]   ;;  %v2705_v22 = vld [vmem:[%s4099_s29 + $0x84] ss:$8 sps:$4 sm:$0xff]  }
   0xf   :  { %2316 = vmatmul.mubr.msk.bf16.vlgmr.msra.gmra.mrb[0].mxu1 %vm186_vm1, %v167_v6  ;;  %v2703_v23 = vld [vmem:[%s4099_s29 + $0x80] ss:$8 sps:$4 sm:$0xff]   ;;  %v2708_v24 = vld [vmem:[%s4099_s29 + $0x94] ss:$8 sps:$4 sm:$0xff]   ;;  %v2706_v25 = vld [vmem:[%s4099_s29 + $0x90] ss:$8 sps:$4 sm:$0xff]   ;;  %129 = vmatpush1.bf16.msra.mxu0 %v2738_v45 }
  0x10   :  { %447 = vmatpush1.bf16.msra.mxu1 %v2679_v7  ;;  %v2711_v26 = vld [vmem:[%s4099_s29 + $0xa4] ss:$8 sps:$4 sm:$0xff]   ;;  %v2709_v27 = vld [vmem:[%s4099_s29 + $0xa0] ss:$8 sps:$4 sm:$0xff]   ;;  %v2714_v28 = vld [vmem:[%s4099_s29 + $0xb4] ss:$8 sps:$4 sm:$0xff]   ;;  %695 = vmatprep.subr.bf16.mxu0 %v2741_v46 }
  0x11   :  { %448 = vmatprep.subr.bf16.mxu1 %v2684_v8  ;;  %v2712_v29 = vld [vmem:[%s4099_s29 + $0xb0] ss:$8 sps:$4 sm:$0xff]   ;;  %v2717_v30 = vld [vmem:[%s4099_s29 + $0xc4] ss:$8 sps:$4 sm:$0xff]   ;;  %v2715_v31 = vld [vmem:[%s4099_s29 + $0xc0] ss:$8 sps:$4 sm:$0xff]  }
  0x12   :  { %v2720_v32 = vld [vmem:[%s4099_s29 + $0xd4] ss:$8 sps:$4 sm:$0xff]   ;;  %v2718_v33 = vld [vmem:[%s4099_s29 + $0xd0] ss:$8 sps:$4 sm:$0xff]   ;;  %v2723_v34 = vld [vmem:[%s4099_s29 + $0xe4] ss:$8 sps:$4 sm:$0xff]   ;;  %2312 = vmatmul.mubr.msk.bf16.vlgmr.msra.gmra.mrb[0].mxu0 %vm118_vm2, %v57_v47 }
  0x13   :  { %v2721_v35 = vld [vmem:[%s4099_s29 + $0xe0] ss:$8 sps:$4 sm:$0xff]   ;;  %v2726_v36 = vld [vmem:[%s4099_s29 + $0xf4] ss:$8 sps:$4 sm:$0xff]   ;;  %v2724_v37 = vld [vmem:[%s4099_s29 + $0xf0] ss:$8 sps:$4 sm:$0xff]   ;;  %696 = vmatpush1.bf16.msra.mxu0 %v2739_v48 }
  0x14   :  { %449 = vmatpush1.bf16.msra.mxu1 %v2682_v9  ;;  %697 = vmatprep.subr.bf16.mxu0 %v2744_v49  ;;  %v2753_v55 = vld [vmem:[%s4081_s8 + $0x44] ss:$8 sps:$4 sm:$0xff]   ;;  %v2751_v56 = vld [vmem:[%s4081_s8 + $0x40] ss:$8 sps:$4 sm:$0xff]   ;;  %v2762_v61 = vld [vmem:[%s4081_s8 + $0x74] ss:$8 sps:$4 sm:$0xff]  }
  0x15   :  { %450 = vmatprep.subr.bf16.mxu1 %v2687_v10  ;;  %v2759_v59 = vld [vmem:[%s4081_s8 + $0x64] ss:$8 sps:$4 sm:$0xff]   ;;  %v2757_v60 = vld [vmem:[%s4081_s8 + $0x60] ss:$8 sps:$4 sm:$0xff]   ;;  %v2760_v62 = vld [vmem:[%s4081_s8 + $0x70] ss:$8 sps:$4 sm:$0xff]  }
  0x16   :  { %v2765_v63 = vld [vmem:[%s4081_s8 + $0x84] ss:$8 sps:$4 sm:$0xff]   ;;  %v2763_v0 = vld [vmem:[%s4081_s8 + $0x80] ss:$8 sps:$4 sm:$0xff]   ;;  %v2768_v1 = vld [vmem:[%s4081_s8 + $0x94] ss:$8 sps:$4 sm:$0xff]  }
  0x17   :  { %698 = vmatpush1.bf16.msra.mxu0 %v2742_v50  ;;  %v2766_v2 = vld [vmem:[%s4081_s8 + $0x90] ss:$8 sps:$4 sm:$0xff]   ;;  %v2771_v3 = vld [vmem:[%s4081_s8 + $0xa4] ss:$8 sps:$4 sm:$0xff]   ;;  %v2769_v4 = vld [vmem:[%s4081_s8 + $0xa0] ss:$8 sps:$4 sm:$0xff]  }
  0x18   :  { %451 = vmatpush1.bf16.msra.mxu1 %v2685_v11  ;;  %699 = vmatprep.subr.bf16.mxu0 %v2747_v51  ;;  %v2774_v5 = vld [vmem:[%s4081_s8 + $0xb4] ss:$8 sps:$4 sm:$0xff]   ;;  %v2772_v6 = vld [vmem:[%s4081_s8 + $0xb0] ss:$8 sps:$4 sm:$0xff]   ;;  %v2777_v7 = vld [vmem:[%s4081_s8 + $0xc4] ss:$8 sps:$4 sm:$0xff]   ;;  %v68_v11 = vlaneseq }
  0x19   :  { %452 = vmatprep.subr.bf16.mxu1 %v2690_v12  ;;  %v2775_v8 = vld [vmem:[%s4081_s8 + $0xc0] ss:$8 sps:$4 sm:$0xff]   ;;  %v2780_v9 = vld [vmem:[%s4081_s8 + $0xd4] ss:$8 sps:$4 sm:$0xff]   ;;  %v2778_v10 = vld [vmem:[%s4081_s8 + $0xd0] ss:$8 sps:$4 sm:$0xff]  }
  0x1a   :  { %v3388_v12 = vshrl.u32 %v68_v11, 7  ;;  %v2837_v38 = vld [vmem:[%s4085_s11 + $0x4] ss:$8 sps:$4 sm:$0xff]   ;;  %v2843_v39 = vld [vmem:[%s4085_s11 + $0x14] ss:$8 sps:$4 sm:$0xff]  }
  0x1b   :  { %700 = vmatpush1.bf16.msra.mxu0 %v2745_v52  ;;  %v2841_v40 = vld [vmem:[%s4085_s11 + $0x10] ss:$8 sps:$4 sm:$0xff]   ;;  %v2849_v41 = vld [vmem:[%s4085_s11 + $0x24] ss:$8 sps:$4 sm:$0xff]   ;;  %v2847_v42 = vld [vmem:[%s4085_s11 + $0x20] ss:$8 sps:$4 sm:$0xff]  }
  0x1c   :  { %453 = vmatpush1.bf16.msra.mxu1 %v2688_v13  ;;  %701 = vmatprep.subr.bf16.mxu0 %v2750_v53  ;;  %v3391_v13 = vsub.s32 0, %v3388_v12  ;;  %v2855_v43 = vld [vmem:[%s4085_s11 + $0x34] ss:$8 sps:$4 sm:$0xff]   ;;  %v2853_v44 = vld [vmem:[%s4085_s11 + $0x30] ss:$8 sps:$4 sm:$0xff]  }
  0x1d   :  { %454 = vmatprep.subr.bf16.mxu1 %v2693_v14  ;;  %v169_v14 = vld [vmem:[%s4083_s5] sm:$0x3]  ;;  %v2861_v45 = vld [vmem:[%s4085_s11 + $0x44] ss:$8 sps:$4 sm:$0xff]   ;;  %v2867_v47 = vld [vmem:[%s4085_s11 + $0x54] ss:$8 sps:$4 sm:$0xff]  }
  0x1e   :  { %v2859_v46 = vld [vmem:[%s4085_s11 + $0x40] ss:$8 sps:$4 sm:$0xff]   ;;  %v2865_v48 = vld [vmem:[%s4085_s11 + $0x50] ss:$8 sps:$4 sm:$0xff]   ;;  %v2873_v49 = vld [vmem:[%s4085_s11 + $0x64] ss:$8 sps:$4 sm:$0xff]  }
  0x1f   :  { %702 = vmatpush1.bf16.msra.mxu0 %v2748_v54  ;;  %v2871_v50 = vld [vmem:[%s4085_s11 + $0x60] ss:$8 sps:$4 sm:$0xff]   ;;  %v2879_v51 = vld [vmem:[%s4085_s11 + $0x74] ss:$8 sps:$4 sm:$0xff]   ;;  %v2877_v52 = vld [vmem:[%s4085_s11 + $0x70] ss:$8 sps:$4 sm:$0xff]  }
  0x20   :  { %455 = vmatpush1.bf16.msra.mxu1 %v2691_v15  ;;  %703 = vmatprep.subr.bf16.mxu0 %v2753_v55  ;;  %v3397_v15 = vsub.s32 1, %v3388_v12  ;;  %v2885_v53 = vld [vmem:[%s4085_s11 + $0x84] ss:$8 sps:$4 sm:$0xff]   ;;  %v2883_v54 = vld [vmem:[%s4085_s11 + $0x80] ss:$8 sps:$4 sm:$0xff]  }
  0x21   :  { %456 = vmatprep.subr.bf16.mxu1 %v2696_v16  ;;  %v174_v16 = vrot.slane %v169_v14, %v3391_v13  ;;  %v2891_v55 = vld [vmem:[%s4085_s11 + $0x94] ss:$8 sps:$4 sm:$0xff]  }
  0x23   :  { %704 = vmatpush1.bf16.msra.mxu0 %v2751_v56  ;;  %v2889_v56 = vld [vmem:[%s4085_s11 + $0x90] ss:$8 sps:$4 sm:$0xff]  }
  0x24   :  { %457 = vmatpush1.bf16.msra.mxu1 %v2694_v17  ;;  %705 = vmatprep.subr.bf16.mxu0 %v2756_v57  ;;  %v178_v17 = vrot.slane %v169_v14, %v3397_v15  ;;  %v2897_v57 = vld [vmem:[%s4085_s11 + $0xa4] ss:$8 sps:$4 sm:$0xff]  }
  0x25   :  { %458 = vmatprep.subr.bf16.mxu1 %v2699_v18 }
  0x27   :  { %706 = vmatpush1.bf16.msra.mxu0 %v2754_v58  ;;  %v2895_v58 = vld [vmem:[%s4085_s11 + $0xa0] ss:$8 sps:$4 sm:$0xff]  }
  0x28   :  { %459 = vmatpush1.bf16.msra.mxu1 %v2697_v19  ;;  %707 = vmatprep.subr.bf16.mxu0 %v2759_v59  ;;  %v2903_v59 = vld [vmem:[%s4085_s11 + $0xb4] ss:$8 sps:$4 sm:$0xff]  }
  0x29   :  { %460 = vmatprep.subr.bf16.mxu1 %v2702_v20 }
  0x2b   :  { %708 = vmatpush1.bf16.msra.mxu0 %v2757_v60  ;;  %v2901_v60 = vld [vmem:[%s4085_s11 + $0xb0] ss:$8 sps:$4 sm:$0xff]  }
  0x2c   :  { %461 = vmatpush1.bf16.msra.mxu1 %v2700_v21  ;;  %709 = vmatprep.subr.bf16.mxu0 %v2762_v61  ;;  %v3495_v61 = vld [vmem:[%s4086_s3] sm:$0x3] }
  0x2d   :  { %462 = vmatprep.subr.bf16.mxu1 %v2705_v22 }
  0x2f   :  { %710 = vmatpush1.bf16.msra.mxu0 %v2760_v62  ;;  %v2909_v62 = vld [vmem:[%s4085_s11 + $0xc4] ss:$8 sps:$4 sm:$0xff]  }
  0x30   :  { %463 = vmatpush1.bf16.msra.mxu1 %v2703_v23  ;;  %711 = vmatprep.subr.bf16.mxu0 %v2765_v63  ;;  %v274_v63 = vld [vmem:[%s4087_s7] sm:$0x3] }
  0x31   :  { %464 = vmatprep.subr.bf16.mxu1 %v2708_v24 }
  0x33   :  { %712 = vmatpush1.bf16.msra.mxu0 %v2763_v0  ;;  %v75_v0 = vrot.slane %v3495_v61, %v3397_v15 }
  0x34   :  { %465 = vmatpush1.bf16.msra.mxu1 %v2706_v25  ;;  %713 = vmatprep.subr.bf16.mxu0 %v2768_v1  ;;  %v2907_v1 = vld [vmem:[%s4085_s11 + $0xc0] ss:$8 sps:$4 sm:$0xff]  }
  0x35   :  { %466 = vmatprep.subr.bf16.mxu1 %v2711_v26 }
  0x37   :  { %714 = vmatpush1.bf16.msra.mxu0 %v2766_v2  ;;  %v2915_v2 = vld [vmem:[%s4085_s11 + $0xd4] ss:$8 sps:$4 sm:$0xff]  }
  0x38   :  { %467 = vmatpush1.bf16.msra.mxu1 %v2709_v27  ;;  %715 = vmatprep.subr.bf16.mxu0 %v2771_v3  ;;  %v279_v3 = vrot.slane %v274_v63, %v3391_v13 }
  0x39   :  { %468 = vmatprep.subr.bf16.mxu1 %v2714_v28  ;;  %v2783_v28 = vld [vmem:[%s4081_s8 + $0xe4] ss:$8 sps:$4 sm:$0xff]  }
  0x3b   :  { %716 = vmatpush1.bf16.msra.mxu0 %v2769_v4  ;;  %v283_v4 = vrot.slane %v274_v63, %v3397_v15  ;;  %v2852_v63 = vld [vmem:[%s4085_s11 + $0x124] ss:$8 sps:$4 sm:$0xff]  }
  0x3c   :  { %469 = vmatpush1.bf16.msra.mxu1 %v2712_v29  ;;  %717 = vmatprep.subr.bf16.mxu0 %v2774_v5  ;;  %v2781_v29 = vld [vmem:[%s4081_s8 + $0xe0] ss:$8 sps:$4 sm:$0xff]  }
  0x3d   :  { %470 = vmatprep.subr.bf16.mxu1 %v2717_v30  ;;  %v2786_v30 = vld [vmem:[%s4081_s8 + $0xf4] ss:$8 sps:$4 sm:$0xff]  }
  0x3f   :  { %718 = vmatpush1.bf16.msra.mxu0 %v2772_v6  ;;  %v2913_v6 = vld [vmem:[%s4085_s11 + $0xd0] ss:$8 sps:$4 sm:$0xff]  }
  0x40   :  { %471 = vmatpush1.bf16.msra.mxu1 %v2715_v31  ;;  %719 = vmatprep.subr.bf16.mxu0 %v2777_v7  ;;  %v2784_v31 = vld [vmem:[%s4081_s8 + $0xf0] ss:$8 sps:$4 sm:$0xff]   ;;  %v2921_v7 = vld [vmem:[%s4085_s11 + $0xe4] ss:$8 sps:$4 sm:$0xff]  }
  0x41   :  { %472 = vmatprep.subr.bf16.mxu1 %v2720_v32  ;;  %v2789_v32 = vld [vmem:[%s4084_s10 + $0x4] ss:$8 sps:$4 sm:$0xff]  }
  0x43   :  { %720 = vmatpush1.bf16.msra.mxu0 %v2775_v8 }
  0x44   :  { %473 = vmatpush1.bf16.msra.mxu1 %v2718_v33  ;;  %721 = vmatprep.subr.bf16.mxu0 %v2780_v9 }
  0x45   :  { %474 = vmatprep.subr.bf16.mxu1 %v2723_v34 }
  0x47   :  { %722 = vmatpush1.bf16.msra.mxu0 %v2778_v10 }
  0x48   :  { %475 = vmatpush1.bf16.msra.mxu1 %v2721_v35  ;;  %723 = vmatprep.subr.bf16.mxu0 %v2783_v28  ;;  %v2793_v28 = vld [vmem:[%s4084_s10 + $0x20] ss:$8 sps:$4 sm:$0xff]  }
  0x49   :  { %476 = vmatprep.subr.bf16.mxu1 %v2726_v36 }
  0x4b   :  { %724 = vmatpush1.bf16.msra.mxu0 %v2781_v29  ;;  %v2798_v29 = vld [vmem:[%s4084_s10 + $0x34] ss:$8 sps:$4 sm:$0xff]  }
  0x4c   :  { %477 = vmatpush1.bf16.msra.mxu1 %v2724_v37  ;;  %725 = vmatprep.subr.bf16.mxu0 %v2786_v30  ;;  %v2835_v37 = vld [vmem:[%s4085_s11] ss:$8 sps:$4 sm:$0xff]   ;;  %v2796_v30 = vld [vmem:[%s4084_s10 + $0x30] ss:$8 sps:$4 sm:$0xff]  }
  0x4d   :  { %962 = vmatprep.subr.bf16.mxu1 %v2837_v38  ;;  %v2810_v38 = vld [vmem:[%s4084_s10 + $0x74] ss:$8 sps:$4 sm:$0xff]  }
  0x4f   :  { %726 = vmatpush1.bf16.msra.mxu0 %v2784_v31  ;;  %v2801_v31 = vld [vmem:[%s4084_s10 + $0x44] ss:$8 sps:$4 sm:$0xff]  }
  0x50   :  { %1163 = vmatprep.subr.bf16.mxu0 %v2789_v32  ;;  %v2799_v32 = vld [vmem:[%s4084_s10 + $0x40] ss:$8 sps:$4 sm:$0xff]  }
  0xe2   :  { %v231_v18 = vpop.f32.mrb[0].mxu1 }
  0xe3   :  { %v232_v19 = vadd.f32 %v231_v18, %v174_v16  ;;  %v233_v20 = vpop.f32.mrb[1].mxu1 }
  0xe4   :  { %v234_v21 = vadd.f32 %v233_v20, %v178_v17  ;;  %v235_v22 = vpop.f32.mrb[2].mxu1  ;;  %v2919_v17 = vld [vmem:[%s4085_s11 + $0xe0] ss:$8 sps:$4 sm:$0xff]  }
  0xe5   :  { %v238_v23 = vmax.f32 %v232_v19, 0.0  ;;  %v236_v24 = vpop.f32.mrb[3].mxu1  ;;  %v3416_v33 = vpop.f32.mrb[0].mxu0  ;;  %v2787_v22 = vld [vmem:[%s4084_s10] ss:$8 sps:$4 sm:$0xff]  }
  0xe6   :  { %v239_v25 = vmax.f32 %v234_v21, 0.0  ;;  %v3418_v34 = vpop.f32.mrb[1].mxu0 }
  0xe7   :  { %v240_v27 = vpack.c.bf16 %v238_v23, %v238_v23  ;;  %v160_v35 = vpop.f32.mrb[2].mxu0  ;;  %v159_v5 = vadd.f32 %v3418_v34, %v75_v0  ;;  %v2804_v34 = vld [vmem:[%s4084_s10 + $0x54] ss:$8 sps:$4 sm:$0xff]   ;;  %v2850_v0 = vld [vmem:[%s4085_s11 + $0x120] ss:$8 sps:$4 sm:$0xff]  }
  0xe8   :  { %v241_v26 = vpack.c.bf16 %v239_v25, %v239_v25  ;;  %v161_v36 = vpop.f32.mrb[3].mxu0  ;;  %v2792_v25 = vld [vmem:[%s4084_s10 + $0x14] ss:$8 sps:$4 sm:$0xff]   ;;  %v2802_v35 = vld [vmem:[%s4084_s10 + $0x50] ss:$8 sps:$4 sm:$0xff]  }
  0xe9   :  { %v164_v16 = vmax.f32 %v159_v5, 0.0  ;;  %v2807_v36 = vld [vmem:[%s4084_s10 + $0x64] ss:$8 sps:$4 sm:$0xff]   ;;  %v2870_v5 = vld [vmem:[%s4085_s11 + $0x154] ss:$8 sps:$4 sm:$0xff]  }
  0xea   :  { %478 = vmatprep.mubr.bf16.mxu1 %v241_v26  ;;  %v2790_v26 = vld [vmem:[%s4084_s10 + $0x10] ss:$8 sps:$4 sm:$0xff]  }
  0xeb   :  { %479 = vmatmul.mubr.bf16.vlgmr.msra.gmra.mrb[4].mxu1 %v240_v27  ;;  %v3526_v23 = vpack.c.bf16 %v164_v16, %v164_v16  ;;  %v2795_v27 = vld [vmem:[%s4084_s10 + $0x24] ss:$8 sps:$4 sm:$0xff]  }
  0xec   :  { %963 = vmatpush1.bf16.msra.mxu1 %v2835_v37  ;;  %v2805_v37 = vld [vmem:[%s4084_s10 + $0x60] ss:$8 sps:$4 sm:$0xff]   ;;  %v2888_v16 = vld [vmem:[%s4085_s11 + $0x184] ss:$8 sps:$4 sm:$0xff]  }
  0xed   :  { %964 = vmatprep.subr.bf16.mxu1 %v2843_v39  ;;  %v2808_v39 = vld [vmem:[%s4084_s10 + $0x70] ss:$8 sps:$4 sm:$0xff]  }
  0xf0   :  { %965 = vmatpush1.bf16.msra.mxu1 %v2841_v40  ;;  %v2813_v40 = vld [vmem:[%s4084_s10 + $0x84] ss:$8 sps:$4 sm:$0xff]  }
  0xf1   :  { %966 = vmatprep.subr.bf16.mxu1 %v2849_v41  ;;  %v2811_v41 = vld [vmem:[%s4084_s10 + $0x80] ss:$8 sps:$4 sm:$0xff]  }
  0xf4   :  { %967 = vmatpush1.bf16.msra.mxu1 %v2847_v42  ;;  %v2816_v42 = vld [vmem:[%s4084_s10 + $0x94] ss:$8 sps:$4 sm:$0xff]  }
  0xf5   :  { %968 = vmatprep.subr.bf16.mxu1 %v2855_v43  ;;  %v2814_v43 = vld [vmem:[%s4084_s10 + $0x90] ss:$8 sps:$4 sm:$0xff]  }
  0xf8   :  { %969 = vmatpush1.bf16.msra.mxu1 %v2853_v44  ;;  %v2819_v44 = vld [vmem:[%s4084_s10 + $0xa4] ss:$8 sps:$4 sm:$0xff]  }
  0xf9   :  { %970 = vmatprep.subr.bf16.mxu1 %v2861_v45  ;;  %v2817_v45 = vld [vmem:[%s4084_s10 + $0xa0] ss:$8 sps:$4 sm:$0xff]  }
  0xfc   :  { %971 = vmatpush1.bf16.msra.mxu1 %v2859_v46  ;;  %v2822_v46 = vld [vmem:[%s4084_s10 + $0xb4] ss:$8 sps:$4 sm:$0xff]  }
  0xfd   :  { %972 = vmatprep.subr.bf16.mxu1 %v2867_v47  ;;  %v2820_v47 = vld [vmem:[%s4084_s10 + $0xb0] ss:$8 sps:$4 sm:$0xff]  }
 0x100   :  { %973 = vmatpush1.bf16.msra.mxu1 %v2865_v48  ;;  %v2825_v48 = vld [vmem:[%s4084_s10 + $0xc4] ss:$8 sps:$4 sm:$0xff]  }
 0x101   :  { %974 = vmatprep.subr.bf16.mxu1 %v2873_v49  ;;  %v2823_v49 = vld [vmem:[%s4084_s10 + $0xc0] ss:$8 sps:$4 sm:$0xff]  }
 0x104   :  { %975 = vmatpush1.bf16.msra.mxu1 %v2871_v50  ;;  %v2828_v50 = vld [vmem:[%s4084_s10 + $0xd4] ss:$8 sps:$4 sm:$0xff]  }
 0x105   :  { %976 = vmatprep.subr.bf16.mxu1 %v2879_v51  ;;  %v71_v51 = vrot.slane %v3495_v61, %v3391_v13  ;;  %v2846_v61 = vld [vmem:[%s4085_s11 + $0x114] ss:$8 sps:$4 sm:$0xff]  }
 0x108   :  { %977 = vmatpush1.bf16.msra.mxu1 %v2877_v52  ;;  %v2826_v52 = vld [vmem:[%s4084_s10 + $0xd0] ss:$8 sps:$4 sm:$0xff]  }
 0x109   :  { %978 = vmatprep.subr.bf16.mxu1 %v2885_v53  ;;  %v2831_v53 = vld [vmem:[%s4084_s10 + $0xe4] ss:$8 sps:$4 sm:$0xff]  }
 0x10c   :  { %979 = vmatpush1.bf16.msra.mxu1 %v2883_v54  ;;  %v157_v54 = vadd.f32 %v3416_v33, %v71_v51  ;;  %v2840_v33 = vld [vmem:[%s4085_s11 + $0x104] ss:$8 sps:$4 sm:$0xff]   ;;  %v2942_v51 = vld [vmem:[%s4088_s13 + $0x34] ss:$8 sps:$4 sm:$0xff]  }
 0x10d   :  { %980 = vmatprep.subr.bf16.mxu1 %v2891_v55  ;;  %v2829_v55 = vld [vmem:[%s4084_s10 + $0xe0] ss:$8 sps:$4 sm:$0xff]  }
 0x110   :  { %981 = vmatpush1.bf16.msra.mxu1 %v2889_v56  ;;  %v2834_v56 = vld [vmem:[%s4084_s10 + $0xf4] ss:$8 sps:$4 sm:$0xff]  }
 0x111   :  { %982 = vmatprep.subr.bf16.mxu1 %v2897_v57  ;;  %v163_v57 = vmax.f32 %v157_v54, 0.0  ;;  %v2943_v54 = vld [vmem:[%s4088_s13 + $0x40] ss:$8 sps:$4 sm:$0xff]  }
 0x114   :  { %983 = vmatpush1.bf16.msra.mxu1 %v2895_v58  ;;  %v2832_v58 = vld [vmem:[%s4084_s10 + $0xf0] ss:$8 sps:$4 sm:$0xff]  }
 0x115   :  { %984 = vmatprep.subr.bf16.mxu1 %v2903_v59  ;;  %v3625_v59 = vpack.c.bf16 %v163_v57, %v163_v57  ;;  %v2951_v57 = vld [vmem:[%s4088_s13 + $0x64] ss:$8 sps:$4 sm:$0xff]  }
 0x118   :  { %985 = vmatpush1.bf16.msra.mxu1 %v2901_v60  ;;  %v2838_v60 = vld [vmem:[%s4085_s11 + $0x100] ss:$8 sps:$4 sm:$0xff]  }
 0x119   :  { %986 = vmatprep.subr.bf16.mxu1 %v2909_v62  ;;  %v2844_v62 = vld [vmem:[%s4085_s11 + $0x110] ss:$8 sps:$4 sm:$0xff]  }
 0x11c   :  { %987 = vmatpush1.bf16.msra.mxu1 %v2907_v1  ;;  %v2858_v1 = vld [vmem:[%s4085_s11 + $0x134] ss:$8 sps:$4 sm:$0xff]  }
 0x11d   :  { %988 = vmatprep.subr.bf16.mxu1 %v2915_v2  ;;  %v2856_v2 = vld [vmem:[%s4085_s11 + $0x130] ss:$8 sps:$4 sm:$0xff]  }
 0x120   :  { %989 = vmatpush1.bf16.msra.mxu1 %v2913_v6  ;;  %v2868_v6 = vld [vmem:[%s4085_s11 + $0x150] ss:$8 sps:$4 sm:$0xff]  }
 0x121   :  { %990 = vmatprep.subr.bf16.mxu1 %v2921_v7  ;;  %v2876_v7 = vld [vmem:[%s4085_s11 + $0x164] ss:$8 sps:$4 sm:$0xff]  }
 0x124   :  { %991 = vmatpush1.bf16.msra.mxu1 %v2919_v17  ;;  %v2886_v17 = vld [vmem:[%s4085_s11 + $0x180] ss:$8 sps:$4 sm:$0xff]  }
 0x1be   :  { %v480_v8 = vpop.f32.mrb[4].mxu1 }
 0x1bf   :  { %v481_v9 = vadd.f32 %v480_v8, %v279_v3  ;;  %v482_v10 = vpop.f32.mrb[5].mxu1  ;;  %v2864_v3 = vld [vmem:[%s4085_s11 + $0x144] ss:$8 sps:$4 sm:$0xff]   ;;  %v2927_v8 = vld [vmem:[%s4085_s11 + $0xf4] ss:$8 sps:$4 sm:$0xff]  }
 0x1c0   :  { %v483_v11 = vadd.f32 %v482_v10, %v283_v4  ;;  %v484_v14 = vpop.f32.mrb[6].mxu1  ;;  %v2862_v4 = vld [vmem:[%s4085_s11 + $0x140] ss:$8 sps:$4 sm:$0xff]   ;;  %v2925_v10 = vld [vmem:[%s4085_s11 + $0xf0] ss:$8 sps:$4 sm:$0xff]   ;;  %992 = vmatprep.subr.bf16.mxu1 %v2927_v8 }
 0x1c1   :  { %v487_v18 = vmax.f32 %v481_v9, 0.0  ;;  %v485_v19 = vpop.f32.mrb[7].mxu1  ;;  %v2874_v9 = vld [vmem:[%s4085_s11 + $0x160] ss:$8 sps:$4 sm:$0xff]   ;;  %993 = vmatpush1.bf16.msra.mxu1 %v2925_v10  ;;  %v2880_v14 = vld [vmem:[%s4085_s11 + $0x170] ss:$8 sps:$4 sm:$0xff]  }
 0x1c2   :  { %v488_v20 = vmax.f32 %v483_v11, 0.0  ;;  %v2882_v11 = vld [vmem:[%s4085_s11 + $0x174] ss:$8 sps:$4 sm:$0xff]   ;;  %v2892_v19 = vld [vmem:[%s4085_s11 + $0x190] ss:$8 sps:$4 sm:$0xff]  }
 0x1c3   :  { %v489_v24 = vpack.c.bf16 %v487_v18, %v487_v18  ;;  %v2894_v18 = vld [vmem:[%s4085_s11 + $0x194] ss:$8 sps:$4 sm:$0xff]   ;;  %v2970_v8 = vld [vmem:[%s4088_s13 + $0xd0] ss:$8 sps:$4 sm:$0xff]  }
 0x1c4   :  { %v490_v21 = vpack.c.bf16 %v488_v20, %v488_v20  ;;  %v2900_v20 = vld [vmem:[%s4085_s11 + $0x1a4] ss:$8 sps:$4 sm:$0xff]  }
 0x1c6   :  { %727 = vmatprep.mubr.bf16.mxu0 %v490_v21  ;;  %v2898_v21 = vld [vmem:[%s4085_s11 + $0x1a0] ss:$8 sps:$4 sm:$0xff]  }
 0x1c7   :  { %728 = vmatmul.mubr.bf16.vlgmr.msra.gmra.mrb[4].mxu0 %v489_v24  ;;  %v2904_v24 = vld [vmem:[%s4085_s11 + $0x1b0] ss:$8 sps:$4 sm:$0xff]  }
 0x1c8   :  { %1164 = vmatpush1.bf16.msra.mxu0 %v2787_v22  ;;  %1195 = vmatprep.mubr.bf16.mxu0 %v3526_v23  ;;  %v2906_v22 = vld [vmem:[%s4085_s11 + $0x1b4] ss:$8 sps:$4 sm:$0xff]  }
 0x1c9   :  { %1165 = vmatprep.subr.bf16.mxu0 %v2792_v25  ;;  %v2912_v25 = vld [vmem:[%s4085_s11 + $0x1c4] ss:$8 sps:$4 sm:$0xff]  }
 0x1cc   :  { %1166 = vmatpush1.bf16.msra.mxu0 %v2790_v26  ;;  %v2910_v26 = vld [vmem:[%s4085_s11 + $0x1c0] ss:$8 sps:$4 sm:$0xff]  }
 0x1cd   :  { %1167 = vmatprep.subr.bf16.mxu0 %v2795_v27  ;;  %v2918_v27 = vld [vmem:[%s4085_s11 + $0x1d4] ss:$8 sps:$4 sm:$0xff]  }
 0x1d0   :  { %1168 = vmatpush1.bf16.msra.mxu0 %v2793_v28  ;;  %v2916_v28 = vld [vmem:[%s4085_s11 + $0x1d0] ss:$8 sps:$4 sm:$0xff]  }
 0x1d1   :  { %1169 = vmatprep.subr.bf16.mxu0 %v2798_v29  ;;  %v2924_v29 = vld [vmem:[%s4085_s11 + $0x1e4] ss:$8 sps:$4 sm:$0xff]  }
 0x1d4   :  { %1170 = vmatpush1.bf16.msra.mxu0 %v2796_v30  ;;  %v2922_v30 = vld [vmem:[%s4085_s11 + $0x1e0] ss:$8 sps:$4 sm:$0xff]  }
 0x1d5   :  { %1171 = vmatprep.subr.bf16.mxu0 %v2801_v31  ;;  %v2930_v31 = vld [vmem:[%s4085_s11 + $0x1f4] ss:$8 sps:$4 sm:$0xff]  }
 0x1d8   :  { %1172 = vmatpush1.bf16.msra.mxu0 %v2799_v32  ;;  %v2928_v32 = vld [vmem:[%s4085_s11 + $0x1f0] ss:$8 sps:$4 sm:$0xff]  }
 0x1d9   :  { %1173 = vmatprep.subr.bf16.mxu0 %v2804_v34  ;;  %v2933_v34 = vld [vmem:[%s4088_s13 + $0x4] ss:$8 sps:$4 sm:$0xff]  }
 0x1da   :  { %1426 = vmatprep.subr.bf16.mxu1 %v2933_v34 }
 0x1dc   :  { %1174 = vmatpush1.bf16.msra.mxu0 %v2802_v35  ;;  %v523_v35 = vld [vmem:[%s4089_s9] sm:$0x3] }
 0x1dd   :  { %1175 = vmatprep.subr.bf16.mxu0 %v2807_v36  ;;  %v528_v36 = vrot.slane %v523_v35, %v3391_v13 }
 0x1e0   :  { %1176 = vmatpush1.bf16.msra.mxu0 %v2805_v37  ;;  %v532_v37 = vrot.slane %v523_v35, %v3397_v15 }
 0x1e1   :  { %1177 = vmatprep.subr.bf16.mxu0 %v2810_v38 }
 0x1e4   :  { %1178 = vmatpush1.bf16.msra.mxu0 %v2808_v39 }
 0x1e5   :  { %1179 = vmatprep.subr.bf16.mxu0 %v2813_v40 }
 0x1e8   :  { %1180 = vmatpush1.bf16.msra.mxu0 %v2811_v41 }
 0x1e9   :  { %1181 = vmatprep.subr.bf16.mxu0 %v2816_v42 }
 0x1ec   :  { %1182 = vmatpush1.bf16.msra.mxu0 %v2814_v43 }
 0x1ed   :  { %1183 = vmatprep.subr.bf16.mxu0 %v2819_v44 }
 0x1f0   :  { %1184 = vmatpush1.bf16.msra.mxu0 %v2817_v45  ;;  %v2931_v45 = vld [vmem:[%s4088_s13] ss:$8 sps:$4 sm:$0xff]  }
 0x1f1   :  { %1185 = vmatprep.subr.bf16.mxu0 %v2822_v46 }
 0x1f4   :  { %1186 = vmatpush1.bf16.msra.mxu0 %v2820_v47  ;;  %v2936_v47 = vld [vmem:[%s4088_s13 + $0x14] ss:$8 sps:$4 sm:$0xff]  }
 0x1f5   :  { %1187 = vmatprep.subr.bf16.mxu0 %v2825_v48  ;;  %v2934_v48 = vld [vmem:[%s4088_s13 + $0x10] ss:$8 sps:$4 sm:$0xff]  }
 0x1f8   :  { %1188 = vmatpush1.bf16.msra.mxu0 %v2823_v49  ;;  %v2939_v49 = vld [vmem:[%s4088_s13 + $0x24] ss:$8 sps:$4 sm:$0xff]  }
 0x1f9   :  { %1189 = vmatprep.subr.bf16.mxu0 %v2828_v50  ;;  %v2937_v50 = vld [vmem:[%s4088_s13 + $0x20] ss:$8 sps:$4 sm:$0xff]  }
 0x1fc   :  { %1190 = vmatpush1.bf16.msra.mxu0 %v2826_v52  ;;  %v2940_v52 = vld [vmem:[%s4088_s13 + $0x30] ss:$8 sps:$4 sm:$0xff]  }
 0x1fd   :  { %1191 = vmatprep.subr.bf16.mxu0 %v2831_v53  ;;  %v2945_v53 = vld [vmem:[%s4088_s13 + $0x44] ss:$8 sps:$4 sm:$0xff]  }
 0x200   :  { %1192 = vmatpush1.bf16.msra.mxu0 %v2829_v55  ;;  %v2948_v55 = vld [vmem:[%s4088_s13 + $0x54] ss:$8 sps:$4 sm:$0xff]  }
 0x201   :  { %1193 = vmatprep.subr.bf16.mxu0 %v2834_v56  ;;  %v2946_v56 = vld [vmem:[%s4088_s13 + $0x50] ss:$8 sps:$4 sm:$0xff]  }
 0x204   :  { %1194 = vmatpush1.bf16.msra.mxu0 %v2832_v58  ;;  %v2949_v58 = vld [vmem:[%s4088_s13 + $0x60] ss:$8 sps:$4 sm:$0xff]  }
 0x205   :  { %1740 = vmatprep.subr.bf16.mxu0 %v2840_v33  ;;  %v2954_v33 = vld [vmem:[%s4088_s13 + $0x74] ss:$8 sps:$4 sm:$0xff]  }
 0x207   :  { %1196 = vmatmul.mubr.bf16.vlgmr.msra.gmra.mrb[8].mxu0 %v3625_v59 }
 0x208   :  { %1741 = vmatpush1.bf16.msra.mxu0 %v2838_v60  ;;  %v2952_v60 = vld [vmem:[%s4088_s13 + $0x70] ss:$8 sps:$4 sm:$0xff]  }
 0x209   :  { %1742 = vmatprep.subr.bf16.mxu0 %v2846_v61  ;;  %v2957_v61 = vld [vmem:[%s4088_s13 + $0x84] ss:$8 sps:$4 sm:$0xff]  }
 0x20c   :  { %1743 = vmatpush1.bf16.msra.mxu0 %v2844_v62  ;;  %v2955_v62 = vld [vmem:[%s4088_s13 + $0x80] ss:$8 sps:$4 sm:$0xff]  }
 0x20d   :  { %1744 = vmatprep.subr.bf16.mxu0 %v2852_v63  ;;  %v2960_v63 = vld [vmem:[%s4088_s13 + $0x94] ss:$8 sps:$4 sm:$0xff]  }
 0x210   :  { %1745 = vmatpush1.bf16.msra.mxu0 %v2850_v0  ;;  %v2958_v0 = vld [vmem:[%s4088_s13 + $0x90] ss:$8 sps:$4 sm:$0xff]  }
 0x211   :  { %1746 = vmatprep.subr.bf16.mxu0 %v2858_v1  ;;  %v2963_v1 = vld [vmem:[%s4088_s13 + $0xa4] ss:$8 sps:$4 sm:$0xff]  }
 0x214   :  { %1747 = vmatpush1.bf16.msra.mxu0 %v2856_v2  ;;  %v2961_v2 = vld [vmem:[%s4088_s13 + $0xa0] ss:$8 sps:$4 sm:$0xff]  }
 0x215   :  { %1748 = vmatprep.subr.bf16.mxu0 %v2864_v3  ;;  %v2966_v3 = vld [vmem:[%s4088_s13 + $0xb4] ss:$8 sps:$4 sm:$0xff]  }
 0x218   :  { %1749 = vmatpush1.bf16.msra.mxu0 %v2862_v4  ;;  %v2964_v4 = vld [vmem:[%s4088_s13 + $0xb0] ss:$8 sps:$4 sm:$0xff]  }
 0x219   :  { %1750 = vmatprep.subr.bf16.mxu0 %v2870_v5  ;;  %v2969_v5 = vld [vmem:[%s4088_s13 + $0xc4] ss:$8 sps:$4 sm:$0xff]  }
 0x21c   :  { %1751 = vmatpush1.bf16.msra.mxu0 %v2868_v6  ;;  %v2967_v6 = vld [vmem:[%s4088_s13 + $0xc0] ss:$8 sps:$4 sm:$0xff]  }
 0x21d   :  { %1752 = vmatprep.subr.bf16.mxu0 %v2876_v7  ;;  %v2972_v7 = vld [vmem:[%s4088_s13 + $0xd4] ss:$8 sps:$4 sm:$0xff]  }
 0x220   :  { %1753 = vmatpush1.bf16.msra.mxu0 %v2874_v9 }
 0x221   :  { %1754 = vmatprep.subr.bf16.mxu0 %v2882_v11 }
 0x224   :  { %1755 = vmatpush1.bf16.msra.mxu0 %v2880_v14 }
 0x225   :  { %1756 = vmatprep.subr.bf16.mxu0 %v2888_v16  ;;  %v2975_v16 = vld [vmem:[%s4088_s13 + $0xe4] ss:$8 sps:$4 sm:$0xff]  }
 0x228   :  { %1757 = vmatpush1.bf16.msra.mxu0 %v2886_v17  ;;  %v2973_v17 = vld [vmem:[%s4088_s13 + $0xe0] ss:$8 sps:$4 sm:$0xff]  }
 0x229   :  { %1758 = vmatprep.subr.bf16.mxu0 %v2894_v18  ;;  %v2978_v18 = vld [vmem:[%s4088_s13 + $0xf4] ss:$8 sps:$4 sm:$0xff]  }
 0x22c   :  { %1759 = vmatpush1.bf16.msra.mxu0 %v2892_v19  ;;  %v2976_v19 = vld [vmem:[%s4088_s13 + $0xf0] ss:$8 sps:$4 sm:$0xff]  }
 0x22d   :  { %1760 = vmatprep.subr.bf16.mxu0 %v2900_v20  ;;  %v2981_v20 = vld [vmem:[%s4084_s10 + $0x104] ss:$8 sps:$4 sm:$0xff]  }
 0x230   :  { %1761 = vmatpush1.bf16.msra.mxu0 %v2898_v21  ;;  %v1204_v21 = vld [vmem:[%s4090_s12] sm:$0x3] }
 0x231   :  { %1762 = vmatprep.subr.bf16.mxu0 %v2906_v22  ;;  %v1209_v22 = vrot.slane %v1204_v21, %v3391_v13 }
 0x234   :  { %1763 = vmatpush1.bf16.msra.mxu0 %v2904_v24 }
 0x235   :  { %1764 = vmatprep.subr.bf16.mxu0 %v2912_v25 }
 0x238   :  { %1765 = vmatpush1.bf16.msra.mxu0 %v2910_v26  ;;  %v1213_v26 = vrot.slane %v1204_v21, %v3397_v15  ;;  %v3042_v21 = vld [vmem:[%s4088_s13 + $0x150] ss:$8 sps:$4 sm:$0xff]  }
 0x239   :  { %1766 = vmatprep.subr.bf16.mxu0 %v2918_v27 }
 0x23c   :  { %1767 = vmatpush1.bf16.msra.mxu0 %v2916_v28 }
 0x23d   :  { %1768 = vmatprep.subr.bf16.mxu0 %v2924_v29 }
 0x240   :  { %1769 = vmatpush1.bf16.msra.mxu0 %v2922_v30 }
 0x241   :  { %1770 = vmatprep.subr.bf16.mxu0 %v2930_v31 }
 0x244   :  { %1771 = vmatpush1.bf16.msra.mxu0 %v2928_v32 }
 0x29a   :  { %v729_v38 = vpop.f32.mrb[4].mxu0 }
 0x29b   :  { %v730_v39 = vadd.f32 %v729_v38, %v528_v36  ;;  %v731_v40 = vpop.f32.mrb[5].mxu0 }
 0x29c   :  { %v732_v41 = vadd.f32 %v731_v40, %v532_v37  ;;  %v733_v42 = vpop.f32.mrb[6].mxu0 }
 0x29d   :  { %v734_v43 = vpop.f32.mrb[7].mxu0  ;;  %v736_v46 = vpack.c.bf16 %v730_v39, %v730_v39 }
 0x29e   :  { %v737_v44 = vpack.c.bf16 %v732_v41, %v732_v41  ;;  %v2979_v41 = vld [vmem:[%s4084_s10 + $0x100] ss:$8 sps:$4 sm:$0xff]   ;;  %v2984_v43 = vld [vmem:[%s4084_s10 + $0x114] ss:$8 sps:$4 sm:$0xff]  }
 0x2a0   :  { %994 = vmatprep.mubr.bf16.mxu1 %v737_v44  ;;  %1772 = vmatprep.mubr.bf16.mxu0 %v737_v44  ;;  %v2982_v44 = vld [vmem:[%s4084_s10 + $0x110] ss:$8 sps:$4 sm:$0xff]  }
 0x2a1   :  { %995 = vmatmul.mubr.bf16.vlgmr.msra.gmra.mrb[8].mxu1 %v736_v46  ;;  %1773 = vmatmul.mubr.bf16.vlgmr.msra.gmra.mrb[12].mxu0 %v736_v46  ;;  %v2985_v46 = vld [vmem:[%s4084_s10 + $0x120] ss:$8 sps:$4 sm:$0xff]  }
 0x2a2   :  { %1427 = vmatpush1.bf16.msra.mxu1 %v2931_v45  ;;  %v2987_v45 = vld [vmem:[%s4084_s10 + $0x124] ss:$8 sps:$4 sm:$0xff]  }
 0x2a3   :  { %1428 = vmatprep.subr.bf16.mxu1 %v2936_v47  ;;  %v2990_v47 = vld [vmem:[%s4084_s10 + $0x134] ss:$8 sps:$4 sm:$0xff]  }
 0x2a6   :  { %1429 = vmatpush1.bf16.msra.mxu1 %v2934_v48  ;;  %v2993_v48 = vld [vmem:[%s4084_s10 + $0x144] ss:$8 sps:$4 sm:$0xff]  }
 0x2a7   :  { %1430 = vmatprep.subr.bf16.mxu1 %v2939_v49  ;;  %v2991_v49 = vld [vmem:[%s4084_s10 + $0x140] ss:$8 sps:$4 sm:$0xff]  }
 0x2aa   :  { %1431 = vmatpush1.bf16.msra.mxu1 %v2937_v50  ;;  %v2996_v50 = vld [vmem:[%s4084_s10 + $0x154] ss:$8 sps:$4 sm:$0xff]  }
 0x2ab   :  { %1432 = vmatprep.subr.bf16.mxu1 %v2942_v51  ;;  %v2994_v51 = vld [vmem:[%s4084_s10 + $0x150] ss:$8 sps:$4 sm:$0xff]  }
 0x2ae   :  { %1433 = vmatpush1.bf16.msra.mxu1 %v2940_v52  ;;  %v2999_v52 = vld [vmem:[%s4084_s10 + $0x164] ss:$8 sps:$4 sm:$0xff]  }
 0x2af   :  { %1434 = vmatprep.subr.bf16.mxu1 %v2945_v53  ;;  %v2997_v53 = vld [vmem:[%s4084_s10 + $0x160] ss:$8 sps:$4 sm:$0xff]  }
 0x2b2   :  { %1435 = vmatpush1.bf16.msra.mxu1 %v2943_v54  ;;  %v3002_v54 = vld [vmem:[%s4084_s10 + $0x174] ss:$8 sps:$4 sm:$0xff]  }
 0x2b3   :  { %1436 = vmatprep.subr.bf16.mxu1 %v2948_v55  ;;  %v3000_v55 = vld [vmem:[%s4084_s10 + $0x170] ss:$8 sps:$4 sm:$0xff]  }
 0x2b6   :  { %1437 = vmatpush1.bf16.msra.mxu1 %v2946_v56  ;;  %v3005_v56 = vld [vmem:[%s4084_s10 + $0x184] ss:$8 sps:$4 sm:$0xff]  }
 0x2b7   :  { %1438 = vmatprep.subr.bf16.mxu1 %v2951_v57  ;;  %v3003_v57 = vld [vmem:[%s4084_s10 + $0x180] ss:$8 sps:$4 sm:$0xff]  }
 0x2ba   :  { %1439 = vmatpush1.bf16.msra.mxu1 %v2949_v58  ;;  %v3008_v58 = vld [vmem:[%s4084_s10 + $0x194] ss:$8 sps:$4 sm:$0xff]  }
 0x2bb   :  { %1440 = vmatprep.subr.bf16.mxu1 %v2954_v33  ;;  %v3006_v33 = vld [vmem:[%s4084_s10 + $0x190] ss:$8 sps:$4 sm:$0xff]  }
 0x2be   :  { %1441 = vmatpush1.bf16.msra.mxu1 %v2952_v60  ;;  %v3011_v60 = vld [vmem:[%s4084_s10 + $0x1a4] ss:$8 sps:$4 sm:$0xff]  }
 0x2bf   :  { %1442 = vmatprep.subr.bf16.mxu1 %v2957_v61  ;;  %v3009_v61 = vld [vmem:[%s4084_s10 + $0x1a0] ss:$8 sps:$4 sm:$0xff]  }
 0x2c2   :  { %1443 = vmatpush1.bf16.msra.mxu1 %v2955_v62  ;;  %v3014_v62 = vld [vmem:[%s4084_s10 + $0x1b4] ss:$8 sps:$4 sm:$0xff]  }
 0x2c3   :  { %1444 = vmatprep.subr.bf16.mxu1 %v2960_v63  ;;  %v3012_v63 = vld [vmem:[%s4084_s10 + $0x1b0] ss:$8 sps:$4 sm:$0xff]  }
 0x2c6   :  { %1445 = vmatpush1.bf16.msra.mxu1 %v2958_v0  ;;  %v3017_v0 = vld [vmem:[%s4084_s10 + $0x1c4] ss:$8 sps:$4 sm:$0xff]  }
 0x2c7   :  { %1446 = vmatprep.subr.bf16.mxu1 %v2963_v1  ;;  %v3015_v1 = vld [vmem:[%s4084_s10 + $0x1c0] ss:$8 sps:$4 sm:$0xff]  }
 0x2ca   :  { %1447 = vmatpush1.bf16.msra.mxu1 %v2961_v2  ;;  %v3020_v2 = vld [vmem:[%s4084_s10 + $0x1d4] ss:$8 sps:$4 sm:$0xff]  }
 0x2cb   :  { %1448 = vmatprep.subr.bf16.mxu1 %v2966_v3  ;;  %v3018_v3 = vld [vmem:[%s4084_s10 + $0x1d0] ss:$8 sps:$4 sm:$0xff]  }
 0x2ce   :  { %1449 = vmatpush1.bf16.msra.mxu1 %v2964_v4  ;;  %v3023_v4 = vld [vmem:[%s4084_s10 + $0x1e4] ss:$8 sps:$4 sm:$0xff]  }
 0x2cf   :  { %1450 = vmatprep.subr.bf16.mxu1 %v2969_v5  ;;  %v3021_v5 = vld [vmem:[%s4084_s10 + $0x1e0] ss:$8 sps:$4 sm:$0xff]  }
 0x2d2   :  { %1451 = vmatpush1.bf16.msra.mxu1 %v2967_v6  ;;  %v3026_v6 = vld [vmem:[%s4084_s10 + $0x1f4] ss:$8 sps:$4 sm:$0xff]  }
 0x2d3   :  { %1452 = vmatprep.subr.bf16.mxu1 %v2972_v7  ;;  %v3024_v7 = vld [vmem:[%s4084_s10 + $0x1f0] ss:$8 sps:$4 sm:$0xff]  }
 0x2d6   :  { %1453 = vmatpush1.bf16.msra.mxu1 %v2970_v8  ;;  %v3027_v8 = vld [vmem:[%s4088_s13 + $0x100] ss:$8 sps:$4 sm:$0xff]  }
 0x2d7   :  { %1454 = vmatprep.subr.bf16.mxu1 %v2975_v16  ;;  %v3038_v16 = vld [vmem:[%s4088_s13 + $0x134] ss:$8 sps:$4 sm:$0xff]  }
 0x2da   :  { %v1197_v9 = vpop.f32.mrb[8].mxu0  ;;  %1455 = vmatpush1.bf16.msra.mxu1 %v2973_v17  ;;  %v3036_v17 = vld [vmem:[%s4088_s13 + $0x130] ss:$8 sps:$4 sm:$0xff]  }
 0x2db   :  { %v1199_v10 = vpop.f32.mrb[9].mxu0  ;;  %1456 = vmatprep.subr.bf16.mxu1 %v2978_v18  ;;  %v3041_v18 = vld [vmem:[%s4088_s13 + $0x144] ss:$8 sps:$4 sm:$0xff]  }
 0x2dc   :  { %v1201_v11 = vpop.f32.mrb[10].mxu0 }
 0x2dd   :  { %v1202_v14 = vpop.f32.mrb[11].mxu0  ;;  %v3030_v11 = vld [vmem:[%s4088_s13 + $0x110] ss:$8 sps:$4 sm:$0xff]  }
 0x2de   :  { %1457 = vmatpush1.bf16.msra.mxu1 %v2976_v19  ;;  %v3033_v14 = vld [vmem:[%s4088_s13 + $0x120] ss:$8 sps:$4 sm:$0xff]  }
 0x2df   :  { %1941 = vmatprep.subr.bf16.mxu1 %v2981_v20  ;;  %v3039_v19 = vld [vmem:[%s4088_s13 + $0x140] ss:$8 sps:$4 sm:$0xff]   ;;  %v3044_v20 = vld [vmem:[%s4088_s13 + $0x154] ss:$8 sps:$4 sm:$0xff]  }
 0x374   :  { %v996_v24 = vpop.f32.mrb[8].mxu1  ;;  %v3835_v25 = vpop.f32.mrb[12].mxu0 }
 0x375   :  { %v1198_v27 = vadd.f32 %v1197_v9, %v996_v24  ;;  %v998_v28 = vpop.f32.mrb[9].mxu1  ;;  %v3838_v29 = vpop.f32.mrb[13].mxu0  ;;  %v3029_v9 = vld [vmem:[%s4088_s13 + $0x104] ss:$8 sps:$4 sm:$0xff]   ;;  %v3045_v24 = vld [vmem:[%s4088_s13 + $0x160] ss:$8 sps:$4 sm:$0xff]  }
 0x376   :  { %v1200_v30 = vadd.f32 %v1199_v10, %v998_v28  ;;  %v1000_v31 = vpop.f32.mrb[10].mxu1  ;;  %v1778_v32 = vpop.f32.mrb[14].mxu0  ;;  %v3032_v10 = vld [vmem:[%s4088_s13 + $0x114] ss:$8 sps:$4 sm:$0xff]   ;;  %2207 = vmatprep.subr.bf16.mxu0 %v3029_v9  ;;  %v3053_v28 = vld [vmem:[%s4088_s13 + $0x184] ss:$8 sps:$4 sm:$0xff]  }
 0x377   :  { %v1216_v34 = vadd.f32 %v1209_v22, %v1198_v27  ;;  %v1001_v35 = vpop.f32.mrb[11].mxu1  ;;  %v1779_v36 = vpop.f32.mrb[15].mxu0  ;;  %2208 = vmatpush1.bf16.msra.mxu0 %v3027_v8  ;;  %v3047_v22 = vld [vmem:[%s4088_s13 + $0x164] ss:$8 sps:$4 sm:$0xff]   ;;  %v3048_v27 = vld [vmem:[%s4088_s13 + $0x170] ss:$8 sps:$4 sm:$0xff]  }
 0x378   :  { %v1217_v37 = vadd.f32 %v1213_v26, %v1200_v30  ;;  %2209 = vmatprep.subr.bf16.mxu0 %v3032_v10  ;;  %v3050_v26 = vld [vmem:[%s4088_s13 + $0x174] ss:$8 sps:$4 sm:$0xff]   ;;  %v3051_v30 = vld [vmem:[%s4088_s13 + $0x180] ss:$8 sps:$4 sm:$0xff]   ;;  %v3054_v32 = vld [vmem:[%s4088_s13 + $0x190] ss:$8 sps:$4 sm:$0xff]  }
 0x379   :  { %v1218_v38 = vmax.f32 %v1216_v34, 0.0  ;;  %v3056_v31 = vld [vmem:[%s4088_s13 + $0x194] ss:$8 sps:$4 sm:$0xff]   ;;  %v3059_v34 = vld [vmem:[%s4088_s13 + $0x1a4] ss:$8 sps:$4 sm:$0xff]  }
 0x37a   :  { %v1219_v39 = vmax.f32 %v1217_v37, 0.0  ;;  %v3057_v35 = vld [vmem:[%s4088_s13 + $0x1a0] ss:$8 sps:$4 sm:$0xff]   ;;  %v3062_v36 = vld [vmem:[%s4088_s13 + $0x1b4] ss:$8 sps:$4 sm:$0xff]  }
 0x37b   :  { %v1220_v42 = vpack.c.bf16 %v1218_v38, %v1218_v38  ;;  %2210 = vmatpush1.bf16.msra.mxu0 %v3030_v11  ;;  %v3060_v37 = vld [vmem:[%s4088_s13 + $0x1b0] ss:$8 sps:$4 sm:$0xff]   ;;  %v3065_v38 = vld [vmem:[%s4088_s13 + $0x1c4] ss:$8 sps:$4 sm:$0xff]  }
 0x37c   :  { %v1221_v40 = vpack.c.bf16 %v1219_v39, %v1219_v39  ;;  %v3063_v39 = vld [vmem:[%s4088_s13 + $0x1c0] ss:$8 sps:$4 sm:$0xff]  }
 0x37e   :  { %1458 = vmatprep.mubr.bf16.mxu1 %v1221_v40  ;;  %v3068_v40 = vld [vmem:[%s4088_s13 + $0x1d4] ss:$8 sps:$4 sm:$0xff]  }
 0x37f   :  { %1459 = vmatmul.mubr.bf16.vlgmr.msra.gmra.mrb[12].mxu1 %v1220_v42  ;;  %v3071_v42 = vld [vmem:[%s4088_s13 + $0x1e4] ss:$8 sps:$4 sm:$0xff]  }
 0x380   :  { %1942 = vmatpush1.bf16.msra.mxu1 %v2979_v41  ;;  %1973 = vmatprep.mubr.bf16.mxu1 %v3526_v23  ;;  %v2988_v23 = vld [vmem:[%s4084_s10 + $0x130] ss:$8 sps:$4 sm:$0xff]  }
 0x381   :  { %1943 = vmatprep.subr.bf16.mxu1 %v2984_v43  ;;  %v3066_v41 = vld [vmem:[%s4088_s13 + $0x1d0] ss:$8 sps:$4 sm:$0xff]   ;;  %v3069_v43 = vld [vmem:[%s4088_s13 + $0x1e0] ss:$8 sps:$4 sm:$0xff]  }
 0x384   :  { %1944 = vmatpush1.bf16.msra.mxu1 %v2982_v44  ;;  %v3074_v44 = vld [vmem:[%s4088_s13 + $0x1f4] ss:$8 sps:$4 sm:$0xff]  }
 0x385   :  { %1945 = vmatprep.subr.bf16.mxu1 %v2987_v45  ;;  %v3072_v45 = vld [vmem:[%s4088_s13 + $0x1f0] ss:$8 sps:$4 sm:$0xff]  }
 0x388   :  { %1946 = vmatpush1.bf16.msra.mxu1 %v2985_v46  ;;  %v1469_v46 = vld [vmem:[%s4091_s15] sm:$0x3] }
 0x389   :  { %1947 = vmatprep.subr.bf16.mxu1 %v2990_v47  ;;  %v1470_v47 = vunpack.c.l.bf16 %v1469_v46 }
 0x38c   :  { %1948 = vmatpush1.bf16.msra.mxu1 %v2988_v23  ;;  %v1254_v23 = vld [vmem:[%s4092_s14] sm:$0x3] }
 0x38d   :  { %1949 = vmatprep.subr.bf16.mxu1 %v2993_v48  ;;  %v1478_v48 = vsub.s32 2, %v3388_v12 }
 0x390   :  { %1950 = vmatpush1.bf16.msra.mxu1 %v2991_v49  ;;  %v1259_v49 = vrot.slane %v1254_v23, %v3391_v13 }
 0x391   :  { %1951 = vmatprep.subr.bf16.mxu1 %v2996_v50  ;;  %v1475_v50 = vrot.slane %v1470_v47, %v3391_v13 }
 0x394   :  { %1952 = vmatpush1.bf16.msra.mxu1 %v2994_v51  ;;  %v1263_v51 = vrot.slane %v1254_v23, %v3397_v15 }
 0x395   :  { %1953 = vmatprep.subr.bf16.mxu1 %v2999_v52  ;;  %v1479_v52 = vrot.slane %v1470_v47, %v1478_v48 }
 0x398   :  { %1954 = vmatpush1.bf16.msra.mxu1 %v2997_v53 }
 0x399   :  { %1955 = vmatprep.subr.bf16.mxu1 %v3002_v54 }
 0x39c   :  { %1956 = vmatpush1.bf16.msra.mxu1 %v3000_v55  ;;  %v1485_v55 = vrot.slane %v1475_v50, %v3391_v13 }
 0x39d   :  { %1957 = vmatprep.subr.bf16.mxu1 %v3005_v56 }
 0x3a0   :  { %1958 = vmatpush1.bf16.msra.mxu1 %v3003_v57 }
 0x3a1   :  { %1959 = vmatprep.subr.bf16.mxu1 %v3008_v58  ;;  %v1489_v58 = vrot.slane %v1479_v52, %v3391_v13 }
 0x3a4   :  { %1960 = vmatpush1.bf16.msra.mxu1 %v3006_v33 }
 0x3a5   :  { %1961 = vmatprep.subr.bf16.mxu1 %v3011_v60 }
 0x3a8   :  { %1962 = vmatpush1.bf16.msra.mxu1 %v3009_v61 }
 0x3a9   :  { %1963 = vmatprep.subr.bf16.mxu1 %v3014_v62 }
 0x3ac   :  { %1964 = vmatpush1.bf16.msra.mxu1 %v3012_v63 }
 0x3ad   :  { %1965 = vmatprep.subr.bf16.mxu1 %v3017_v0 }
 0x3b0   :  { %1966 = vmatpush1.bf16.msra.mxu1 %v3015_v1 }
 0x3b1   :  { %1967 = vmatprep.subr.bf16.mxu1 %v3020_v2 }
 0x3b4   :  { %1968 = vmatpush1.bf16.msra.mxu1 %v3018_v3  ;;  %v2606_v3 = vld [vmem:[%s4090_s12 + $0x2] sm:$0x3] }
 0x3b5   :  { %1969 = vmatprep.subr.bf16.mxu1 %v3023_v4  ;;  %v1988_v4 = vrot.slane %v2606_v3, %v3391_v13 }
 0x3b8   :  { %1970 = vmatpush1.bf16.msra.mxu1 %v3021_v5 }
 0x3b9   :  { %1971 = vmatprep.subr.bf16.mxu1 %v3026_v6  ;;  %v1992_v6 = vrot.slane %v2606_v3, %v3397_v15 }
 0x3bc   :  { %1972 = vmatpush1.bf16.msra.mxu1 %v3024_v7 }
 0x3bf   :  { %1974 = vmatmul.mubr.bf16.vlgmr.msra.gmra.mrb[16].mxu1 %v3625_v59  ;;  %v3035_v59 = vld [vmem:[%s4088_s13 + $0x124] ss:$8 sps:$4 sm:$0xff]  }
 0x3c0   :  { %2211 = vmatprep.subr.bf16.mxu0 %v3035_v59 }
 0x3c1   :  { %2212 = vmatpush1.bf16.msra.mxu0 %v3033_v14 }
 0x3c2   :  { %2213 = vmatprep.subr.bf16.mxu0 %v3038_v16 }
 0x3c5   :  { %2214 = vmatpush1.bf16.msra.mxu0 %v3036_v17 }
 0x3c6   :  { %2215 = vmatprep.subr.bf16.mxu0 %v3041_v18 }
 0x3c9   :  { %2216 = vmatpush1.bf16.msra.mxu0 %v3039_v19 }
 0x3ca   :  { %2217 = vmatprep.subr.bf16.mxu0 %v3044_v20  ;;  %v2672_v20 = vld [vmem:[%s4091_s15 + $0x2] sm:$0x3] }
 0x3cd   :  { %2218 = vmatpush1.bf16.msra.mxu0 %v3042_v21  ;;  %v2252_v21 = vunpack.c.l.bf16 %v2672_v20 }
 0x3ce   :  { %2219 = vmatprep.subr.bf16.mxu0 %v3047_v22 }
 0x3cf   :  { %v2257_v22 = vrot.slane %v2252_v21, %v3391_v13 }
 0x3d1   :  { %2220 = vmatpush1.bf16.msra.mxu0 %v3045_v24 }
 0x3d2   :  { %2221 = vmatprep.subr.bf16.mxu0 %v3050_v26  ;;  %v2261_v26 = vrot.slane %v2252_v21, %v1478_v48 }
 0x3d5   :  { %2222 = vmatpush1.bf16.msra.mxu0 %v3048_v27 }
 0x3d6   :  { %2223 = vmatprep.subr.bf16.mxu0 %v3053_v28 }
 0x3d9   :  { %2224 = vmatpush1.bf16.msra.mxu0 %v3051_v30 }
 0x3da   :  { %2225 = vmatprep.subr.bf16.mxu0 %v3056_v31  ;;  %v2267_v31 = vrot.slane %v2257_v22, %v3391_v13 }
 0x3dd   :  { %2226 = vmatpush1.bf16.msra.mxu0 %v3054_v32 }
 0x3de   :  { %2227 = vmatprep.subr.bf16.mxu0 %v3059_v34 }
 0x3e1   :  { %2228 = vmatpush1.bf16.msra.mxu0 %v3057_v35  ;;  %v2271_v35 = vrot.slane %v2261_v26, %v3391_v13 }
 0x3e2   :  { %2229 = vmatprep.subr.bf16.mxu0 %v3062_v36 }
 0x3e5   :  { %2230 = vmatpush1.bf16.msra.mxu0 %v3060_v37 }
 0x3e6   :  { %2231 = vmatprep.subr.bf16.mxu0 %v3065_v38 }
 0x3e9   :  { %2232 = vmatpush1.bf16.msra.mxu0 %v3063_v39 }
 0x3ea   :  { %2233 = vmatprep.subr.bf16.mxu0 %v3068_v40 }
 0x3ed   :  { %2234 = vmatpush1.bf16.msra.mxu0 %v3066_v41 }
 0x3ee   :  { %2235 = vmatprep.subr.bf16.mxu0 %v3071_v42 }
 0x3f1   :  { %2236 = vmatpush1.bf16.msra.mxu0 %v3069_v43  ;;  %v2674_v43 = vld [vmem:[%s4093_s16 + $0x1] ss:$0 sm:$0xff] }
 0x3f2   :  { %2237 = vmatprep.subr.bf16.mxu0 %v3074_v44 }
 0x3f5   :  { %2238 = vmatpush1.bf16.msra.mxu0 %v3072_v45 }
 0x452   :  { %v1460_v53 = vpop.f32.mrb[12].mxu1 }
 0x453   :  { %v1461_v54 = vadd.f32 %v1460_v53, %v1259_v49  ;;  %v1462_v56 = vpop.f32.mrb[13].mxu1 }
 0x454   :  { %v1463_v57 = vadd.f32 %v1462_v56, %v1263_v51  ;;  %v1464_v33 = vpop.f32.mrb[14].mxu1 }
 0x455   :  { %v1467_v60 = vmax.f32 %v1461_v54, 0.0  ;;  %v1465_v61 = vpop.f32.mrb[15].mxu1 }
 0x456   :  { %v1468_v62 = vmax.f32 %v1463_v57, 0.0 }
 0x457   :  { %v1490_v12 = vmul.f32 %v1485_v55, %v1467_v60 }
 0x458   :  { %v1491_v63 = vmul.f32 %v1489_v58, %v1468_v62 }
 0x459   :  { %v1493_v0 = vsel %vm1492_vm3, %v1490_v12, 0.0 }
 0x45a   :  { %v1494_v1 = vsel %vm1492_vm3, %v1491_v63, 0.0 }
 0x45b   :  { %v1495_v2 = vadd.f32 %v1494_v1, %v1493_v0 }
 0x492   :  { %v1975_v5 = vpop.f32.mrb[16].mxu1 }
 0x493   :  { %v1976_v7 = vadd.f32 %v1975_v5, %v3835_v25  ;;  %v1977_v8 = vpop.f32.mrb[17].mxu1  ;;  %v2639_v25 = vld [vmem:[%s4092_s14 + $0x2] sm:$0x3] }
 0x494   :  { %v1978_v9 = vadd.f32 %v1977_v8, %v3838_v29  ;;  %v1979_v10 = vpop.f32.mrb[18].mxu1  ;;  %v2040_v29 = vrot.slane %v2639_v25, %v3391_v13  ;;  %v2044_v24 = vrot.slane %v2639_v25, %v3397_v15  ;;  %v2477_v13 = vld [vmem:[%s4093_s16] ss:$0 sm:$0xff] }
 0x495   :  { %v1995_v11 = vadd.f32 %v1988_v4, %v1976_v7  ;;  %v1980_v59 = vpop.f32.mrb[19].mxu1 }
 0x496   :  { %v1996_v14 = vadd.f32 %v1992_v6, %v1978_v9 }
 0x497   :  { %v1997_v16 = vmax.f32 %v1995_v11, 0.0 }
 0x498   :  { %v1998_v17 = vmax.f32 %v1996_v14, 0.0 }
 0x499   :  { %v1999_v19 = vpack.c.bf16 %v1997_v16, %v1997_v16 }
 0x49a   :  { %v2000_v18 = vpack.c.bf16 %v1998_v17, %v1998_v17 }
 0x49c   :  { %2239 = vmatprep.mubr.bf16.mxu0 %v2000_v18 }
 0x49d   :  { %2240 = vmatmul.mubr.bf16.vlgmr.msra.gmra.mrb[16].mxu0 %v1999_v19 }
 0x570   :  { %v2241_v27 = vpop.f32.mrb[16].mxu0 }
 0x571   :  { %v2242_v28 = vadd.f32 %v2241_v27, %v2040_v29  ;;  %v2243_v30 = vpop.f32.mrb[17].mxu0 }
 0x572   :  { %v2244_v32 = vadd.f32 %v2243_v30, %v2044_v24  ;;  %v2245_v34 = vpop.f32.mrb[18].mxu0 }
 0x573   :  { %v2248_v36 = vmax.f32 %v2242_v28, 0.0  ;;  %v2246_v37 = vpop.f32.mrb[19].mxu0 }
 0x574   :  { %v2249_v38 = vmax.f32 %v2244_v32, 0.0 }
 0x575   :  { %v2272_v39 = vmul.f32 %v2267_v31, %v2248_v36 }
 0x576   :  { %v2273_v40 = vmul.f32 %v2271_v35, %v2249_v38 }
 0x577   :  { %v2274_v41 = vsel %vm1492_vm3, %v2272_v39, 0.0 }
 0x578   :  { %v2275_v42 = vsel %vm1492_vm3, %v2273_v40, 0.0 }
 0x579   :  { %v2276_v15 = vadd.f32 %v2275_v42, %v2274_v41 }
 0x57b   :  { %2277 = vadd.xlane.f32.xlu0 %v2276_v15 }
 0x57f   :  { %1496 = vadd.xlane.f32.xlu0 %v1495_v2 }
 0x608   :  { %v2278_v44 = vpop.xlane.xlu0 %2277 }
 0x609   :  { %v2287_v45 = vadd.f32 %v2674_v43, %v2278_v44 }
 0x60b   :  { %v2288_v46 = vsub.f32 0.0, %v2287_v45 }
 0x60c   :  { %v1497_v47 = vpop.xlane.xlu0 %1496 }
 0x60d   :  { %v2289_v23 = vmul.f32 1.442695, %v2288_v46  ;;  %v1505_v48 = vadd.f32 %v2477_v13, %v1497_v47 }
 0x60f   :  { %3075 = vpow2.f32 %v2289_v23  ;;  %v1506_v49 = vsub.f32 0.0, %v1505_v48 }
 0x611   :  { %v1507_v50 = vmul.f32 1.442695, %v1506_v49 }
 0x613   :  { %3077 = vpow2.f32 %v1507_v50 }
 0x619   :  { %v3076_v51 = vpop.eup %3075 }
 0x61a   :  { %v2291_v52 = vadd.f32 1.0, %v3076_v51 }
 0x61c   :  { %3079 = vrcp.f32 %v2291_v52 }
 0x61d   :  { %v3078_v53 = vpop.eup %3077 }
 0x61e   :  { %v1509_v54 = vadd.f32 1.0, %v3078_v53 }
 0x620   :  { %3081 = vrcp.f32 %v1509_v54 }
 0x626   :  { %v3080_v55 = vpop.eup %3079 }
 0x627   :  { %2295 = vrot.lane.b32.xlu1 %v3080_v55, %s3084_s24 }
 0x62a   :  { %v3082_v56 = vpop.eup %3081 }
 0x62b   :  { %1513 = vst.msk [vmem:[%s4094_s17] sm:$0x3] %vm1512_vm4, %v3082_v56 }
 0x699   :  { %v2296_v57 = vpop.permute.xlu1 %2295 }
 0x69a   :  { %2299 = vst.msk [vmem:[%s4094_s17] sm:$0x3] %vm2298_vm5, %v2296_v57 }

</bundles_post_ra>
